<compile_context>
chip_gen: v7x
topology: tpu7x:2x2x1
jax: 0.10.0
libtpu: 0.0.40
codegen_flags: <defaults>
</compile_context>

<pallas_src>
import math
import numpy as np
import jax
import jax.numpy as jnp
from jax.experimental import pallas as pl
from jax.experimental.pallas import tpu as pltpu

# ---- model dims (match the PyTorch module) ----
X_DIM = 5
Y_DIM = 2
H1 = 500
H2 = 40
GRU_SIZE_SK = 3
N_GRU = 2

IN1 = X_DIM * 2 + Y_DIM + X_DIM * Y_DIM          # 22
IN2 = Y_DIM * 2 + Y_DIM + X_DIM * Y_DIM          # 16
OUT1 = X_DIM * X_DIM                             # 25
OUT2 = Y_DIM * Y_DIM                             # 4
GRU_IN = H1                                      # 500
GRU_H = round(GRU_SIZE_SK * (OUT1 + OUT2))       # 87

# ---- packed / padded layout constants ----
GP = 128            # padded hidden width (87 -> 128); one gate slot = 128 lanes
W = 4 * GP          # 512: slab width, gate slots {r, z, n_input, n_hidden}
L1P = 512           # l1 output width padded 500 -> 512

# Row offsets (multiples of 16 for bf16 sublane packing) inside one branch's
# weight slab.
R_W1 = 0
N_W1 = 32                 # l1 weight rows (22/16 real input dims, padded)
R_G0 = 32                 # fused GRU layer-0 block: [W_ih0 (512) ; W_hh0 (128)]
N_G0 = L1P + GP           # 640
R_G1 = R_G0 + N_G0        # 672: fused GRU layer-1 block: [W_ih1 (128) ; W_hh1 (128)]
N_G1 = 2 * GP             # 256
R_HEAD = R_G1 + N_G1      # 928: head: l2a at cols 0:40, l2b at cols 128:128+out
RB = R_HEAD + GP          # 1056 rows per branch

NB_ROWS = 8               # bias rows per branch (rows 0..3 used)
IO_ROWS = 8               # per-step input / output slab rows


# --------------------------------------------------------------------------
# Kernel.  Grid = (T,) time steps, sequential ("arbitrary") because the GRU
# hidden state is carried in VMEM scratch across steps.
#   in_ref : (8, 128)    f32  row0=input1, row1=input2, rows2..5=initial hn (t==0 only)
#   w_ref  : (2112, 512) bf16 packed weights, both branches (constant over t)
#   b_ref  : (16, 512)   f32  packed biases (constant over t)
#   out_ref: (8, 128)    f32  row0=Pk flat, row1=Sk flat, rows2..5=new hn
#   hid_ref: (8, 128)    f32  VMEM scratch carrying hn between time steps
# --------------------------------------------------------------------------
def skalman_kernel(in_ref, w_ref, b_ref, out_ref, hid_ref):
    t = pl.program_id(0)

    # Load initial hidden state (rows 2..5 of the step-0 input slab) into the
    # persistent scratch that carries it across time steps.
    @pl.when(t == 0)
    def _():
        hid_ref[...] = in_ref[...]

    def mm(lhs, r0, nr, c0=0, nc=W):
        blk = w_ref[r0:r0 + nr, c0:c0 + nc]                  # bf16, tile-aligned
        return jnp.dot(lhs.astype(jnp.bfloat16), blk,
                       preferred_element_type=jnp.float32)

    def branch(wo, bo, x_row, h0, h1):
        # l1 = relu(x @ W1 + b1)  -- single matmul, 512 output lanes (500 real)
        l1 = jnp.maximum(mm(x_row[:, 0:N_W1], wo + R_W1, N_W1)
                         + b_ref[bo + 0:bo + 1, :], 0.0)                    # (1,512)

        # GRU layer 0: ONE fused matmul over [l1 | h0]  (K = 640).
        # Output gate slots: 0 = r_i+r_h, 1 = z_i+z_h, 2 = n_i, 3 = n_h.
        g0 = mm(jnp.concatenate([l1, h0], axis=-1), wo + R_G0, N_G0) \
            + b_ref[bo + 1:bo + 2, :]
        r0 = jax.nn.sigmoid(g0[:, 0:GP])
        z0 = jax.nn.sigmoid(g0[:, GP:2 * GP])
        n0 = jnp.tanh(g0[:, 2 * GP:3 * GP] + r0 * g0[:, 3 * GP:4 * GP])
        h0n = (1.0 - z0) * n0 + z0 * h0                                     # (1,128)

        # GRU layer 1: ONE fused matmul over [h0n | h1]  (K = 256).
        g1 = mm(jnp.concatenate([h0n, h1], axis=-1), wo + R_G1, N_G1) \
            + b_ref[bo + 2:bo + 3, :]
        r1 = jax.nn.sigmoid(g1[:, 0:GP])
        z1 = jax.nn.sigmoid(g1[:, GP:2 * GP])
        n1 = jnp.tanh(g1[:, 2 * GP:3 * GP] + r1 * g1[:, 3 * GP:4 * GP])
        h1n = (1.0 - z1) * n1 + z1 * h1                                     # (1,128)

        # head: Linear(87->40) + ReLU + Linear(40->out); K trimmed to 96 / 48.
        th = jnp.maximum(mm(h1n[:, 0:96], wo + R_HEAD, 96, 0, GP)
                         + b_ref[bo + 3:bo + 4, 0:GP], 0.0)                 # (1,128)
        y = mm(th[:, 0:48], wo + R_HEAD, 48, GP, GP) \
            + b_ref[bo + 3:bo + 4, GP:2 * GP]                               # (1,128)
        return y, h0n, h1n

    # Both independent branches traced in one body -> the scheduler interleaves
    # their serial chains (fills MXU fill/drain + EUP latency bubbles).
    y1, h1_0n, h1_1n = branch(0, 0, in_ref[0:1, :],
                              hid_ref[2:3, :], hid_ref[3:4, :])
    y2, h2_0n, h2_1n = branch(RB, NB_ROWS, in_ref[1:2, :],
                              hid_ref[4:5, :], hid_ref[5:6, :])

    # carry the hidden state to the next time step
    hid_ref[2:3, :] = h1_0n
    hid_ref[3:4, :] = h1_1n
    hid_ref[4:5, :] = h2_0n
    hid_ref[5:6, :] = h2_1n

    # lane-dense per-step output slab, direct row stores (no sublane concat)
    out_ref[0:1, :] = y1
    out_ref[1:2, :] = y2
    out_ref[2:3, :] = h1_0n
    out_ref[3:4, :] = h1_1n
    out_ref[4:5, :] = h2_0n
    out_ref[5:6, :] = h2_1n
    out_ref[6:8, :] = jnp.zeros((2, GP), jnp.float32)


# --------------------------------------------------------------------------
# Wrappers.
# --------------------------------------------------------------------------
@jax.jit
def skalman_forward_seq(wslab, bslab, input1_seq, input2_seq, hn1, hn2):
    """Run T filter steps.  input1_seq: (T, 22), input2_seq: (T, 16)."""
    T = input1_seq.shape[0]
    inbuf = jnp.zeros((T, IO_ROWS, GP), jnp.float32)
    inbuf = inbuf.at[:, 0, :IN1].set(input1_seq.astype(jnp.float32))
    inbuf = inbuf.at[:, 1, :IN2].set(input2_seq.astype(jnp.float32))
    inbuf = inbuf.at[0, 2:4, :GRU_H].set(hn1.astype(jnp.float32))
    inbuf = inbuf.at[0, 4:6, :GRU_H].set(hn2.astype(jnp.float32))

    out = pl.pallas_call(
        skalman_kernel,
        out_shape=jax.ShapeDtypeStruct((T, IO_ROWS, GP), jnp.float32),
        grid=(T,),
        in_specs=[
            pl.BlockSpec((None, IO_ROWS, GP), lambda t: (t, 0, 0)),   # per-step input
            pl.BlockSpec((2 * RB, W), lambda t: (0, 0)),              # weights: constant -> DMA'd once
            pl.BlockSpec((2 * NB_ROWS, W), lambda t: (0, 0)),         # biases:  constant -> DMA'd once
        ],
        out_specs=pl.BlockSpec((None, IO_ROWS, GP), lambda t: (t, 0, 0)),
        scratch_shapes=[pltpu.VMEM((IO_ROWS, GP), jnp.float32)],      # hidden-state carry
        compiler_params=pltpu.CompilerParams(
            dimension_semantics=("arbitrary",)),                      # recurrent axis
    )(inbuf, wslab, bslab)

    Pk = out[:, 0, :OUT1].reshape(T, X_DIM, X_DIM)
    Sk = out[:, 1, :OUT2].reshape(T, Y_DIM, Y_DIM)
    hn1_new = out[T - 1, 2:4, :GRU_H]
    hn2_new = out[T - 1, 4:6, :GRU_H]
    return Pk, Sk, hn1_new, hn2_new


def skalman_forward(wslab, bslab, state_inno, observation_inno, diff_state,
                    diff_obs, linearization_error, jacobian, hn1, hn2):
    """Single step, matching the PyTorch module's forward signature."""
    in1 = jnp.concatenate(
        [state_inno, diff_state, linearization_error, jacobian], axis=0).reshape(1, -1)
    in2 = jnp.concatenate(
        [observation_inno, diff_obs, linearization_error, jacobian], axis=0).reshape(1, -1)
    Pk, Sk, hn1n, hn2n = skalman_forward_seq(wslab, bslab, in1, in2, hn1, hn2)
    return Pk[0], Sk[0], hn1n, hn2n


# --------------------------------------------------------------------------
# One-time parameter packing (host side, outside the hot path).
# --------------------------------------------------------------------------
def pack_params(params):
    p = [np.asarray(a, dtype=np.float32) for a in params]
    (w1, b1, g1_wih0, g1_whh0, g1_bih0, g1_bhh0,
     g1_wih1, g1_whh1, g1_bih1, g1_bhh1, w2a, b2a, w2b, b2b,
     w3, b3, g2_wih0, g2_whh0, g2_bih0, g2_bhh0,
     g2_wih1, g2_whh1, g2_bih1, g2_bhh1, w4a, b4a, w4b, b4b) = p

    wslab = np.zeros((2, RB, W), np.float32)
    bslab = np.zeros((2, NB_ROWS, W), np.float32)

    def gates(src, slots):
        """(rows, 3*87) gate-packed -> (rows, 512) with gate g at slot slots[g]."""
        dst = np.zeros((src.shape[0], W), np.float32)
        for g, s in enumerate(slots):
            dst[:, s * GP:s * GP + GRU_H] = src[:, g * GRU_H:(g + 1) * GRU_H]
        return dst

    def gru_bias(bih, bhh):
        bi, bh = bih.reshape(-1), bhh.reshape(-1)
        row = np.zeros((W,), np.float32)
        row[0 * GP:0 * GP + GRU_H] = bi[0:GRU_H] + bh[0:GRU_H]                  # r combined
        row[1 * GP:1 * GP + GRU_H] = bi[GRU_H:2 * GRU_H] + bh[GRU_H:2 * GRU_H]  # z combined
        row[2 * GP:2 * GP + GRU_H] = bi[2 * GRU_H:3 * GRU_H]                    # n (input)
        row[3 * GP:3 * GP + GRU_H] = bh[2 * GRU_H:3 * GRU_H]                    # n (hidden)
        return row

    def fill(i, wl, bl, wih0, whh0, bih0, bhh0, wih1, whh1, bih1, bhh1,
             wa, ba, wb, bb):
        Wb, Bb = wslab[i], bslab[i]
        nin = wl.shape[0]
        Wb[R_W1:R_W1 + nin, :H1] = wl
        Wb[R_G0:R_G0 + H1, :] = gates(wih0, (0, 1, 2))
        Wb[R_G0 + L1P:R_G0 + L1P + GRU_H, :] = gates(whh0, (0, 1, 3))
        Wb[R_G1:R_G1 + GRU_H, :] = gates(wih1, (0, 1, 2))
        Wb[R_G1 + GP:R_G1 + GP + GRU_H, :] = gates(whh1, (0, 1, 3))
        Wb[R_HEAD:R_HEAD + GRU_H, :H2] = wa
        Wb[R_HEAD:R_HEAD + H2, GP:GP + wb.shape[1]] = wb
        Bb[0, :H1] = bl.reshape(-1)
        Bb[1, :] = gru_bias(bih0, bhh0)
        Bb[2, :] = gru_bias(bih1, bhh1)
        Bb[3, :H2] = ba.reshape(-1)
        Bb[3, GP:GP + bb.shape[1]] = bb.reshape(-1)

    fill(0, w1, b1, g1_wih0, g1_whh0, g1_bih0, g1_bhh0,
         g1_wih1, g1_whh1, g1_bih1, g1_bhh1, w2a, b2a, w2b, b2b)
    fill(1, w3, b3, g2_wih0, g2_whh0, g2_bih0, g2_bhh0,
         g2_wih1, g2_whh1, g2_bih1, g2_bhh1, w4a, b4a, w4b, b4b)

    # layout invariant (kernel relies on it): hidden-lane padding (87:128 of
    # every gate slot) inside GRU weight rows / GRU bias rows must stay zero.
    gru_rows = wslab[:, R_G0:R_HEAD, :]
    for g in range(4):
        assert not np.any(gru_rows[:, :, g * GP + GRU_H:(g + 1) * GP])
        assert not np.any(bslab[:, 1:3, g * GP + GRU_H:(g + 1) * GP])

    return (jnp.asarray(wslab.reshape(2 * RB, W), dtype=jnp.bfloat16),
            jnp.asarray(bslab.reshape(2 * NB_ROWS, W), dtype=jnp.float32))


# ---- deterministic parameter init (PyTorch-style uniform bounds) ----
def _linear(key, fan_in, fan_out):
    kw, kb = jax.random.split(key)
    bound = 1.0 / math.sqrt(fan_in)
    Wm = jax.random.uniform(kw, (fan_in, fan_out), jnp.float32, -bound, bound)
    b = jax.random.uniform(kb, (1, fan_out), jnp.float32, -bound, bound)
    return Wm, b


def _gru_layer(key, in_dim, hidden):
    k1, k2, k3, k4 = jax.random.split(key, 4)
    bound = 1.0 / math.sqrt(hidden)
    wih = jax.random.uniform(k1, (in_dim, 3 * hidden), jnp.float32, -bound, bound)
    whh = jax.random.uniform(k2, (hidden, 3 * hidden), jnp.float32, -bound, bound)
    bih = jax.random.uniform(k3, (1, 3 * hidden), jnp.float32, -bound, bound)
    bhh = jax.random.uniform(k4, (1, 3 * hidden), jnp.float32, -bound, bound)
    return wih, whh, bih, bhh


def init_params(key):
    keys = jax.random.split(key, 10)
    w1, b1 = _linear(keys[0], IN1, H1)
    g1_l0 = _gru_layer(keys[1], GRU_IN, GRU_H)
    g1_l1 = _gru_layer(keys[2], GRU_H, GRU_H)
    w2a, b2a = _linear(keys[3], GRU_H, H2)
    w2b, b2b = _linear(keys[4], H2, OUT1)
    w3, b3 = _linear(keys[5], IN2, H1)
    g2_l0 = _gru_layer(keys[6], GRU_IN, GRU_H)
    g2_l1 = _gru_layer(keys[7], GRU_H, GRU_H)
    w4a, b4a = _linear(keys[8], GRU_H, H2)
    w4b, b4b = _linear(keys[9], H2, OUT2)
    return (w1, b1, *g1_l0, *g1_l1, w2a, b2a, w2b, b2b,
            w3, b3, *g2_l0, *g2_l1, w4a, b4a, w4b, b4b)


def round_weights_bf16(params):
    """bf16-round the weight matrices (biases stay f32, as in the kernel)."""
    return tuple(p.astype(jnp.bfloat16).astype(jnp.float32) if p.shape[0] > 1 else p
                 for p in params)


# ---- pure-JAX references ----
def _ref_gru_cell(x, h, wih, whh, bih, bhh):
    Hh = h.shape[-1]
    gi = x @ wih + bih
    gh = h @ whh + bhh
    r = jax.nn.sigmoid(gi[:, :Hh] + gh[:, :Hh])
    z = jax.nn.sigmoid(gi[:, Hh:2 * Hh] + gh[:, Hh:2 * Hh])
    n = jnp.tanh(gi[:, 2 * Hh:] + r * gh[:, 2 * Hh:])
    return (1.0 - z) * n + z * h


def reference_step(params, in1, in2, hn1, hn2):
    (w1, b1, g1_wih0, g1_whh0, g1_bih0, g1_bhh0,
     g1_wih1, g1_whh1, g1_bih1, g1_bhh1, w2a, b2a, w2b, b2b,
     w3, b3, g2_wih0, g2_whh0, g2_bih0, g2_bhh0,
     g2_wih1, g2_whh1, g2_bih1, g2_bhh1, w4a, b4a, w4b, b4b) = params

    def branch(x, hn, wl, bl, wih0, whh0, bih0, bhh0, wih1, whh1, bih1, bhh1,
               wa, ba, wb, bb):
        l = jnp.maximum(x @ wl + bl, 0.0)
        h0 = _ref_gru_cell(l, hn[0:1], wih0, whh0, bih0, bhh0)
        h1 = _ref_gru_cell(h0, hn[1:2], wih1, whh1, bih1, bhh1)
        th = jnp.maximum(h1 @ wa + ba, 0.0)
        return th @ wb + bb, jnp.concatenate([h0, h1], axis=0)

    pk, hn1n = branch(in1, hn1, w1, b1, g1_wih0, g1_whh0, g1_bih0, g1_bhh0,
                      g1_wih1, g1_whh1, g1_bih1, g1_bhh1, w2a, b2a, w2b, b2b)
    sk, hn2n = branch(in2, hn2, w3, b3, g2_wih0, g2_whh0, g2_bih0, g2_bhh0,
                      g2_wih1, g2_whh1, g2_bih1, g2_bhh1, w4a, b4a, w4b, b4b)
    return pk.reshape(X_DIM, X_DIM), sk.reshape(Y_DIM, Y_DIM), hn1n, hn2n


def reference_seq(params, in1_seq, in2_seq, hn1, hn2):
    pks, sks = [], []
    for t in range(in1_seq.shape[0]):
        pk, sk, hn1, hn2 = reference_step(params, in1_seq[t:t + 1],
                                          in2_seq[t:t + 1], hn1, hn2)
        pks.append(pk)
        sks.append(sk)
    return jnp.stack(pks), jnp.stack(sks), hn1, hn2


if __name__ == "__main__":
    key = jax.random.PRNGKey(0)
    k_par, k_h1, k_h2, k_in = jax.random.split(key, 4)

    params = init_params(k_par)
    wslab, bslab = pack_params(params)            # one-time packing, off hot path
    params_bf16 = round_weights_bf16(params)      # reference with bf16-rounded weights

    hn1 = jax.random.normal(k_h1, (N_GRU, GRU_H), jnp.float32)
    hn2 = jax.random.normal(k_h2, (N_GRU, GRU_H), jnp.float32)

    T = 6
    ks = jax.random.split(k_in, 6)
    state_inno = jax.random.normal(ks[0], (T, X_DIM, 1), jnp.float32)
    observation_inno = jax.random.normal(ks[1], (T, Y_DIM, 1), jnp.float32)
    diff_state = jax.random.normal(ks[2], (T, X_DIM, 1), jnp.float32)
    diff_obs = jax.random.normal(ks[3], (T, Y_DIM, 1), jnp.float32)
    lin_err = jax.random.normal(ks[4], (T, Y_DIM, 1), jnp.float32)
    jac = jax.random.normal(ks[5], (T, X_DIM * Y_DIM, 1), jnp.float32)

    def maxdiff(a, b):
        return float(jnp.max(jnp.abs(a - b)))

    # ---- single step (matches the PyTorch module's forward semantics) ----
    Pk, Sk, hn1_n, hn2_n = skalman_forward(
        wslab, bslab, state_inno[0], observation_inno[0], diff_state[0],
        diff_obs[0], lin_err[0], jac[0], hn1, hn2)
    jax.block_until_ready((Pk, Sk, hn1_n, hn2_n))

    in1_0 = jnp.concatenate([state_inno[0], diff_state[0], lin_err[0], jac[0]],
                            axis=0).reshape(1, -1)
    in2_0 = jnp.concatenate([observation_inno[0], diff_obs[0], lin_err[0], jac[0]],
                            axis=0).reshape(1, -1)
    Pk_r, Sk_r, hn1_r, hn2_r = reference_step(params_bf16, in1_0, in2_0, hn1, hn2)
    Pk_f, Sk_f, _, _ = reference_step(params, in1_0, in2_0, hn1, hn2)

    assert Pk.shape == (X_DIM, X_DIM) and Sk.shape == (Y_DIM, Y_DIM)
    assert hn1_n.shape == (N_GRU, GRU_H) and hn2_n.shape == (N_GRU, GRU_H)
    tol_bf = 5e-2      # vs bf16-weight reference (tight)
    tol_f32 = 2e-1     # vs full-f32 reference (loose, bf16 weight rounding)
    assert maxdiff(Pk, Pk_r) < tol_bf and maxdiff(Sk, Sk_r) < tol_bf
    assert maxdiff(hn1_n, hn1_r) < tol_bf and maxdiff(hn2_n, hn2_r) < tol_bf
    assert maxdiff(Pk, Pk_f) < tol_f32 and maxdiff(Sk, Sk_f) < tol_f32

    # ---- multi-step filter loop: weights stay VMEM-resident across T steps ----
    in1_seq = jnp.concatenate([state_inno, diff_state, lin_err, jac],
                              axis=1).reshape(T, -1)                    # (T, 22)
    in2_seq = jnp.concatenate([observation_inno, diff_obs, lin_err, jac],
                              axis=1).reshape(T, -1)                    # (T, 16)
    Pk_s, Sk_s, hn1_s, hn2_s = skalman_forward_seq(
        wslab, bslab, in1_seq, in2_seq, hn1, hn2)
    jax.block_until_ready((Pk_s, Sk_s, hn1_s, hn2_s))

    Pk_sr, Sk_sr, hn1_sr, hn2_sr = reference_seq(params_bf16, in1_seq, in2_seq, hn1, hn2)
    tol_seq = 1e-1
    assert Pk_s.shape == (T, X_DIM, X_DIM) and Sk_s.shape == (T, Y_DIM, Y_DIM)
    assert maxdiff(Pk_s, Pk_sr) < tol_seq and maxdiff(Sk_s, Sk_sr) < tol_seq
    assert maxdiff(hn1_s, hn1_sr) < tol_seq and maxdiff(hn2_s, hn2_sr) < tol_seq

    print("KERNEL_OK")
</pallas_src>

<mosaic_0001>
module attributes {stable_mosaic.version = 11 : i64} {
  func.func @skalman_kernel(%arg0: i32, %arg1: memref<1x8x128xf32, #tpu.memory_space<vmem>>, %arg2: memref<2112x512xbf16, #tpu.memory_space<vmem>>, %arg3: memref<16x512xf32, #tpu.memory_space<vmem>>, %arg4: memref<1x8x128xf32, #tpu.memory_space<vmem>>, %arg5: memref<8x128xf32, #tpu.memory_space<vmem>>) attributes {dimension_semantics = [#tpu.dimension_semantics<arbitrary>], iteration_bounds = array<i64: 1>, scalar_prefetch = 0 : i64, scratch_operands = 1 : i64, tpu.core_type = #tpu.core_type<tc>, window_params = [{transform_indices = @transform_0, window_bounds = array<i64: 1, 8, 128>}, {pipeline_mode = #tpu.pipeline_mode<synchronous>, transform_indices = @transform_1, window_bounds = array<i64: 2112, 512>}, {pipeline_mode = #tpu.pipeline_mode<synchronous>, transform_indices = @transform_2, window_bounds = array<i64: 16, 512>}, {transform_indices = @transform_3, window_bounds = array<i64: 1, 8, 128>}]} {
    %c0_i32 = arith.constant 0 : i32
    %0 = arith.cmpi eq, %arg0, %c0_i32 : i32
    %1 = arith.extui %0 : i1 to i32
    %c0_i32_0 = arith.constant 0 : i32
    %2 = arith.cmpi ne, %1, %c0_i32_0 : i32
    scf.if %2 {
      %c0_91 = arith.constant 0 : index
      %c0_92 = arith.constant 0 : index
      %c0_93 = arith.constant 0 : index
      %193 = vector.load %arg1[%c0_91, %c0_92, %c0_93] : memref<1x8x128xf32, #tpu.memory_space<vmem>>, vector<1x8x128xf32>
      %194 = vector.shape_cast %193 : vector<1x8x128xf32> to vector<8x128xf32>
      %c0_94 = arith.constant 0 : index
      %c0_95 = arith.constant 0 : index
      %195 = vector.load %arg5[%c0_94, %c0_95] : memref<8x128xf32, #tpu.memory_space<vmem>>, vector<8x128xf32>
      tpu.vector_store %arg5[%c0_94, %c0_95], %194 {strides = array<i32>} : memref<8x128xf32, #tpu.memory_space<vmem>>, vector<8x128xf32>,
    } else {
    }
    %c0 = arith.constant 0 : index
    %c0_1 = arith.constant 0 : index
    %c0_2 = arith.constant 0 : index
    %3 = vector.load %arg1[%c0, %c0_1, %c0_2] : memref<1x8x128xf32, #tpu.memory_space<vmem>>, vector<1x1x128xf32>
    %4 = vector.shape_cast %3 : vector<1x1x128xf32> to vector<1x128xf32>
    %c2 = arith.constant 2 : index
    %c0_3 = arith.constant 0 : index
    %5 = vector.load %arg5[%c2, %c0_3] : memref<8x128xf32, #tpu.memory_space<vmem>>, vector<1x128xf32>
    %c3 = arith.constant 3 : index
    %c0_4 = arith.constant 0 : index
    %6 = vector.load %arg5[%c3, %c0_4] : memref<8x128xf32, #tpu.memory_space<vmem>>, vector<1x128xf32>
    %7 = vector.extract_strided_slice %4 {offsets = [0, 0], sizes = [1, 32], strides = [1, 1]} : vector<1x128xf32> to vector<1x32xf32>
    %c0_5 = arith.constant 0 : index
    %c0_6 = arith.constant 0 : index
    %8 = vector.load %arg2[%c0_5, %c0_6] : memref<2112x512xbf16, #tpu.memory_space<vmem>>, vector<32x512xbf16>
    %9 = arith.truncf %7 : vector<1x32xf32> to vector<1x32xbf16>
    %cst = arith.constant dense<0.000000e+00> : vector<1x512xf32>
    %10 = tpu.matmul %9, %8, %cst {dimension_numbers = #tpu.dot_dimension_numbers<[1], [0], [0], [1], [0, 0, 1, 1], [], []>} : vector<1x32xbf16>, vector<32x512xbf16>, vector<1x512xf32> -> vector<1x512xf32>
    %c0_7 = arith.constant 0 : index
    %c0_8 = arith.constant 0 : index
    %11 = vector.load %arg3[%c0_7, %c0_8] : memref<16x512xf32, #tpu.memory_space<vmem>>, vector<1x512xf32>
    %12 = arith.addf %10, %11 : vector<1x512xf32>
    %cst_9 = arith.constant 0.000000e+00 : f32
    %13 = vector.broadcast %cst_9 : f32 to vector<1x512xf32>
    %14 = arith.maximumf %12, %13 : vector<1x512xf32>
    %15 = tpu.concatenate %14, %5 in 1 : vector<1x512xf32>, vector<1x128xf32> -> vector<1x640xf32>
    %c32 = arith.constant 32 : index
    %c0_10 = arith.constant 0 : index
    %16 = vector.load %arg2[%c32, %c0_10] : memref<2112x512xbf16, #tpu.memory_space<vmem>>, vector<640x512xbf16>
    %17 = arith.truncf %15 : vector<1x640xf32> to vector<1x640xbf16>
    %cst_11 = arith.constant dense<0.000000e+00> : vector<1x512xf32>
    %18 = tpu.matmul %17, %16, %cst_11 {dimension_numbers = #tpu.dot_dimension_numbers<[1], [0], [0], [1], [0, 0, 1, 1], [], []>} : vector<1x640xbf16>, vector<640x512xbf16>, vector<1x512xf32> -> vector<1x512xf32>
    %c1 = arith.constant 1 : index
    %c0_12 = arith.constant 0 : index
    %19 = vector.load %arg3[%c1, %c0_12] : memref<16x512xf32, #tpu.memory_space<vmem>>, vector<1x512xf32>
    %20 = arith.addf %18, %19 : vector<1x512xf32>
    %21 = vector.extract_strided_slice %20 {offsets = [0, 0], sizes = [1, 128], strides = [1, 1]} : vector<1x512xf32> to vector<1x128xf32>
    %22 = arith.negf %21 : vector<1x128xf32>
    %23 = math.exp %22 : vector<1x128xf32>
    %cst_13 = arith.constant 1.000000e+00 : f32
    %24 = vector.broadcast %cst_13 : f32 to vector<1x128xf32>
    %25 = arith.addf %24, %23 : vector<1x128xf32>
    %26 = arith.divf %24, %25 : vector<1x128xf32>
    %27 = vector.extract_strided_slice %20 {offsets = [0, 128], sizes = [1, 128], strides = [1, 1]} : vector<1x512xf32> to vector<1x128xf32>
    %28 = arith.negf %27 : vector<1x128xf32>
    %29 = math.exp %28 : vector<1x128xf32>
    %cst_14 = arith.constant 1.000000e+00 : f32
    %30 = vector.broadcast %cst_14 : f32 to vector<1x128xf32>
    %31 = arith.addf %30, %29 : vector<1x128xf32>
    %32 = arith.divf %30, %31 : vector<1x128xf32>
    %33 = vector.extract_strided_slice %20 {offsets = [0, 256], sizes = [1, 128], strides = [1, 1]} : vector<1x512xf32> to vector<1x128xf32>
    %34 = vector.extract_strided_slice %20 {offsets = [0, 384], sizes = [1, 128], strides = [1, 1]} : vector<1x512xf32> to vector<1x128xf32>
    %35 = arith.mulf %26, %34 : vector<1x128xf32>
    %36 = arith.addf %33, %35 : vector<1x128xf32>
    %37 = math.tanh %36 : vector<1x128xf32>
    %cst_15 = arith.constant 1.000000e+00 : f32
    %38 = vector.broadcast %cst_15 : f32 to vector<1x128xf32>
    %39 = arith.subf %38, %32 : vector<1x128xf32>
    %40 = arith.mulf %39, %37 : vector<1x128xf32>
    %41 = arith.mulf %32, %5 : vector<1x128xf32>
    %42 = arith.addf %40, %41 : vector<1x128xf32>
    %43 = tpu.concatenate %42, %6 in 1 : vector<1x128xf32>, vector<1x128xf32> -> vector<1x256xf32>
    %c672 = arith.constant 672 : index
    %c0_16 = arith.constant 0 : index
    %44 = vector.load %arg2[%c672, %c0_16] : memref<2112x512xbf16, #tpu.memory_space<vmem>>, vector<256x512xbf16>
    %45 = arith.truncf %43 : vector<1x256xf32> to vector<1x256xbf16>
    %cst_17 = arith.constant dense<0.000000e+00> : vector<1x512xf32>
    %46 = tpu.matmul %45, %44, %cst_17 {dimension_numbers = #tpu.dot_dimension_numbers<[1], [0], [0], [1], [0, 0, 1, 1], [], []>} : vector<1x256xbf16>, vector<256x512xbf16>, vector<1x512xf32> -> vector<1x512xf32>
    %c2_18 = arith.constant 2 : index
    %c0_19 = arith.constant 0 : index
    %47 = vector.load %arg3[%c2_18, %c0_19] : memref<16x512xf32, #tpu.memory_space<vmem>>, vector<1x512xf32>
    %48 = arith.addf %46, %47 : vector<1x512xf32>
    %49 = vector.extract_strided_slice %48 {offsets = [0, 0], sizes = [1, 128], strides = [1, 1]} : vector<1x512xf32> to vector<1x128xf32>
    %50 = arith.negf %49 : vector<1x128xf32>
    %51 = math.exp %50 : vector<1x128xf32>
    %cst_20 = arith.constant 1.000000e+00 : f32
    %52 = vector.broadcast %cst_20 : f32 to vector<1x128xf32>
    %53 = arith.addf %52, %51 : vector<1x128xf32>
    %54 = arith.divf %52, %53 : vector<1x128xf32>
    %55 = vector.extract_strided_slice %48 {offsets = [0, 128], sizes = [1, 128], strides = [1, 1]} : vector<1x512xf32> to vector<1x128xf32>
    %56 = arith.negf %55 : vector<1x128xf32>
    %57 = math.exp %56 : vector<1x128xf32>
    %cst_21 = arith.constant 1.000000e+00 : f32
    %58 = vector.broadcast %cst_21 : f32 to vector<1x128xf32>
    %59 = arith.addf %58, %57 : vector<1x128xf32>
    %60 = arith.divf %58, %59 : vector<1x128xf32>
    %61 = vector.extract_strided_slice %48 {offsets = [0, 256], sizes = [1, 128], strides = [1, 1]} : vector<1x512xf32> to vector<1x128xf32>
    %62 = vector.extract_strided_slice %48 {offsets = [0, 384], sizes = [1, 128], strides = [1, 1]} : vector<1x512xf32> to vector<1x128xf32>
    %63 = arith.mulf %54, %62 : vector<1x128xf32>
    %64 = arith.addf %61, %63 : vector<1x128xf32>
    %65 = math.tanh %64 : vector<1x128xf32>
    %cst_22 = arith.constant 1.000000e+00 : f32
    %66 = vector.broadcast %cst_22 : f32 to vector<1x128xf32>
    %67 = arith.subf %66, %60 : vector<1x128xf32>
    %68 = arith.mulf %67, %65 : vector<1x128xf32>
    %69 = arith.mulf %60, %6 : vector<1x128xf32>
    %70 = arith.addf %68, %69 : vector<1x128xf32>
    %71 = vector.extract_strided_slice %70 {offsets = [0, 0], sizes = [1, 96], strides = [1, 1]} : vector<1x128xf32> to vector<1x96xf32>
    %c928 = arith.constant 928 : index
    %c0_23 = arith.constant 0 : index
    %72 = vector.load %arg2[%c928, %c0_23] : memref<2112x512xbf16, #tpu.memory_space<vmem>>, vector<96x128xbf16>
    %73 = arith.truncf %71 : vector<1x96xf32> to vector<1x96xbf16>
    %cst_24 = arith.constant dense<0.000000e+00> : vector<1x128xf32>
    %74 = tpu.matmul %73, %72, %cst_24 {dimension_numbers = #tpu.dot_dimension_numbers<[1], [0], [0], [1], [0, 0, 1, 1], [], []>} : vector<1x96xbf16>, vector<96x128xbf16>, vector<1x128xf32> -> vector<1x128xf32>
    %c3_25 = arith.constant 3 : index
    %c0_26 = arith.constant 0 : index
    %75 = vector.load %arg3[%c3_25, %c0_26] : memref<16x512xf32, #tpu.memory_space<vmem>>, vector<1x128xf32>
    %76 = arith.addf %74, %75 : vector<1x128xf32>
    %cst_27 = arith.constant 0.000000e+00 : f32
    %77 = vector.broadcast %cst_27 : f32 to vector<1x128xf32>
    %78 = arith.maximumf %76, %77 : vector<1x128xf32>
    %79 = vector.extract_strided_slice %78 {offsets = [0, 0], sizes = [1, 48], strides = [1, 1]} : vector<1x128xf32> to vector<1x48xf32>
    %c928_28 = arith.constant 928 : index
    %c128 = arith.constant 128 : index
    %80 = vector.load %arg2[%c928_28, %c128] : memref<2112x512xbf16, #tpu.memory_space<vmem>>, vector<48x128xbf16>
    %81 = arith.truncf %79 : vector<1x48xf32> to vector<1x48xbf16>
    %cst_29 = arith.constant dense<0.000000e+00> : vector<1x128xf32>
    %82 = tpu.matmul %81, %80, %cst_29 {dimension_numbers = #tpu.dot_dimension_numbers<[1], [0], [0], [1], [0, 0, 1, 1], [], []>} : vector<1x48xbf16>, vector<48x128xbf16>, vector<1x128xf32> -> vector<1x128xf32>
    %c3_30 = arith.constant 3 : index
    %c128_31 = arith.constant 128 : index
    %83 = vector.load %arg3[%c3_30, %c128_31] : memref<16x512xf32, #tpu.memory_space<vmem>>, vector<1x128xf32>
    %84 = arith.addf %82, %83 : vector<1x128xf32>
    %c0_32 = arith.constant 0 : index
    %c1_33 = arith.constant 1 : index
    %c0_34 = arith.constant 0 : index
    %85 = vector.load %arg1[%c0_32, %c1_33, %c0_34] : memref<1x8x128xf32, #tpu.memory_space<vmem>>, vector<1x1x128xf32>
    %86 = vector.shape_cast %85 : vector<1x1x128xf32> to vector<1x128xf32>
    %c4 = arith.constant 4 : index
    %c0_35 = arith.constant 0 : index
    %87 = vector.load %arg5[%c4, %c0_35] : memref<8x128xf32, #tpu.memory_space<vmem>>, vector<1x128xf32>
    %c5 = arith.constant 5 : index
    %c0_36 = arith.constant 0 : index
    %88 = vector.load %arg5[%c5, %c0_36] : memref<8x128xf32, #tpu.memory_space<vmem>>, vector<1x128xf32>
    %89 = vector.extract_strided_slice %86 {offsets = [0, 0], sizes = [1, 32], strides = [1, 1]} : vector<1x128xf32> to vector<1x32xf32>
    %c1056 = arith.constant 1056 : index
    %c0_37 = arith.constant 0 : index
    %90 = vector.load %arg2[%c1056, %c0_37] : memref<2112x512xbf16, #tpu.memory_space<vmem>>, vector<32x512xbf16>
    %91 = arith.truncf %89 : vector<1x32xf32> to vector<1x32xbf16>
    %cst_38 = arith.constant dense<0.000000e+00> : vector<1x512xf32>
    %92 = tpu.matmul %91, %90, %cst_38 {dimension_numbers = #tpu.dot_dimension_numbers<[1], [0], [0], [1], [0, 0, 1, 1], [], []>} : vector<1x32xbf16>, vector<32x512xbf16>, vector<1x512xf32> -> vector<1x512xf32>
    %c8 = arith.constant 8 : index
    %c0_39 = arith.constant 0 : index
    %93 = vector.load %arg3[%c8, %c0_39] : memref<16x512xf32, #tpu.memory_space<vmem>>, vector<1x512xf32>
    %94 = arith.addf %92, %93 : vector<1x512xf32>
    %cst_40 = arith.constant 0.000000e+00 : f32
    %95 = vector.broadcast %cst_40 : f32 to vector<1x512xf32>
    %96 = arith.maximumf %94, %95 : vector<1x512xf32>
    %97 = tpu.concatenate %96, %87 in 1 : vector<1x512xf32>, vector<1x128xf32> -> vector<1x640xf32>
    %c1088 = arith.constant 1088 : index
    %c0_41 = arith.constant 0 : index
    %98 = vector.load %arg2[%c1088, %c0_41] : memref<2112x512xbf16, #tpu.memory_space<vmem>>, vector<640x512xbf16>
    %99 = arith.truncf %97 : vector<1x640xf32> to vector<1x640xbf16>
    %cst_42 = arith.constant dense<0.000000e+00> : vector<1x512xf32>
    %100 = tpu.matmul %99, %98, %cst_42 {dimension_numbers = #tpu.dot_dimension_numbers<[1], [0], [0], [1], [0, 0, 1, 1], [], []>} : vector<1x640xbf16>, vector<640x512xbf16>, vector<1x512xf32> -> vector<1x512xf32>
    %c9 = arith.constant 9 : index
    %c0_43 = arith.constant 0 : index
    %101 = vector.load %arg3[%c9, %c0_43] : memref<16x512xf32, #tpu.memory_space<vmem>>, vector<1x512xf32>
    %102 = arith.addf %100, %101 : vector<1x512xf32>
    %103 = vector.extract_strided_slice %102 {offsets = [0, 0], sizes = [1, 128], strides = [1, 1]} : vector<1x512xf32> to vector<1x128xf32>
    %104 = arith.negf %103 : vector<1x128xf32>
    %105 = math.exp %104 : vector<1x128xf32>
    %cst_44 = arith.constant 1.000000e+00 : f32
    %106 = vector.broadcast %cst_44 : f32 to vector<1x128xf32>
    %107 = arith.addf %106, %105 : vector<1x128xf32>
    %108 = arith.divf %106, %107 : vector<1x128xf32>
    %109 = vector.extract_strided_slice %102 {offsets = [0, 128], sizes = [1, 128], strides = [1, 1]} : vector<1x512xf32> to vector<1x128xf32>
    %110 = arith.negf %109 : vector<1x128xf32>
    %111 = math.exp %110 : vector<1x128xf32>
    %cst_45 = arith.constant 1.000000e+00 : f32
    %112 = vector.broadcast %cst_45 : f32 to vector<1x128xf32>
    %113 = arith.addf %112, %111 : vector<1x128xf32>
    %114 = arith.divf %112, %113 : vector<1x128xf32>
    %115 = vector.extract_strided_slice %102 {offsets = [0, 256], sizes = [1, 128], strides = [1, 1]} : vector<1x512xf32> to vector<1x128xf32>
    %116 = vector.extract_strided_slice %102 {offsets = [0, 384], sizes = [1, 128], strides = [1, 1]} : vector<1x512xf32> to vector<1x128xf32>
    %117 = arith.mulf %108, %116 : vector<1x128xf32>
    %118 = arith.addf %115, %117 : vector<1x128xf32>
    %119 = math.tanh %118 : vector<1x128xf32>
    %cst_46 = arith.constant 1.000000e+00 : f32
    %120 = vector.broadcast %cst_46 : f32 to vector<1x128xf32>
    %121 = arith.subf %120, %114 : vector<1x128xf32>
    %122 = arith.mulf %121, %119 : vector<1x128xf32>
    %123 = arith.mulf %114, %87 : vector<1x128xf32>
    %124 = arith.addf %122, %123 : vector<1x128xf32>
    %125 = tpu.concatenate %124, %88 in 1 : vector<1x128xf32>, vector<1x128xf32> -> vector<1x256xf32>
    %c1728 = arith.constant 1728 : index
    %c0_47 = arith.constant 0 : index
    %126 = vector.load %arg2[%c1728, %c0_47] : memref<2112x512xbf16, #tpu.memory_space<vmem>>, vector<256x512xbf16>
    %127 = arith.truncf %125 : vector<1x256xf32> to vector<1x256xbf16>
    %cst_48 = arith.constant dense<0.000000e+00> : vector<1x512xf32>
    %128 = tpu.matmul %127, %126, %cst_48 {dimension_numbers = #tpu.dot_dimension_numbers<[1], [0], [0], [1], [0, 0, 1, 1], [], []>} : vector<1x256xbf16>, vector<256x512xbf16>, vector<1x512xf32> -> vector<1x512xf32>
    %c10 = arith.constant 10 : index
    %c0_49 = arith.constant 0 : index
    %129 = vector.load %arg3[%c10, %c0_49] : memref<16x512xf32, #tpu.memory_space<vmem>>, vector<1x512xf32>
    %130 = arith.addf %128, %129 : vector<1x512xf32>
    %131 = vector.extract_strided_slice %130 {offsets = [0, 0], sizes = [1, 128], strides = [1, 1]} : vector<1x512xf32> to vector<1x128xf32>
    %132 = arith.negf %131 : vector<1x128xf32>
    %133 = math.exp %132 : vector<1x128xf32>
    %cst_50 = arith.constant 1.000000e+00 : f32
    %134 = vector.broadcast %cst_50 : f32 to vector<1x128xf32>
    %135 = arith.addf %134, %133 : vector<1x128xf32>
    %136 = arith.divf %134, %135 : vector<1x128xf32>
    %137 = vector.extract_strided_slice %130 {offsets = [0, 128], sizes = [1, 128], strides = [1, 1]} : vector<1x512xf32> to vector<1x128xf32>
    %138 = arith.negf %137 : vector<1x128xf32>
    %139 = math.exp %138 : vector<1x128xf32>
    %cst_51 = arith.constant 1.000000e+00 : f32
    %140 = vector.broadcast %cst_51 : f32 to vector<1x128xf32>
    %141 = arith.addf %140, %139 : vector<1x128xf32>
    %142 = arith.divf %140, %141 : vector<1x128xf32>
    %143 = vector.extract_strided_slice %130 {offsets = [0, 256], sizes = [1, 128], strides = [1, 1]} : vector<1x512xf32> to vector<1x128xf32>
    %144 = vector.extract_strided_slice %130 {offsets = [0, 384], sizes = [1, 128], strides = [1, 1]} : vector<1x512xf32> to vector<1x128xf32>
    %145 = arith.mulf %136, %144 : vector<1x128xf32>
    %146 = arith.addf %143, %145 : vector<1x128xf32>
    %147 = math.tanh %146 : vector<1x128xf32>
    %cst_52 = arith.constant 1.000000e+00 : f32
    %148 = vector.broadcast %cst_52 : f32 to vector<1x128xf32>
    %149 = arith.subf %148, %142 : vector<1x128xf32>
    %150 = arith.mulf %149, %147 : vector<1x128xf32>
    %151 = arith.mulf %142, %88 : vector<1x128xf32>
    %152 = arith.addf %150, %151 : vector<1x128xf32>
    %153 = vector.extract_strided_slice %152 {offsets = [0, 0], sizes = [1, 96], strides = [1, 1]} : vector<1x128xf32> to vector<1x96xf32>
    %c1984 = arith.constant 1984 : index
    %c0_53 = arith.constant 0 : index
    %154 = vector.load %arg2[%c1984, %c0_53] : memref<2112x512xbf16, #tpu.memory_space<vmem>>, vector<96x128xbf16>
    %155 = arith.truncf %153 : vector<1x96xf32> to vector<1x96xbf16>
    %cst_54 = arith.constant dense<0.000000e+00> : vector<1x128xf32>
    %156 = tpu.matmul %155, %154, %cst_54 {dimension_numbers = #tpu.dot_dimension_numbers<[1], [0], [0], [1], [0, 0, 1, 1], [], []>} : vector<1x96xbf16>, vector<96x128xbf16>, vector<1x128xf32> -> vector<1x128xf32>
    %c11 = arith.constant 11 : index
    %c0_55 = arith.constant 0 : index
    %157 = vector.load %arg3[%c11, %c0_55] : memref<16x512xf32, #tpu.memory_space<vmem>>, vector<1x128xf32>
    %158 = arith.addf %156, %157 : vector<1x128xf32>
    %cst_56 = arith.constant 0.000000e+00 : f32
    %159 = vector.broadcast %cst_56 : f32 to vector<1x128xf32>
    %160 = arith.maximumf %158, %159 : vector<1x128xf32>
    %161 = vector.extract_strided_slice %160 {offsets = [0, 0], sizes = [1, 48], strides = [1, 1]} : vector<1x128xf32> to vector<1x48xf32>
    %c1984_57 = arith.constant 1984 : index
    %c128_58 = arith.constant 128 : index
    %162 = vector.load %arg2[%c1984_57, %c128_58] : memref<2112x512xbf16, #tpu.memory_space<vmem>>, vector<48x128xbf16>
    %163 = arith.truncf %161 : vector<1x48xf32> to vector<1x48xbf16>
    %cst_59 = arith.constant dense<0.000000e+00> : vector<1x128xf32>
    %164 = tpu.matmul %163, %162, %cst_59 {dimension_numbers = #tpu.dot_dimension_numbers<[1], [0], [0], [1], [0, 0, 1, 1], [], []>} : vector<1x48xbf16>, vector<48x128xbf16>, vector<1x128xf32> -> vector<1x128xf32>
    %c11_60 = arith.constant 11 : index
    %c128_61 = arith.constant 128 : index
    %165 = vector.load %arg3[%c11_60, %c128_61] : memref<16x512xf32, #tpu.memory_space<vmem>>, vector<1x128xf32>
    %166 = arith.addf %164, %165 : vector<1x128xf32>
    %c2_62 = arith.constant 2 : index
    %c0_63 = arith.constant 0 : index
    %167 = vector.load %arg5[%c2_62, %c0_63] : memref<8x128xf32, #tpu.memory_space<vmem>>, vector<1x128xf32>
    tpu.vector_store %arg5[%c2_62, %c0_63], %42 {strides = array<i32>} : memref<8x128xf32, #tpu.memory_space<vmem>>, vector<1x128xf32>,
    %c3_64 = arith.constant 3 : index
    %c0_65 = arith.constant 0 : index
    %168 = vector.load %arg5[%c3_64, %c0_65] : memref<8x128xf32, #tpu.memory_space<vmem>>, vector<1x128xf32>
    tpu.vector_store %arg5[%c3_64, %c0_65], %70 {strides = array<i32>} : memref<8x128xf32, #tpu.memory_space<vmem>>, vector<1x128xf32>,
    %c4_66 = arith.constant 4 : index
    %c0_67 = arith.constant 0 : index
    %169 = vector.load %arg5[%c4_66, %c0_67] : memref<8x128xf32, #tpu.memory_space<vmem>>, vector<1x128xf32>
    tpu.vector_store %arg5[%c4_66, %c0_67], %124 {strides = array<i32>} : memref<8x128xf32, #tpu.memory_space<vmem>>, vector<1x128xf32>,
    %c5_68 = arith.constant 5 : index
    %c0_69 = arith.constant 0 : index
    %170 = vector.load %arg5[%c5_68, %c0_69] : memref<8x128xf32, #tpu.memory_space<vmem>>, vector<1x128xf32>
    tpu.vector_store %arg5[%c5_68, %c0_69], %152 {strides = array<i32>} : memref<8x128xf32, #tpu.memory_space<vmem>>, vector<1x128xf32>,
    %c0_70 = arith.constant 0 : index
    %c0_71 = arith.constant 0 : index
    %c0_72 = arith.constant 0 : index
    %171 = vector.load %arg4[%c0_70, %c0_71, %c0_72] : memref<1x8x128xf32, #tpu.memory_space<vmem>>, vector<1x1x128xf32>
    %172 = vector.shape_cast %171 : vector<1x1x128xf32> to vector<1x128xf32>
    %173 = vector.shape_cast %84 : vector<1x128xf32> to vector<1x1x128xf32>
    tpu.vector_store %arg4[%c0_70, %c0_71, %c0_72], %173 {strides = array<i32>} : memref<1x8x128xf32, #tpu.memory_space<vmem>>, vector<1x1x128xf32>,
    %c0_73 = arith.constant 0 : index
    %c1_74 = arith.constant 1 : index
    %c0_75 = arith.constant 0 : index
    %174 = vector.load %arg4[%c0_73, %c1_74, %c0_75] : memref<1x8x128xf32, #tpu.memory_space<vmem>>, vector<1x1x128xf32>
    %175 = vector.shape_cast %174 : vector<1x1x128xf32> to vector<1x128xf32>
    %176 = vector.shape_cast %166 : vector<1x128xf32> to vector<1x1x128xf32>
    tpu.vector_store %arg4[%c0_73, %c1_74, %c0_75], %176 {strides = array<i32>} : memref<1x8x128xf32, #tpu.memory_space<vmem>>, vector<1x1x128xf32>,
    %c0_76 = arith.constant 0 : index
    %c2_77 = arith.constant 2 : index
    %c0_78 = arith.constant 0 : index
    %177 = vector.load %arg4[%c0_76, %c2_77, %c0_78] : memref<1x8x128xf32, #tpu.memory_space<vmem>>, vector<1x1x128xf32>
    %178 = vector.shape_cast %177 : vector<1x1x128xf32> to vector<1x128xf32>
    %179 = vector.shape_cast %42 : vector<1x128xf32> to vector<1x1x128xf32>
    tpu.vector_store %arg4[%c0_76, %c2_77, %c0_78], %179 {strides = array<i32>} : memref<1x8x128xf32, #tpu.memory_space<vmem>>, vector<1x1x128xf32>,
    %c0_79 = arith.constant 0 : index
    %c3_80 = arith.constant 3 : index
    %c0_81 = arith.constant 0 : index
    %180 = vector.load %arg4[%c0_79, %c3_80, %c0_81] : memref<1x8x128xf32, #tpu.memory_space<vmem>>, vector<1x1x128xf32>
    %181 = vector.shape_cast %180 : vector<1x1x128xf32> to vector<1x128xf32>
    %182 = vector.shape_cast %70 : vector<1x128xf32> to vector<1x1x128xf32>
    tpu.vector_store %arg4[%c0_79, %c3_80, %c0_81], %182 {strides = array<i32>} : memref<1x8x128xf32, #tpu.memory_space<vmem>>, vector<1x1x128xf32>,
    %c0_82 = arith.constant 0 : index
    %c4_83 = arith.constant 4 : index
    %c0_84 = arith.constant 0 : index
    %183 = vector.load %arg4[%c0_82, %c4_83, %c0_84] : memref<1x8x128xf32, #tpu.memory_space<vmem>>, vector<1x1x128xf32>
    %184 = vector.shape_cast %183 : vector<1x1x128xf32> to vector<1x128xf32>
    %185 = vector.shape_cast %124 : vector<1x128xf32> to vector<1x1x128xf32>
    tpu.vector_store %arg4[%c0_82, %c4_83, %c0_84], %185 {strides = array<i32>} : memref<1x8x128xf32, #tpu.memory_space<vmem>>, vector<1x1x128xf32>,
    %c0_85 = arith.constant 0 : index
    %c5_86 = arith.constant 5 : index
    %c0_87 = arith.constant 0 : index
    %186 = vector.load %arg4[%c0_85, %c5_86, %c0_87] : memref<1x8x128xf32, #tpu.memory_space<vmem>>, vector<1x1x128xf32>
    %187 = vector.shape_cast %186 : vector<1x1x128xf32> to vector<1x128xf32>
    %188 = vector.shape_cast %152 : vector<1x128xf32> to vector<1x1x128xf32>
    tpu.vector_store %arg4[%c0_85, %c5_86, %c0_87], %188 {strides = array<i32>} : memref<1x8x128xf32, #tpu.memory_space<vmem>>, vector<1x1x128xf32>,
    %cst_88 = arith.constant 0.000000e+00 : f32
    %189 = vector.broadcast %cst_88 : f32 to vector<2x128xf32>
    %c0_89 = arith.constant 0 : index
    %c6 = arith.constant 6 : index
    %c0_90 = arith.constant 0 : index
    %190 = vector.load %arg4[%c0_89, %c6, %c0_90] : memref<1x8x128xf32, #tpu.memory_space<vmem>>, vector<1x2x128xf32>
    %191 = vector.shape_cast %190 : vector<1x2x128xf32> to vector<2x128xf32>
    %192 = vector.shape_cast %189 : vector<2x128xf32> to vector<1x2x128xf32>
    tpu.vector_store %arg4[%c0_89, %c6, %c0_90], %192 {strides = array<i32>} : memref<1x8x128xf32, #tpu.memory_space<vmem>>, vector<1x2x128xf32>,
    return
  }
  func.func @transform_0(%arg0: i32) -> (i32, i32, i32) {
    %c0_i32 = arith.constant 0 : i32
    %c0_i32_0 = arith.constant 0 : i32
    %c0_i32_1 = arith.constant 0 : i32
    return %arg0, %c0_i32, %c0_i32_0 : i32, i32, i32
  }
  func.func @transform_1(%arg0: i32) -> (i32, i32) {
    %c0_i32 = arith.constant 0 : i32
    %c0_i32_0 = arith.constant 0 : i32
    %c0_i32_1 = arith.constant 0 : i32
    return %c0_i32, %c0_i32_0 : i32, i32
  }
  func.func @transform_2(%arg0: i32) -> (i32, i32) {
    %c0_i32 = arith.constant 0 : i32
    %c0_i32_0 = arith.constant 0 : i32
    %c0_i32_1 = arith.constant 0 : i32
    return %c0_i32, %c0_i32_0 : i32, i32
  }
  func.func @transform_3(%arg0: i32) -> (i32, i32, i32) {
    %c0_i32 = arith.constant 0 : i32
    %c0_i32_0 = arith.constant 0 : i32
    %c0_i32_1 = arith.constant 0 : i32
    return %arg0, %c0_i32, %c0_i32_0 : i32, i32, i32
  }
}

</mosaic_0001>

<bundles_post_ra>
// kernel: squeeze.5
= control target key start
LH: loop header
LB: loop body
LE: loop exit
PB: predicated region body
PF: predicated region fallthrough
CT: control target
= control target key end

     0   :  { %s85_s0 = inlined_call_operand.vmem [shape: f32[4], index: 0, kind: input, shape index: {}]   ;;  %s86_s1 = inlined_call_operand.hbm [shape: f32[1,2,2], index: 1, kind: output, shape index: {}]  }
   0x1   :  { %v5_v0 = vld [vmem:[%s85_s0] sm:$0x1] }
   0x2   :  { %2 = vsyncpa [#allocation1], 0  ;;  %6 = vst [vmem:[#allocation3] sm:$0x1] %v5_v0  ;;  %vm8_vm0 = vcmask 15360   ;;  %s58_s0 = smov 126  }
   0x3   :  { %s59_s8 = smov [#allocation0]  }
   0x4   :  { %s26_s9 = sshll.u32 %s59_s8, 4  ;;  %s27_s9 = int_to_ptr.vmem [resolvable:$true] %s26_s9 }
   0x5   :  { %s34_s10 = scalar_lea.vmem %s27_s9, 32  ;;  %p39_p1 = scmp.lt.s32.totalorder %s27_s9, %s27_s9 }
   0x6   :  { %p35_p0 = scmp.ne.s32.totalorder %s27_s9, %s34_s10  ;;  %p40_p2 = scmp.lt.s32.totalorder %s34_s10, %s34_s10 }
   0x8   :  { %p41_p3 = por %p40_p2, %p39_p1 }
   0x9   :  { %v10_v1 = vld [vmem:[#allocation3] sm:$0x1]  }
   0xa   :  { %v7_v2 = vld [vmem:[#allocation3] sm:$0x1]   ;;  %11 = vrot.lane.b32.xlu0 %v10_v1, %s58_s0  ;;  %p42_p4 = pnand %p41_p3, %p35_p0 }
   0xb   :  { %9 = vst.msk [vmem:[#allocation2] sm:$0x1] %vm8_vm0, %v7_v2  }
  0x7c   :  { %v12_v3 = vpop.permute.xlu0 %11  }
  0x7d   :  { %15 = vst.msk [vmem:[#allocation2 + $0x1] sm:$0x1] %vm8_vm0, %v12_v3  }
  0x84   :  { %v19_v4 = vld [vmem:[#allocation2] sm:$0x3] }
  0x85   :  { %21 = vst [vmem:[#allocation0] sm:$0x3] %v19_v4 }
  0x86   :  { %45 = shalt.err (!%p42_p4)
}
  0x87   :  { %s46_s13 = scalar_lea.hbm %s86_s1, 32 }
  0x88   :  { %p47_p5 = scmp.ne.s32.totalorder %s86_s1, %s46_s13  ;;  %p50_p6 = scmp.lt.u32.totalorder %s46_s13, %s86_s1 }
  0x8a   :  { %p52_p7 = pnand %p50_p6, %p47_p5 }
  0x8c   :  { %55 = shalt.err (!%p52_p7)
}
  0x8d   :  { %29 = dma.vmem_to_hbm [thread:$0]  %s27_s9, 32, %s86_s1, [#allocation1]  }
  0x8e   :  { %56 = dma.done.wait [#allocation1], 32  }
  0x8f   :  { %57 = vsyncadd [#allocation1], 4294967264 }
  0x90   :  { %31 = vsyncpa [#allocation1], 1 }

// kernel: squeeze.0
= control target key start
LH: loop header
LB: loop body
LE: loop exit
PB: predicated region body
PF: predicated region fallthrough
CT: control target
= control target key end

     0   :  { %s140_s0 = inlined_call_operand.vmem [shape: f32[25], index: 0, kind: input, shape index: {}]   ;;  %s141_s1 = inlined_call_operand.hbm [shape: f32[1,5,5], index: 1, kind: output, shape index: {}]  }
   0x1   :  { %v5_v0 = vld [vmem:[%s140_s0] sm:$0x1] }
   0x2   :  { %6 = vst [vmem:[#allocation3] sm:$0x1] %v5_v0 }
   0x3   :  { %2 = vsyncpa [#allocation1], 0  ;;  %s105_s0 = smov 113   ;;  %s106_s8 = smov 123   ;;  %vm8_vm0 = vcmask 39936  }
   0x4   :  { %s107_s9 = smov 108   ;;  %s108_s10 = smov 118  }
   0x5   :  { %s109_s11 = smov [#allocation0]  }
   0x6   :  { %s67_s12 = sshll.u32 %s109_s11, 4  ;;  %s68_s12 = int_to_ptr.vmem [resolvable:$true] %s67_s12 }
   0x7   :  { %s81_s13 = scalar_lea.vmem %s68_s12, 80  ;;  %s85_s14 = scalar_lea.vmem %s68_s12, 96 }
   0x8   :  { %p82_p0 = scmp.ne.s32.totalorder %s68_s12, %s81_s13  ;;  %p86_p1 = scmp.lt.s32.totalorder %s68_s12, %s68_s12 }
   0x9   :  { %v22_v1 = vld [vmem:[#allocation3] sm:$0x1]   ;;  %p87_p2 = scmp.lt.s32.totalorder %s85_s14, %s81_s13 }
   0xa   :  { %v10_v2 = vld [vmem:[#allocation3] sm:$0x1]   ;;  %23 = vrot.lane.b32.xlu1 %v22_v1, %s105_s0 }
   0xb   :  { %11 = vrot.lane.b32.xlu0 %v10_v2, %s106_s8  ;;  %v7_v3 = vld [vmem:[#allocation3] sm:$0x1]   ;;  %p88_p3 = por %p87_p2, %p86_p1 }
   0xc   :  { %v28_v4 = vld [vmem:[#allocation3] sm:$0x1]   ;;  %9 = vst.msk [vmem:[#allocation2] sm:$0x1] %vm8_vm0, %v7_v3  }
   0xd   :  { %v16_v5 = vld [vmem:[#allocation3] sm:$0x1]   ;;  %p89_p4 = pnand %p88_p3, %p82_p0 }
   0xe   :  { %29 = vrot.lane.b32.xlu1 %v28_v4, %s107_s9 }
   0xf   :  { %17 = vrot.lane.b32.xlu0 %v16_v5, %s108_s10 }
  0x13   :  { %v37_v6 = vld [vmem:[#allocation2] sm:$0x1] }
  0x14   :  { %39 = vst [vmem:[#allocation0] sm:$0x1] %v37_v6 }
  0x7c   :  { %v24_v7 = vpop.permute.xlu1 %23  }
  0x7d   :  { %v12_v8 = vpop.permute.xlu0 %11   ;;  %27 = vst.msk [vmem:[#allocation2 + $0x18] sm:$0x1] %vm8_vm0, %v24_v7  }
  0x7e   :  { %15 = vst.msk [vmem:[#allocation2 + $0x8] sm:$0x1] %vm8_vm0, %v12_v8  }
  0x80   :  { %v30_v9 = vpop.permute.xlu1 %29  }
  0x81   :  { %v18_v10 = vpop.permute.xlu0 %17   ;;  %33 = vst.msk [vmem:[#allocation2 + $0x20] sm:$0x1] %vm8_vm0, %v30_v9  }
  0x82   :  { %21 = vst.msk [vmem:[#allocation2 + $0x10] sm:$0x1] %vm8_vm0, %v18_v10  }
  0x84   :  { %v52_v11 = vld [vmem:[#allocation2 + $0x18] sm:$0x1] }
  0x85   :  { %v41_v12 = vld [vmem:[#allocation2 + $0x8] sm:$0x1]  ;;  %56 = vst [vmem:[#allocation0 + $0x3] sm:$0x1] %v52_v11 }
  0x86   :  { %44 = vst [vmem:[#allocation0 + $0x1] sm:$0x1] %v41_v12 }
  0x88   :  { %v58_v13 = vld [vmem:[#allocation2 + $0x20] sm:$0x1] }
  0x89   :  { %v46_v14 = vld [vmem:[#allocation2 + $0x10] sm:$0x1]  ;;  %62 = vst [vmem:[#allocation0 + $0x4] sm:$0x1] %v58_v13 }
  0x8a   :  { %50 = vst [vmem:[#allocation0 + $0x2] sm:$0x1] %v46_v14 }
  0x8b   :  { %92 = shalt.err (!%p89_p4)
}
  0x8c   :  { %s93_s17 = scalar_lea.hbm %s141_s1, 80 }
  0x8d   :  { %p94_p5 = scmp.ne.s32.totalorder %s141_s1, %s93_s17  ;;  %p97_p6 = scmp.lt.u32.totalorder %s93_s17, %s141_s1 }
  0x8f   :  { %p99_p7 = pnand %p97_p6, %p94_p5 }
  0x91   :  { %102 = shalt.err (!%p99_p7)
}
  0x92   :  { %70 = dma.vmem_to_hbm [thread:$0]  %s68_s12, 80, %s141_s1, [#allocation1]  }
  0x93   :  { %103 = dma.done.wait [#allocation1], 80  }
  0x94   :  { %104 = vsyncadd [#allocation1], 4294967216 }
  0x95   :  { %72 = vsyncpa [#allocation1], 1 }

// kernel: skalman_forward_seq.1
= control target key start
LH: loop header
LB: loop body
LE: loop exit
PB: predicated region body
PF: predicated region fallthrough
CT: control target
= control target key end

     0   :  { %8 = vsyncpa [#allocation4], 0  ;;  %s5853_s0 = inlined_call_operand.vmem [shape: f32[1,8,128], index: 0, kind: input, shape index: {}]   ;;  %s5854_s1 = inlined_call_operand.hbm [shape: bf16[2112,512], index: 1, kind: input, shape index: {}]   ;;  %s5855_s2 = inlined_call_operand.hbm [shape: f32[16,512], index: 2, kind: input, shape index: {}]   ;;  %s5856_s3 = inlined_call_operand.vmem [shape: f32[1,8,128], index: 3, kind: output, shape index: {}]  }
   0x1   :  { %9 = vsyncpa [#allocation6], 0  ;;  %s5651_s12 = smov [#allocation3]   ;;  %s5603_s16 = scalar_lea.hbm %s5854_s1, 67584 }
   0x2   :  { %s17_s13 = sshll.u32 %s5651_s12, 4  ;;  %p5604_p0 = scmp.ne.s32.totalorder %s5854_s1, %s5603_s16  ;;  %s18_s13 = int_to_ptr.vmem [resolvable:$true] %s17_s13 }
   0x3   :  { %p5607_p1 = scmp.lt.u32.totalorder %s5603_s16, %s5854_s1 }
   0x5   :  { %p5609_p2 = pnand %p5607_p1, %p5604_p0 }
   0x7   :  { %5612 = shalt.err (!%p5609_p2)
}
   0x8   :  { %s5613_s21 = scalar_lea.vmem %s18_s13, 67584  ;;  %p5618_p4 = scmp.lt.s32.totalorder %s18_s13, %s18_s13 }
   0x9   :  { %p5614_p3 = scmp.ne.s32.totalorder %s18_s13, %s5613_s21  ;;  %p5619_p5 = scmp.lt.s32.totalorder %s5613_s21, %s5613_s21 }
   0xb   :  { %p5620_p6 = por %p5619_p5, %p5618_p4 }
   0xd   :  { %p5621_p7 = pnand %p5620_p6, %p5614_p3 }
   0xf   :  { %5624 = shalt.err (!%p5621_p7)
}
  0x10   :  { %s5652_s22 = smov 256   ;;  %s5653_s23 = smov 16  }
  0x11   :  { %23 = dma.hbm_to_vmem [thread:$0]  %s5854_s1, 67584, %s18_s13, [#allocation4], %s5652_s22, %s5652_s22, %s5653_s23  }
  0x12   :  { %s5654_s26 = smov [#allocation5]   ;;  %s5625_s30 = scalar_lea.hbm %s5855_s2, 1024 }
  0x13   :  { %s29_s27 = sshll.u32 %s5654_s26, 4  ;;  %p5626_p8 = scmp.ne.s32.totalorder %s5855_s2, %s5625_s30  ;;  %s30_s27 = int_to_ptr.vmem [resolvable:$true] %s29_s27 }
  0x14   :  { %p5629_p9 = scmp.lt.u32.totalorder %s5625_s30, %s5855_s2 }
  0x16   :  { %p5631_p10 = pnand %p5629_p9, %p5626_p8 }
  0x18   :  { %5634 = shalt.err (!%p5631_p10)
}
  0x19   :  { %s5635_s8 = scalar_lea.vmem %s30_s27, 1024  ;;  %p5640_p12 = scmp.lt.s32.totalorder %s30_s27, %s30_s27 }
  0x1a   :  { %p5636_p11 = scmp.ne.s32.totalorder %s30_s27, %s5635_s8  ;;  %p5641_p13 = scmp.lt.s32.totalorder %s5635_s8, %s5635_s8 }
  0x1c   :  { %p5642_p0 = por %p5641_p13, %p5640_p12 }
  0x1e   :  { %p5643_p1 = pnand %p5642_p0, %p5636_p11 }
  0x20   :  { %5646 = shalt.err (!%p5643_p1)
}
  0x21   :  { %s5655_s1 = smov 512   ;;  %s5656_s9 = smov 32  }
  0x22   :  { %35 = dma.hbm_to_vmem [thread:$0]  %s5855_s2, 1024, %s30_s27, [#allocation6], %s5655_s1, %s5655_s1, %s5656_s9  }
  0x23   :  { %5647 = dma.done.wait [#allocation4], 67584  }
  0x24   :  { %5648 = vsyncadd [#allocation4], 4294899712 }
  0x25   :  { %5649 = dma.done.wait [#allocation6], 1024  }
  0x26   :  { %5650 = vsyncadd [#allocation6], 4294966272  ;;  %v5657_v0 = vmov 0   ;;  %v4849_v1 = vld [vmem:[#allocation3 + $0x4] ss:$16 sps:$4 sm:$0xff]   ;;  %vm123_vm0 = vcmask 261120  }
  0x27   :  { %159 = vmatprep.mubr.bf16.mxu0 %v5657_v0  ;;  %200 = vmatprep.mubr.bf16.mxu1 %v5657_v0  ;;  %v4851_v2 = vld [vmem:[#allocation3] ss:$16 sps:$4 sm:$0xff]   ;;  %v4852_v3 = vld [vmem:[#allocation3 + $0x24] ss:$16 sps:$4 sm:$0xff]   ;;  %v49_v5 = vld [vmem:[%s5853_s0] sm:$0x1] }
  0x28   :  { %127 = vmatprep.subr.bf16.mxu0 %v4849_v1  ;;  %v4854_v4 = vld [vmem:[#allocation3 + $0x20] ss:$16 sps:$4 sm:$0xff]   ;;  %v4855_v6 = vld [vmem:[#allocation3 + $0xc] ss:$16 sps:$4 sm:$0xff]   ;;  %v4857_v7 = vld [vmem:[#allocation3 + $0x8] ss:$16 sps:$4 sm:$0xff]   ;;  %v60_v9 = vpack.c.bf16 %v49_v5, %v49_v5 }
  0x29   :  { %128 = vmatpush1.bf16.msra.mxu0 %v4851_v2  ;;  %168 = vmatprep.subr.bf16.mxu1 %v4855_v6  ;;  %v4858_v8 = vld [vmem:[#allocation3 + $0x2c] ss:$16 sps:$4 sm:$0xff]   ;;  %v4860_v10 = vld [vmem:[#allocation3 + $0x28] ss:$16 sps:$4 sm:$0xff]   ;;  %v4863_v11 = vld [vmem:[#allocation3 + $0x44] ss:$16 sps:$4 sm:$0xff]  }
  0x2a   :  { %129 = vmatprep.subr.bf16.mxu0 %v4852_v3  ;;  %169 = vmatpush1.bf16.msra.mxu1 %v4857_v7  ;;  %v4861_v12 = vld [vmem:[#allocation3 + $0x40] ss:$16 sps:$4 sm:$0xff]   ;;  %v4866_v13 = vld [vmem:[#allocation3 + $0x4c] ss:$16 sps:$4 sm:$0xff]   ;;  %v4869_v14 = vld [vmem:[#allocation3 + $0x64] ss:$16 sps:$4 sm:$0xff]  }
  0x2b   :  { %170 = vmatprep.subr.bf16.mxu1 %v4858_v8  ;;  %v4864_v15 = vld [vmem:[#allocation3 + $0x48] ss:$16 sps:$4 sm:$0xff]   ;;  %v4867_v16 = vld [vmem:[#allocation3 + $0x60] ss:$16 sps:$4 sm:$0xff]   ;;  %v4872_v17 = vld [vmem:[#allocation3 + $0x6c] ss:$16 sps:$4 sm:$0xff]  }
  0x2c   :  { %v4875_v18 = vld [vmem:[#allocation3 + $0x84] ss:$16 sps:$4 sm:$0xff]   ;;  %v4870_v19 = vld [vmem:[#allocation3 + $0x68] ss:$16 sps:$4 sm:$0xff]   ;;  %v4873_v20 = vld [vmem:[#allocation3 + $0x80] ss:$16 sps:$4 sm:$0xff]  }
  0x2d   :  { %130 = vmatpush1.bf16.msra.mxu0 %v4854_v4  ;;  %v4878_v21 = vld [vmem:[#allocation3 + $0x8c] ss:$16 sps:$4 sm:$0xff]   ;;  %v4881_v22 = vld [vmem:[#allocation3 + $0xa4] ss:$16 sps:$4 sm:$0xff]   ;;  %v4876_v23 = vld [vmem:[#allocation3 + $0x88] ss:$16 sps:$4 sm:$0xff]  }
  0x2e   :  { %1201 = vmatprep.subr.bf16.mxu0 %v4863_v11  ;;  %171 = vmatpush1.bf16.msra.mxu1 %v4860_v10  ;;  %v4879_v24 = vld [vmem:[#allocation3 + $0xa0] ss:$16 sps:$4 sm:$0xff]   ;;  %v4884_v25 = vld [vmem:[#allocation3 + $0xac] ss:$16 sps:$4 sm:$0xff]   ;;  %v4887_v26 = vld [vmem:[#allocation3 + $0xc4] ss:$16 sps:$4 sm:$0xff]  }
  0x2f   :  { %1324 = vmatprep.subr.bf16.mxu1 %v4866_v13  ;;  %v4882_v27 = vld [vmem:[#allocation3 + $0xa8] ss:$16 sps:$4 sm:$0xff]   ;;  %v4885_v28 = vld [vmem:[#allocation3 + $0xc0] ss:$16 sps:$4 sm:$0xff]   ;;  %v4890_v29 = vld [vmem:[#allocation3 + $0xcc] ss:$16 sps:$4 sm:$0xff]  }
  0x30   :  { %4256 = vmatmul.mubr.msk.bf16.vlgmr.msra.gmra.mrb[0].mxu0 %vm123_vm0, %v60_v9  ;;  %v4893_v30 = vld [vmem:[#allocation3 + $0xe4] ss:$16 sps:$4 sm:$0xff]   ;;  %v4888_v31 = vld [vmem:[#allocation3 + $0xc8] ss:$16 sps:$4 sm:$0xff]   ;;  %v4891_v32 = vld [vmem:[#allocation3 + $0xe0] ss:$16 sps:$4 sm:$0xff]  }
  0x31   :  { %1202 = vmatpush1.bf16.msra.mxu0 %v4861_v12  ;;  %4257 = vmatmul.mubr.msk.bf16.vlgmr.msra.gmra.mrb[0].mxu1 %vm123_vm0, %v60_v9  ;;  %v4896_v33 = vld [vmem:[#allocation3 + $0xec] ss:$16 sps:$4 sm:$0xff]   ;;  %v4899_v34 = vld [vmem:[#allocation3 + $0x104] ss:$16 sps:$4 sm:$0xff]   ;;  %v4894_v35 = vld [vmem:[#allocation3 + $0xe8] ss:$16 sps:$4 sm:$0xff]  }
  0x32   :  { %1203 = vmatprep.subr.bf16.mxu0 %v4869_v14  ;;  %1325 = vmatpush1.bf16.msra.mxu1 %v4864_v15  ;;  %v4897_v36 = vld [vmem:[#allocation3 + $0x100] ss:$16 sps:$4 sm:$0xff]   ;;  %v4902_v37 = vld [vmem:[#allocation3 + $0x10c] ss:$16 sps:$4 sm:$0xff]   ;;  %v4905_v38 = vld [vmem:[#allocation3 + $0x124] ss:$16 sps:$4 sm:$0xff]   ;;  %v103_v15 = vlaneseq }
  0x33   :  { %1326 = vmatprep.subr.bf16.mxu1 %v4872_v17  ;;  %v4900_v39 = vld [vmem:[#allocation3 + $0x108] ss:$16 sps:$4 sm:$0xff]   ;;  %v4903_v40 = vld [vmem:[#allocation3 + $0x120] ss:$16 sps:$4 sm:$0xff]   ;;  %v4908_v41 = vld [vmem:[#allocation3 + $0x12c] ss:$16 sps:$4 sm:$0xff]  }
  0x34   :  { %v4911_v42 = vld [vmem:[#allocation3 + $0x144] ss:$16 sps:$4 sm:$0xff]   ;;  %v4906_v43 = vld [vmem:[#allocation3 + $0x128] ss:$16 sps:$4 sm:$0xff]   ;;  %v4909_v44 = vld [vmem:[#allocation3 + $0x140] ss:$16 sps:$4 sm:$0xff]  }
  0x35   :  { %1204 = vmatpush1.bf16.msra.mxu0 %v4867_v16  ;;  %v4914_v45 = vld [vmem:[#allocation3 + $0x14c] ss:$16 sps:$4 sm:$0xff]   ;;  %v4917_v46 = vld [vmem:[#allocation3 + $0x164] ss:$16 sps:$4 sm:$0xff]   ;;  %v4912_v47 = vld [vmem:[#allocation3 + $0x148] ss:$16 sps:$4 sm:$0xff]  }
  0x36   :  { %1205 = vmatprep.subr.bf16.mxu0 %v4875_v18  ;;  %1327 = vmatpush1.bf16.msra.mxu1 %v4870_v19  ;;  %v4915_v48 = vld [vmem:[#allocation3 + $0x160] ss:$16 sps:$4 sm:$0xff]   ;;  %v4920_v49 = vld [vmem:[#allocation3 + $0x16c] ss:$16 sps:$4 sm:$0xff]   ;;  %v4923_v50 = vld [vmem:[#allocation3 + $0x184] ss:$16 sps:$4 sm:$0xff]  }
  0x37   :  { %1328 = vmatprep.subr.bf16.mxu1 %v4878_v21  ;;  %v4918_v51 = vld [vmem:[#allocation3 + $0x168] ss:$16 sps:$4 sm:$0xff]   ;;  %v4921_v52 = vld [vmem:[#allocation3 + $0x180] ss:$16 sps:$4 sm:$0xff]   ;;  %v4926_v53 = vld [vmem:[#allocation3 + $0x18c] ss:$16 sps:$4 sm:$0xff]  }
  0x38   :  { %v4929_v54 = vld [vmem:[#allocation3 + $0x1a4] ss:$16 sps:$4 sm:$0xff]   ;;  %v4924_v55 = vld [vmem:[#allocation3 + $0x188] ss:$16 sps:$4 sm:$0xff]   ;;  %v4927_v56 = vld [vmem:[#allocation3 + $0x1a0] ss:$16 sps:$4 sm:$0xff]  }
  0x39   :  { %1206 = vmatpush1.bf16.msra.mxu0 %v4873_v20  ;;  %v4932_v57 = vld [vmem:[#allocation3 + $0x1ac] ss:$16 sps:$4 sm:$0xff]   ;;  %v4935_v58 = vld [vmem:[#allocation3 + $0x1c4] ss:$16 sps:$4 sm:$0xff]   ;;  %v4930_v59 = vld [vmem:[#allocation3 + $0x1a8] ss:$16 sps:$4 sm:$0xff]  }
  0x3a   :  { %1207 = vmatprep.subr.bf16.mxu0 %v4881_v22  ;;  %1329 = vmatpush1.bf16.msra.mxu1 %v4876_v23  ;;  %v4933_v60 = vld [vmem:[#allocation3 + $0x1c0] ss:$16 sps:$4 sm:$0xff]   ;;  %v4938_v61 = vld [vmem:[#allocation3 + $0x1cc] ss:$16 sps:$4 sm:$0xff]   ;;  %v4941_v62 = vld [vmem:[#allocation3 + $0x1e4] ss:$16 sps:$4 sm:$0xff]  }
  0x3b   :  { %1330 = vmatprep.subr.bf16.mxu1 %v4884_v25  ;;  %v4936_v63 = vld [vmem:[#allocation3 + $0x1c8] ss:$16 sps:$4 sm:$0xff]   ;;  %v4939_v1 = vld [vmem:[#allocation3 + $0x1e0] ss:$16 sps:$4 sm:$0xff]   ;;  %v4944_v2 = vld [vmem:[#allocation3 + $0x1ec] ss:$16 sps:$4 sm:$0xff]  }
  0x3c   :  { %v4942_v3 = vld [vmem:[#allocation3 + $0x1e8] ss:$16 sps:$4 sm:$0xff]   ;;  %v4947_v4 = vld [vmem:[#allocation3 + $0x204] ss:$16 sps:$4 sm:$0xff]   ;;  %v4950_v5 = vld [vmem:[#allocation3 + $0x20c] ss:$16 sps:$4 sm:$0xff]  }
  0x3d   :  { %1208 = vmatpush1.bf16.msra.mxu0 %v4879_v24  ;;  %v4945_v6 = vld [vmem:[#allocation3 + $0x200] ss:$16 sps:$4 sm:$0xff]   ;;  %v4948_v7 = vld [vmem:[#allocation3 + $0x208] ss:$16 sps:$4 sm:$0xff]   ;;  %v4953_v8 = vld [vmem:[#allocation3 + $0x224] ss:$16 sps:$4 sm:$0xff]  }
  0x3e   :  { %1209 = vmatprep.subr.bf16.mxu0 %v4887_v26  ;;  %1331 = vmatpush1.bf16.msra.mxu1 %v4882_v27  ;;  %v4956_v9 = vld [vmem:[#allocation3 + $0x22c] ss:$16 sps:$4 sm:$0xff]   ;;  %v4951_v10 = vld [vmem:[#allocation3 + $0x220] ss:$16 sps:$4 sm:$0xff]   ;;  %v4954_v11 = vld [vmem:[#allocation3 + $0x228] ss:$16 sps:$4 sm:$0xff]  }
  0x3f   :  { %1332 = vmatprep.subr.bf16.mxu1 %v4890_v29  ;;  %v4959_v12 = vld [vmem:[#allocation3 + $0x244] ss:$16 sps:$4 sm:$0xff]   ;;  %v4962_v13 = vld [vmem:[#allocation3 + $0x24c] ss:$16 sps:$4 sm:$0xff]   ;;  %v5714_v16 = vshrl.u32 %v103_v15, 7  ;;  %vm5659_vm1 = vmmov 0  }
  0x40   :  { %v47_v14 = vld [vmem:[%s5853_s0] sm:$0xff]  ;;  %vm2026_vm2 = vcmask 785408   ;;  %vm2097_vm3 = vcmask 392192  }
  0x41   :  { %1210 = vmatpush1.bf16.msra.mxu0 %v4885_v28  ;;  %48 = vst [vmem:[#allocation2] sm:$0xff] %v47_v14  ;;  %v5716_v17 = vld [vmem:[#allocation5] ss:$8 sm:$0xf]  ;;  %v5719_v18 = vsub.s32 0, %v5714_v16  ;;  %v5722_v19 = vsub.s32 1, %v5714_v16 }
  0x42   :  { %1211 = vmatprep.subr.bf16.mxu0 %v4893_v30  ;;  %1333 = vmatpush1.bf16.msra.mxu1 %v4888_v31  ;;  %v5727_v21 = vsub.s32 3, %v5714_v16  ;;  %v5011_v14 = vld [vmem:[#allocation3 + $0x360] ss:$16 sps:$4 sm:$0xff]   ;;  %v5014_v15 = vld [vmem:[#allocation3 + $0x368] ss:$16 sps:$4 sm:$0xff]  }
  0x43   :  { %1334 = vmatprep.subr.bf16.mxu1 %v4896_v33  ;;  %v106_v20 = vrot.slane %v5716_v17, %v5719_v18  ;;  %v110_v22 = vrot.slane %v5716_v17, %v5722_v19 }
  0x44   :  { %v118_v26 = vrot.slane %v5716_v17, %v5727_v21 }
  0x45   :  { %1212 = vmatpush1.bf16.msra.mxu0 %v4891_v32 }
  0x46   :  { %1213 = vmatprep.subr.bf16.mxu0 %v4899_v34  ;;  %1335 = vmatpush1.bf16.msra.mxu1 %v4894_v35 }
  0x47   :  { %1336 = vmatprep.subr.bf16.mxu1 %v4902_v37  ;;  %v4957_v37 = vld [vmem:[#allocation3 + $0x240] ss:$16 sps:$4 sm:$0xff]  }
  0x49   :  { %1214 = vmatpush1.bf16.msra.mxu0 %v4897_v36 }
  0x4a   :  { %1215 = vmatprep.subr.bf16.mxu0 %v4905_v38  ;;  %1337 = vmatpush1.bf16.msra.mxu1 %v4900_v39  ;;  %v4960_v38 = vld [vmem:[#allocation3 + $0x248] ss:$16 sps:$4 sm:$0xff]  }
  0x4b   :  { %1338 = vmatprep.subr.bf16.mxu1 %v4908_v41  ;;  %v4965_v41 = vld [vmem:[#allocation3 + $0x264] ss:$16 sps:$4 sm:$0xff]  }
  0x4d   :  { %1216 = vmatpush1.bf16.msra.mxu0 %v4903_v40 }
  0x4e   :  { %1217 = vmatprep.subr.bf16.mxu0 %v4911_v42  ;;  %1339 = vmatpush1.bf16.msra.mxu1 %v4906_v43  ;;  %v4968_v42 = vld [vmem:[#allocation3 + $0x26c] ss:$16 sps:$4 sm:$0xff]  }
  0x4f   :  { %1340 = vmatprep.subr.bf16.mxu1 %v4914_v45  ;;  %v4963_v45 = vld [vmem:[#allocation3 + $0x260] ss:$16 sps:$4 sm:$0xff]  }
  0x51   :  { %1218 = vmatpush1.bf16.msra.mxu0 %v4909_v44 }
  0x52   :  { %1219 = vmatprep.subr.bf16.mxu0 %v4917_v46  ;;  %1341 = vmatpush1.bf16.msra.mxu1 %v4912_v47  ;;  %v4966_v46 = vld [vmem:[#allocation3 + $0x268] ss:$16 sps:$4 sm:$0xff]   ;;  %v4971_v47 = vld [vmem:[#allocation3 + $0x284] ss:$16 sps:$4 sm:$0xff]  }
  0x53   :  { %1342 = vmatprep.subr.bf16.mxu1 %v4920_v49  ;;  %v4969_v49 = vld [vmem:[#allocation3 + $0x280] ss:$16 sps:$4 sm:$0xff]  }
  0x55   :  { %1220 = vmatpush1.bf16.msra.mxu0 %v4915_v48  ;;  %v4974_v48 = vld [vmem:[#allocation3 + $0x28c] ss:$16 sps:$4 sm:$0xff]  }
  0x56   :  { %1221 = vmatprep.subr.bf16.mxu0 %v4923_v50  ;;  %1343 = vmatpush1.bf16.msra.mxu1 %v4918_v51  ;;  %v4972_v50 = vld [vmem:[#allocation3 + $0x288] ss:$16 sps:$4 sm:$0xff]   ;;  %v4977_v51 = vld [vmem:[#allocation3 + $0x2a4] ss:$16 sps:$4 sm:$0xff]  }
  0x57   :  { %1344 = vmatprep.subr.bf16.mxu1 %v4926_v53  ;;  %v4975_v53 = vld [vmem:[#allocation3 + $0x2a0] ss:$16 sps:$4 sm:$0xff]  }
  0x59   :  { %1222 = vmatpush1.bf16.msra.mxu0 %v4921_v52  ;;  %v4980_v52 = vld [vmem:[#allocation3 + $0x2ac] ss:$16 sps:$4 sm:$0xff]  }
  0x5a   :  { %1223 = vmatprep.subr.bf16.mxu0 %v4929_v54  ;;  %1345 = vmatpush1.bf16.msra.mxu1 %v4924_v55  ;;  %v4978_v54 = vld [vmem:[#allocation3 + $0x2a8] ss:$16 sps:$4 sm:$0xff]   ;;  %v4983_v55 = vld [vmem:[#allocation3 + $0x2c4] ss:$16 sps:$4 sm:$0xff]  }
  0x5b   :  { %1346 = vmatprep.subr.bf16.mxu1 %v4932_v57  ;;  %v4981_v57 = vld [vmem:[#allocation3 + $0x2c0] ss:$16 sps:$4 sm:$0xff]  }
  0x5d   :  { %1224 = vmatpush1.bf16.msra.mxu0 %v4927_v56  ;;  %v4986_v56 = vld [vmem:[#allocation3 + $0x2cc] ss:$16 sps:$4 sm:$0xff]  }
  0x5e   :  { %1225 = vmatprep.subr.bf16.mxu0 %v4935_v58  ;;  %1347 = vmatpush1.bf16.msra.mxu1 %v4930_v59  ;;  %v4984_v58 = vld [vmem:[#allocation3 + $0x2c8] ss:$16 sps:$4 sm:$0xff]   ;;  %v4989_v59 = vld [vmem:[#allocation3 + $0x2e4] ss:$16 sps:$4 sm:$0xff]  }
  0x5f   :  { %1348 = vmatprep.subr.bf16.mxu1 %v4938_v61  ;;  %v4987_v61 = vld [vmem:[#allocation3 + $0x2e0] ss:$16 sps:$4 sm:$0xff]  }
  0x61   :  { %1226 = vmatpush1.bf16.msra.mxu0 %v4933_v60  ;;  %v4992_v60 = vld [vmem:[#allocation3 + $0x2ec] ss:$16 sps:$4 sm:$0xff]  }
  0x62   :  { %1227 = vmatprep.subr.bf16.mxu0 %v4941_v62  ;;  %1349 = vmatpush1.bf16.msra.mxu1 %v4936_v63  ;;  %v4990_v62 = vld [vmem:[#allocation3 + $0x2e8] ss:$16 sps:$4 sm:$0xff]   ;;  %v4995_v63 = vld [vmem:[#allocation3 + $0x304] ss:$16 sps:$4 sm:$0xff]  }
  0x63   :  { %1350 = vmatprep.subr.bf16.mxu1 %v4944_v2  ;;  %v4993_v2 = vld [vmem:[#allocation3 + $0x300] ss:$16 sps:$4 sm:$0xff]  }
  0x65   :  { %1228 = vmatpush1.bf16.msra.mxu0 %v4939_v1  ;;  %v4998_v1 = vld [vmem:[#allocation3 + $0x30c] ss:$16 sps:$4 sm:$0xff]  }
  0x66   :  { %1351 = vmatpush1.bf16.msra.mxu1 %v4942_v3  ;;  %1229 = vmatprep.subr.bf16.mxu0 %v4947_v4  ;;  %v4996_v3 = vld [vmem:[#allocation3 + $0x308] ss:$16 sps:$4 sm:$0xff]   ;;  %v5001_v4 = vld [vmem:[#allocation3 + $0x324] ss:$16 sps:$4 sm:$0xff]  }
  0x67   :  { %1352 = vmatprep.subr.bf16.mxu1 %v4950_v5  ;;  %v5004_v5 = vld [vmem:[#allocation3 + $0x32c] ss:$16 sps:$4 sm:$0xff]  }
  0x69   :  { %1230 = vmatpush1.bf16.msra.mxu0 %v4945_v6  ;;  %v4999_v6 = vld [vmem:[#allocation3 + $0x320] ss:$16 sps:$4 sm:$0xff]  }
  0x6a   :  { %1353 = vmatpush1.bf16.msra.mxu1 %v4948_v7  ;;  %1231 = vmatprep.subr.bf16.mxu0 %v4953_v8  ;;  %v5002_v7 = vld [vmem:[#allocation3 + $0x328] ss:$16 sps:$4 sm:$0xff]   ;;  %v5007_v8 = vld [vmem:[#allocation3 + $0x344] ss:$16 sps:$4 sm:$0xff]  }
  0x6b   :  { %1354 = vmatprep.subr.bf16.mxu1 %v4956_v9  ;;  %v5010_v9 = vld [vmem:[#allocation3 + $0x34c] ss:$16 sps:$4 sm:$0xff]  }
  0x6d   :  { %1232 = vmatpush1.bf16.msra.mxu0 %v4951_v10  ;;  %v5005_v10 = vld [vmem:[#allocation3 + $0x340] ss:$16 sps:$4 sm:$0xff]  }
  0x6e   :  { %1355 = vmatpush1.bf16.msra.mxu1 %v4954_v11  ;;  %1242 = vmatprep.subr.bf16.mxu0 %v4959_v12  ;;  %v5008_v11 = vld [vmem:[#allocation3 + $0x348] ss:$16 sps:$4 sm:$0xff]   ;;  %v5013_v12 = vld [vmem:[#allocation3 + $0x364] ss:$16 sps:$4 sm:$0xff]  }
  0x6f   :  { %1365 = vmatprep.subr.bf16.mxu1 %v4962_v13  ;;  %v5016_v13 = vld [vmem:[#allocation3 + $0x36c] ss:$16 sps:$4 sm:$0xff]  }
 0x103   :  { %v161_v23 = vpop.f32.mrb[0].mxu0 }
 0x104   :  { %v162_v24 = vadd.f32 %v161_v23, %v106_v20  ;;  %v163_v25 = vpop.f32.mrb[1].mxu0  ;;  %v5733_v31 = vpop.f32.mrb[0].mxu1  ;;  %v5019_v20 = vld [vmem:[#allocation3 + $0x384] ss:$16 sps:$4 sm:$0xff]   ;;  %v5017_v23 = vld [vmem:[#allocation3 + $0x380] ss:$16 sps:$4 sm:$0xff]  }
 0x105   :  { %v164_v27 = vadd.f32 %v163_v25, %v110_v22  ;;  %v165_v28 = vpop.f32.mrb[2].mxu0  ;;  %v204_v33 = vpop.f32.mrb[1].mxu1  ;;  %v5022_v22 = vld [vmem:[#allocation3 + $0x38c] ss:$16 sps:$4 sm:$0xff]   ;;  %v5025_v25 = vld [vmem:[#allocation3 + $0x3a4] ss:$16 sps:$4 sm:$0xff]  }
 0x106   :  { %v209_v29 = vmax.f32 %v162_v24, 0.0  ;;  %v166_v30 = vpop.f32.mrb[3].mxu0  ;;  %v205_v34 = vadd.f32 %v204_v33, %v118_v26  ;;  %v206_v35 = vpop.f32.mrb[2].mxu1  ;;  %v5020_v24 = vld [vmem:[#allocation3 + $0x388] ss:$16 sps:$4 sm:$0xff]  }
 0x107   :  { %v210_v32 = vmax.f32 %v164_v27, 0.0  ;;  %v207_v39 = vpop.f32.mrb[3].mxu1  ;;  %v5028_v26 = vld [vmem:[#allocation3 + $0x3ac] ss:$16 sps:$4 sm:$0xff]   ;;  %v5023_v27 = vld [vmem:[#allocation3 + $0x3a0] ss:$16 sps:$4 sm:$0xff]  }
 0x108   :  { %v373_v40 = vpack.c.bf16 %v209_v29, %v209_v29  ;;  %v212_v43 = vmax.f32 %v205_v34, 0.0  ;;  %v5026_v28 = vld [vmem:[#allocation3 + $0x3a8] ss:$16 sps:$4 sm:$0xff]   ;;  %v5031_v29 = vld [vmem:[#allocation3 + $0x3c4] ss:$16 sps:$4 sm:$0xff]  }
 0x109   :  { %v374_v36 = vpack.c.bf16 %v210_v32, %v210_v32  ;;  %v5034_v30 = vld [vmem:[#allocation3 + $0x3cc] ss:$16 sps:$4 sm:$0xff]   ;;  %v5736_v32 = vsub.s32 2, %v5714_v16  ;;  %v5029_v33 = vld [vmem:[#allocation3 + $0x3c0] ss:$16 sps:$4 sm:$0xff]  }
 0x10a   :  { %v376_v44 = vpack.c.bf16 %v212_v43, %v212_v43  ;;  %v5032_v34 = vld [vmem:[#allocation3 + $0x3c8] ss:$16 sps:$4 sm:$0xff]   ;;  %v5037_v35 = vld [vmem:[#allocation3 + $0x3e4] ss:$16 sps:$4 sm:$0xff]   ;;  %v5046_v16 = vld [vmem:[#allocation3 + $0x40c] ss:$16 sps:$4 sm:$0xff]  }
 0x10b   :  { %1233 = vmatprep.mubr.bf16.mxu0 %v374_v36  ;;  %1356 = vmatprep.mubr.bf16.mxu1 %v374_v36  ;;  %v5040_v36 = vld [vmem:[#allocation3 + $0x3ec] ss:$16 sps:$4 sm:$0xff]   ;;  %v5038_v39 = vld [vmem:[#allocation3 + $0x3e8] ss:$16 sps:$4 sm:$0xff]  }
 0x10c   :  { %1234 = vmatmul.mubr.bf16.vlgmr.msra.gmra.mrb[4].mxu0 %v373_v40  ;;  %1357 = vmatmul.mubr.bf16.vlgmr.msra.gmra.mrb[4].mxu1 %v373_v40  ;;  %v5043_v40 = vld [vmem:[#allocation3 + $0x404] ss:$16 sps:$4 sm:$0xff]   ;;  %v5044_v43 = vld [vmem:[#allocation3 + $0x408] ss:$16 sps:$4 sm:$0xff]  }
 0x10d   :  { %1243 = vmatpush1.bf16.msra.mxu0 %v4957_v37  ;;  %1366 = vmatpush1.bf16.msra.mxu1 %v4960_v38  ;;  %v114_v37 = vrot.slane %v5716_v17, %v5736_v32  ;;  %v5035_v38 = vld [vmem:[#allocation3 + $0x3e0] ss:$16 sps:$4 sm:$0xff]  }
 0x10e   :  { %1244 = vmatprep.subr.bf16.mxu0 %v4965_v41  ;;  %1367 = vmatprep.subr.bf16.mxu1 %v4968_v42  ;;  %v5041_v42 = vld [vmem:[#allocation3 + $0x400] ss:$16 sps:$4 sm:$0xff]  }
 0x10f   :  { %1274 = vmatprep.mubr.bf16.mxu0 %v376_v44  ;;  %1397 = vmatprep.mubr.bf16.mxu1 %v376_v44  ;;  %v203_v41 = vadd.f32 %v5733_v31, %v114_v37  ;;  %v5049_v44 = vld [vmem:[#allocation3 + $0x424] ss:$16 sps:$4 sm:$0xff]   ;;  %v5047_v17 = vld [vmem:[#allocation3 + $0x420] ss:$16 sps:$4 sm:$0xff]   ;;  %v5116_v37 = vld [vmem:[#allocation3 + $0x588] ss:$16 sps:$4 sm:$0xff]  }
 0x110   :  { %v5053_v31 = vld [vmem:[#allocation3 + $0x440] ss:$16 sps:$4 sm:$0xff]  }
 0x111   :  { %1245 = vmatpush1.bf16.msra.mxu0 %v4963_v45  ;;  %1368 = vmatpush1.bf16.msra.mxu1 %v4966_v46  ;;  %v5052_v45 = vld [vmem:[#allocation3 + $0x42c] ss:$16 sps:$4 sm:$0xff]   ;;  %v211_v46 = vmax.f32 %v203_v41, 0.0  ;;  %v5127_v41 = vld [vmem:[#allocation3 + $0x5c4] ss:$16 sps:$4 sm:$0xff]  }
 0x112   :  { %1246 = vmatprep.subr.bf16.mxu0 %v4971_v47  ;;  %1369 = vmatprep.subr.bf16.mxu1 %v4974_v48  ;;  %v5050_v47 = vld [vmem:[#allocation3 + $0x428] ss:$16 sps:$4 sm:$0xff]   ;;  %v5055_v48 = vld [vmem:[#allocation3 + $0x444] ss:$16 sps:$4 sm:$0xff]  }
 0x115   :  { %1247 = vmatpush1.bf16.msra.mxu0 %v4969_v49  ;;  %1370 = vmatpush1.bf16.msra.mxu1 %v4972_v50  ;;  %v5058_v49 = vld [vmem:[#allocation3 + $0x44c] ss:$16 sps:$4 sm:$0xff]   ;;  %v375_v50 = vpack.c.bf16 %v211_v46, %v211_v46 }
 0x116   :  { %1248 = vmatprep.subr.bf16.mxu0 %v4977_v51  ;;  %1371 = vmatprep.subr.bf16.mxu1 %v4980_v52  ;;  %v5056_v51 = vld [vmem:[#allocation3 + $0x448] ss:$16 sps:$4 sm:$0xff]   ;;  %v5061_v52 = vld [vmem:[#allocation3 + $0x464] ss:$16 sps:$4 sm:$0xff]   ;;  %v5136_v46 = vld [vmem:[#allocation3 + $0x5ec] ss:$16 sps:$4 sm:$0xff]  }
 0x119   :  { %1249 = vmatpush1.bf16.msra.mxu0 %v4975_v53  ;;  %1372 = vmatpush1.bf16.msra.mxu1 %v4978_v54  ;;  %v5064_v53 = vld [vmem:[#allocation3 + $0x46c] ss:$16 sps:$4 sm:$0xff]   ;;  %v5059_v54 = vld [vmem:[#allocation3 + $0x460] ss:$16 sps:$4 sm:$0xff]  }
 0x11a   :  { %1250 = vmatprep.subr.bf16.mxu0 %v4983_v55  ;;  %1373 = vmatprep.subr.bf16.mxu1 %v4986_v56  ;;  %v5062_v55 = vld [vmem:[#allocation3 + $0x468] ss:$16 sps:$4 sm:$0xff]   ;;  %v5067_v56 = vld [vmem:[#allocation3 + $0x484] ss:$16 sps:$4 sm:$0xff]  }
 0x11d   :  { %1251 = vmatpush1.bf16.msra.mxu0 %v4981_v57  ;;  %1374 = vmatpush1.bf16.msra.mxu1 %v4984_v58  ;;  %v5070_v57 = vld [vmem:[#allocation3 + $0x48c] ss:$16 sps:$4 sm:$0xff]   ;;  %v5065_v58 = vld [vmem:[#allocation3 + $0x480] ss:$16 sps:$4 sm:$0xff]  }
 0x11e   :  { %1252 = vmatprep.subr.bf16.mxu0 %v4989_v59  ;;  %1375 = vmatprep.subr.bf16.mxu1 %v4992_v60  ;;  %v5068_v59 = vld [vmem:[#allocation3 + $0x488] ss:$16 sps:$4 sm:$0xff]   ;;  %v5073_v60 = vld [vmem:[#allocation3 + $0x4a4] ss:$16 sps:$4 sm:$0xff]  }
 0x121   :  { %1253 = vmatpush1.bf16.msra.mxu0 %v4987_v61  ;;  %1376 = vmatpush1.bf16.msra.mxu1 %v4990_v62  ;;  %v5076_v61 = vld [vmem:[#allocation3 + $0x4ac] ss:$16 sps:$4 sm:$0xff]   ;;  %v5071_v62 = vld [vmem:[#allocation3 + $0x4a0] ss:$16 sps:$4 sm:$0xff]  }
 0x122   :  { %1254 = vmatprep.subr.bf16.mxu0 %v4995_v63  ;;  %1377 = vmatprep.subr.bf16.mxu1 %v4998_v1  ;;  %v5074_v63 = vld [vmem:[#allocation3 + $0x4a8] ss:$16 sps:$4 sm:$0xff]   ;;  %v5079_v1 = vld [vmem:[#allocation3 + $0x4c4] ss:$16 sps:$4 sm:$0xff]  }
 0x125   :  { %1255 = vmatpush1.bf16.msra.mxu0 %v4993_v2  ;;  %1378 = vmatpush1.bf16.msra.mxu1 %v4996_v3  ;;  %v5082_v2 = vld [vmem:[#allocation3 + $0x4cc] ss:$16 sps:$4 sm:$0xff]   ;;  %v5077_v3 = vld [vmem:[#allocation3 + $0x4c0] ss:$16 sps:$4 sm:$0xff]  }
 0x126   :  { %1256 = vmatprep.subr.bf16.mxu0 %v5001_v4  ;;  %1379 = vmatprep.subr.bf16.mxu1 %v5004_v5  ;;  %v5080_v4 = vld [vmem:[#allocation3 + $0x4c8] ss:$16 sps:$4 sm:$0xff]   ;;  %v5085_v5 = vld [vmem:[#allocation3 + $0x4e4] ss:$16 sps:$4 sm:$0xff]  }
 0x129   :  { %1257 = vmatpush1.bf16.msra.mxu0 %v4999_v6  ;;  %1380 = vmatpush1.bf16.msra.mxu1 %v5002_v7  ;;  %v5088_v6 = vld [vmem:[#allocation3 + $0x4ec] ss:$16 sps:$4 sm:$0xff]   ;;  %v5083_v7 = vld [vmem:[#allocation3 + $0x4e0] ss:$16 sps:$4 sm:$0xff]  }
 0x12a   :  { %1258 = vmatprep.subr.bf16.mxu0 %v5007_v8  ;;  %1381 = vmatprep.subr.bf16.mxu1 %v5010_v9  ;;  %v5086_v8 = vld [vmem:[#allocation3 + $0x4e8] ss:$16 sps:$4 sm:$0xff]   ;;  %v5091_v9 = vld [vmem:[#allocation3 + $0x504] ss:$16 sps:$4 sm:$0xff]  }
 0x12d   :  { %1259 = vmatpush1.bf16.msra.mxu0 %v5005_v10  ;;  %1382 = vmatpush1.bf16.msra.mxu1 %v5008_v11  ;;  %v5094_v10 = vld [vmem:[#allocation3 + $0x50c] ss:$16 sps:$4 sm:$0xff]   ;;  %v5089_v11 = vld [vmem:[#allocation3 + $0x500] ss:$16 sps:$4 sm:$0xff]  }
 0x12e   :  { %1260 = vmatprep.subr.bf16.mxu0 %v5013_v12  ;;  %1383 = vmatprep.subr.bf16.mxu1 %v5016_v13  ;;  %v5092_v12 = vld [vmem:[#allocation3 + $0x508] ss:$16 sps:$4 sm:$0xff]   ;;  %v5097_v13 = vld [vmem:[#allocation3 + $0x524] ss:$16 sps:$4 sm:$0xff]  }
 0x131   :  { %1261 = vmatpush1.bf16.msra.mxu0 %v5011_v14  ;;  %1384 = vmatpush1.bf16.msra.mxu1 %v5014_v15  ;;  %v5100_v14 = vld [vmem:[#allocation3 + $0x52c] ss:$16 sps:$4 sm:$0xff]   ;;  %v5095_v15 = vld [vmem:[#allocation3 + $0x520] ss:$16 sps:$4 sm:$0xff]  }
 0x132   :  { %1262 = vmatprep.subr.bf16.mxu0 %v5019_v20  ;;  %1385 = vmatprep.subr.bf16.mxu1 %v5022_v22  ;;  %v5098_v20 = vld [vmem:[#allocation3 + $0x528] ss:$16 sps:$4 sm:$0xff]  }
 0x133   :  { %v5743_v22 = vld [vmem:[#allocation2 + $0x2] sm:$0x1] }
 0x135   :  { %1263 = vmatpush1.bf16.msra.mxu0 %v5017_v23  ;;  %1386 = vmatpush1.bf16.msra.mxu1 %v5020_v24  ;;  %v377_v23 = vpack.c.bf16 %v5743_v22, %v5743_v22  ;;  %v5101_v24 = vld [vmem:[#allocation3 + $0x540] ss:$16 sps:$4 sm:$0xff]  }
 0x136   :  { %1264 = vmatprep.subr.bf16.mxu0 %v5025_v25  ;;  %1387 = vmatprep.subr.bf16.mxu1 %v5028_v26  ;;  %v5103_v25 = vld [vmem:[#allocation3 + $0x544] ss:$16 sps:$4 sm:$0xff]   ;;  %v5104_v26 = vld [vmem:[#allocation3 + $0x548] ss:$16 sps:$4 sm:$0xff]  }
 0x139   :  { %1265 = vmatpush1.bf16.msra.mxu0 %v5023_v27  ;;  %1388 = vmatpush1.bf16.msra.mxu1 %v5026_v28  ;;  %v5106_v27 = vld [vmem:[#allocation3 + $0x54c] ss:$16 sps:$4 sm:$0xff]   ;;  %v5109_v28 = vld [vmem:[#allocation3 + $0x564] ss:$16 sps:$4 sm:$0xff]  }
 0x13a   :  { %1266 = vmatprep.subr.bf16.mxu0 %v5031_v29  ;;  %1389 = vmatprep.subr.bf16.mxu1 %v5034_v30  ;;  %v5112_v29 = vld [vmem:[#allocation3 + $0x56c] ss:$16 sps:$4 sm:$0xff]   ;;  %v5107_v30 = vld [vmem:[#allocation3 + $0x560] ss:$16 sps:$4 sm:$0xff]  }
 0x13d   :  { %1267 = vmatpush1.bf16.msra.mxu0 %v5029_v33  ;;  %1390 = vmatpush1.bf16.msra.mxu1 %v5032_v34  ;;  %v5110_v33 = vld [vmem:[#allocation3 + $0x568] ss:$16 sps:$4 sm:$0xff]   ;;  %v5115_v34 = vld [vmem:[#allocation3 + $0x584] ss:$16 sps:$4 sm:$0xff]  }
 0x13e   :  { %1268 = vmatprep.subr.bf16.mxu0 %v5037_v35  ;;  %1391 = vmatprep.subr.bf16.mxu1 %v5040_v36  ;;  %v5118_v35 = vld [vmem:[#allocation3 + $0x58c] ss:$16 sps:$4 sm:$0xff]   ;;  %v5113_v36 = vld [vmem:[#allocation3 + $0x580] ss:$16 sps:$4 sm:$0xff]  }
 0x141   :  { %1269 = vmatpush1.bf16.msra.mxu0 %v5035_v38  ;;  %1392 = vmatpush1.bf16.msra.mxu1 %v5038_v39  ;;  %v5121_v38 = vld [vmem:[#allocation3 + $0x5a4] ss:$16 sps:$4 sm:$0xff]   ;;  %v5124_v39 = vld [vmem:[#allocation3 + $0x5ac] ss:$16 sps:$4 sm:$0xff]  }
 0x142   :  { %1270 = vmatprep.subr.bf16.mxu0 %v5043_v40  ;;  %1393 = vmatprep.subr.bf16.mxu1 %v5046_v16  ;;  %v5119_v40 = vld [vmem:[#allocation3 + $0x5a0] ss:$16 sps:$4 sm:$0xff]   ;;  %v5122_v16 = vld [vmem:[#allocation3 + $0x5a8] ss:$16 sps:$4 sm:$0xff]  }
 0x145   :  { %1271 = vmatpush1.bf16.msra.mxu0 %v5041_v42  ;;  %1394 = vmatpush1.bf16.msra.mxu1 %v5044_v43  ;;  %v5130_v42 = vld [vmem:[#allocation3 + $0x5cc] ss:$16 sps:$4 sm:$0xff]   ;;  %v5125_v43 = vld [vmem:[#allocation3 + $0x5c0] ss:$16 sps:$4 sm:$0xff]  }
 0x146   :  { %1272 = vmatprep.subr.bf16.mxu0 %v5049_v44  ;;  %1395 = vmatprep.subr.bf16.mxu1 %v5052_v45  ;;  %v5128_v44 = vld [vmem:[#allocation3 + $0x5c8] ss:$16 sps:$4 sm:$0xff]   ;;  %v5133_v45 = vld [vmem:[#allocation3 + $0x5e4] ss:$16 sps:$4 sm:$0xff]  }
 0x149   :  { %1273 = vmatpush1.bf16.msra.mxu0 %v5047_v17  ;;  %1396 = vmatpush1.bf16.msra.mxu1 %v5050_v47  ;;  %v5131_v17 = vld [vmem:[#allocation3 + $0x5e0] ss:$16 sps:$4 sm:$0xff]   ;;  %v5134_v47 = vld [vmem:[#allocation3 + $0x5e8] ss:$16 sps:$4 sm:$0xff]  }
 0x14a   :  { %1283 = vmatprep.subr.bf16.mxu0 %v5055_v48  ;;  %1406 = vmatprep.subr.bf16.mxu1 %v5058_v49  ;;  %v5139_v48 = vld [vmem:[#allocation3 + $0x604] ss:$16 sps:$4 sm:$0xff]   ;;  %v5142_v49 = vld [vmem:[#allocation3 + $0x60c] ss:$16 sps:$4 sm:$0xff]  }
 0x14c   :  { %1275 = vmatmul.mubr.bf16.vlgmr.msra.gmra.mrb[4].mxu0 %v375_v50  ;;  %1398 = vmatmul.mubr.bf16.vlgmr.msra.gmra.mrb[8].mxu1 %v375_v50  ;;  %v5137_v50 = vld [vmem:[#allocation3 + $0x600] ss:$16 sps:$4 sm:$0xff]  }
 0x14d   :  { %1284 = vmatpush1.bf16.msra.mxu0 %v5053_v31  ;;  %1407 = vmatpush1.bf16.msra.mxu1 %v5056_v51  ;;  %v5140_v31 = vld [vmem:[#allocation3 + $0x608] ss:$16 sps:$4 sm:$0xff]   ;;  %v5145_v51 = vld [vmem:[#allocation3 + $0x624] ss:$16 sps:$4 sm:$0xff]  }
 0x14e   :  { %1285 = vmatprep.subr.bf16.mxu0 %v5061_v52  ;;  %1408 = vmatprep.subr.bf16.mxu1 %v5064_v53  ;;  %v5148_v52 = vld [vmem:[#allocation3 + $0x62c] ss:$16 sps:$4 sm:$0xff]   ;;  %v5143_v53 = vld [vmem:[#allocation3 + $0x620] ss:$16 sps:$4 sm:$0xff]  }
 0x14f   :  { %1315 = vmatprep.mubr.bf16.mxu0 %v5657_v0  ;;  %1438 = vmatprep.mubr.bf16.mxu1 %v5657_v0 }
 0x151   :  { %1286 = vmatpush1.bf16.msra.mxu0 %v5059_v54  ;;  %1409 = vmatpush1.bf16.msra.mxu1 %v5062_v55  ;;  %v5146_v54 = vld [vmem:[#allocation3 + $0x628] ss:$16 sps:$4 sm:$0xff]   ;;  %v5151_v55 = vld [vmem:[#allocation3 + $0x644] ss:$16 sps:$4 sm:$0xff]  }
 0x152   :  { %1287 = vmatprep.subr.bf16.mxu0 %v5067_v56  ;;  %1410 = vmatprep.subr.bf16.mxu1 %v5070_v57  ;;  %v5154_v56 = vld [vmem:[#allocation3 + $0x64c] ss:$16 sps:$4 sm:$0xff]   ;;  %v5149_v57 = vld [vmem:[#allocation3 + $0x640] ss:$16 sps:$4 sm:$0xff]  }
 0x155   :  { %1288 = vmatpush1.bf16.msra.mxu0 %v5065_v58  ;;  %1411 = vmatpush1.bf16.msra.mxu1 %v5068_v59  ;;  %v5152_v58 = vld [vmem:[#allocation3 + $0x648] ss:$16 sps:$4 sm:$0xff]   ;;  %v5157_v59 = vld [vmem:[#allocation3 + $0x664] ss:$16 sps:$4 sm:$0xff]  }
 0x156   :  { %1289 = vmatprep.subr.bf16.mxu0 %v5073_v60  ;;  %1412 = vmatprep.subr.bf16.mxu1 %v5076_v61  ;;  %v5160_v60 = vld [vmem:[#allocation3 + $0x66c] ss:$16 sps:$4 sm:$0xff]   ;;  %v5155_v61 = vld [vmem:[#allocation3 + $0x660] ss:$16 sps:$4 sm:$0xff]  }
 0x159   :  { %1290 = vmatpush1.bf16.msra.mxu0 %v5071_v62  ;;  %1413 = vmatpush1.bf16.msra.mxu1 %v5074_v63  ;;  %v5158_v62 = vld [vmem:[#allocation3 + $0x668] ss:$16 sps:$4 sm:$0xff]   ;;  %v5163_v63 = vld [vmem:[#allocation3 + $0x684] ss:$16 sps:$4 sm:$0xff]  }
 0x15a   :  { %1291 = vmatprep.subr.bf16.mxu0 %v5079_v1  ;;  %1414 = vmatprep.subr.bf16.mxu1 %v5082_v2  ;;  %v5166_v1 = vld [vmem:[#allocation3 + $0x68c] ss:$16 sps:$4 sm:$0xff]   ;;  %v5161_v2 = vld [vmem:[#allocation3 + $0x680] ss:$16 sps:$4 sm:$0xff]  }
 0x15d   :  { %1292 = vmatpush1.bf16.msra.mxu0 %v5077_v3  ;;  %1415 = vmatpush1.bf16.msra.mxu1 %v5080_v4  ;;  %v5164_v3 = vld [vmem:[#allocation3 + $0x688] ss:$16 sps:$4 sm:$0xff]   ;;  %v5169_v4 = vld [vmem:[#allocation3 + $0x6a4] ss:$16 sps:$4 sm:$0xff]  }
 0x15e   :  { %1293 = vmatprep.subr.bf16.mxu0 %v5085_v5  ;;  %1416 = vmatprep.subr.bf16.mxu1 %v5088_v6  ;;  %v5172_v5 = vld [vmem:[#allocation3 + $0x6ac] ss:$16 sps:$4 sm:$0xff]   ;;  %v5167_v6 = vld [vmem:[#allocation3 + $0x6a0] ss:$16 sps:$4 sm:$0xff]  }
 0x161   :  { %1294 = vmatpush1.bf16.msra.mxu0 %v5083_v7  ;;  %1417 = vmatpush1.bf16.msra.mxu1 %v5086_v8  ;;  %v5170_v7 = vld [vmem:[#allocation3 + $0x6a8] ss:$16 sps:$4 sm:$0xff]  }
 0x162   :  { %1295 = vmatprep.subr.bf16.mxu0 %v5091_v9  ;;  %1418 = vmatprep.subr.bf16.mxu1 %v5094_v10  ;;  %v5175_v9 = vld [vmem:[#allocation3 + $0x6c4] ss:$16 sps:$4 sm:$0xff]   ;;  %v5178_v10 = vld [vmem:[#allocation3 + $0x6cc] ss:$16 sps:$4 sm:$0xff]  }
 0x165   :  { %1296 = vmatpush1.bf16.msra.mxu0 %v5089_v11  ;;  %1419 = vmatpush1.bf16.msra.mxu1 %v5092_v12  ;;  %v5173_v12 = vld [vmem:[#allocation3 + $0x6c0] ss:$16 sps:$4 sm:$0xff]  }
 0x166   :  { %1297 = vmatprep.subr.bf16.mxu0 %v5097_v13  ;;  %1420 = vmatprep.subr.bf16.mxu1 %v5100_v14  ;;  %v5176_v13 = vld [vmem:[#allocation3 + $0x6c8] ss:$16 sps:$4 sm:$0xff]  }
 0x169   :  { %1298 = vmatpush1.bf16.msra.mxu0 %v5095_v15  ;;  %1421 = vmatpush1.bf16.msra.mxu1 %v5098_v20  ;;  %v5179_v15 = vld [vmem:[#allocation3 + $0x6e0] ss:$16 sps:$4 sm:$0xff]   ;;  %v5181_v20 = vld [vmem:[#allocation3 + $0x6e4] ss:$16 sps:$4 sm:$0xff]  }
 0x16a   :  { %1875 = vmatprep.subr.bf16.mxu0 %v5103_v25  ;;  %1916 = vmatprep.subr.bf16.mxu1 %v5106_v27  ;;  %v5184_v25 = vld [vmem:[#allocation3 + $0x6ec] ss:$16 sps:$4 sm:$0xff]  }
 0x16b   :  { %v5190_v27 = vld [vmem:[#allocation3 + $0x70c] ss:$16 sps:$4 sm:$0xff]  }
 0x16c   :  { %1316 = vmatmul.mubr.bf16.vlgmr.msra.gmra.mrb[4].mxu0 %v377_v23  ;;  %1439 = vmatmul.mubr.bf16.vlgmr.msra.gmra.mrb[12].mxu1 %v377_v23 }
 0x16d   :  { %1876 = vmatpush1.bf16.msra.mxu0 %v5101_v24  ;;  %1917 = vmatpush1.bf16.msra.mxu1 %v5104_v26  ;;  %v5182_v24 = vld [vmem:[#allocation3 + $0x6e8] ss:$16 sps:$4 sm:$0xff]   ;;  %v5187_v26 = vld [vmem:[#allocation3 + $0x704] ss:$16 sps:$4 sm:$0xff]  }
 0x16e   :  { %1877 = vmatprep.subr.bf16.mxu0 %v5109_v28  ;;  %1918 = vmatprep.subr.bf16.mxu1 %v5112_v29  ;;  %v5747_v28 = vld [vmem:[#allocation2 + $0x3] sm:$0x1]  ;;  %v5185_v29 = vld [vmem:[#allocation3 + $0x700] ss:$16 sps:$4 sm:$0xff]  }
 0x171   :  { %1878 = vmatpush1.bf16.msra.mxu0 %v5107_v30  ;;  %1919 = vmatpush1.bf16.msra.mxu1 %v5110_v33  ;;  %v5188_v30 = vld [vmem:[#allocation3 + $0x708] ss:$16 sps:$4 sm:$0xff]   ;;  %v1531_v33 = vpack.c.bf16 %v5747_v28, %v5747_v28 }
 0x172   :  { %1879 = vmatprep.subr.bf16.mxu0 %v5115_v34  ;;  %1920 = vmatprep.subr.bf16.mxu1 %v5118_v35  ;;  %v5193_v34 = vld [vmem:[#allocation3 + $0x724] ss:$16 sps:$4 sm:$0xff]   ;;  %v5196_v35 = vld [vmem:[#allocation3 + $0x72c] ss:$16 sps:$4 sm:$0xff]  }
 0x173   :  { %1907 = vmatprep.mubr.bf16.mxu0 %v1531_v33  ;;  %1948 = vmatprep.mubr.bf16.mxu1 %v1531_v33 }
 0x175   :  { %1880 = vmatpush1.bf16.msra.mxu0 %v5113_v36  ;;  %1921 = vmatpush1.bf16.msra.mxu1 %v5116_v37  ;;  %v5191_v36 = vld [vmem:[#allocation3 + $0x720] ss:$16 sps:$4 sm:$0xff]   ;;  %v5194_v37 = vld [vmem:[#allocation3 + $0x728] ss:$16 sps:$4 sm:$0xff]  }
 0x176   :  { %1881 = vmatprep.subr.bf16.mxu0 %v5121_v38  ;;  %1922 = vmatprep.subr.bf16.mxu1 %v5124_v39  ;;  %v379_v38 = vld [vmem:[#allocation5 + $0x1] ss:$8 sm:$0xf] }
 0x177   :  { %v1192_v39 = vrot.slane %v379_v38, %v5736_v32 }
 0x179   :  { %1882 = vmatpush1.bf16.msra.mxu0 %v5119_v40  ;;  %1923 = vmatpush1.bf16.msra.mxu1 %v5122_v16  ;;  %v1196_v40 = vrot.slane %v379_v38, %v5727_v21 }
 0x17a   :  { %1883 = vmatprep.subr.bf16.mxu0 %v5127_v41  ;;  %1924 = vmatprep.subr.bf16.mxu1 %v5130_v42 }
 0x17d   :  { %1884 = vmatpush1.bf16.msra.mxu0 %v5125_v43  ;;  %1925 = vmatpush1.bf16.msra.mxu1 %v5128_v44 }
 0x17e   :  { %1885 = vmatprep.subr.bf16.mxu0 %v5133_v45  ;;  %1926 = vmatprep.subr.bf16.mxu1 %v5136_v46 }
 0x181   :  { %1886 = vmatpush1.bf16.msra.mxu0 %v5131_v17  ;;  %1927 = vmatpush1.bf16.msra.mxu1 %v5134_v47  ;;  %v1184_v47 = vrot.slane %v379_v38, %v5719_v18 }
 0x182   :  { %1887 = vmatprep.subr.bf16.mxu0 %v5139_v48  ;;  %1928 = vmatprep.subr.bf16.mxu1 %v5142_v49 }
 0x185   :  { %1888 = vmatpush1.bf16.msra.mxu0 %v5137_v50  ;;  %1929 = vmatpush1.bf16.msra.mxu1 %v5140_v31  ;;  %v1188_v50 = vrot.slane %v379_v38, %v5722_v19 }
 0x186   :  { %1889 = vmatprep.subr.bf16.mxu0 %v5145_v51  ;;  %1930 = vmatprep.subr.bf16.mxu1 %v5148_v52 }
 0x189   :  { %1890 = vmatpush1.bf16.msra.mxu0 %v5143_v53  ;;  %1931 = vmatpush1.bf16.msra.mxu1 %v5146_v54 }
 0x18a   :  { %1891 = vmatprep.subr.bf16.mxu0 %v5151_v55  ;;  %1932 = vmatprep.subr.bf16.mxu1 %v5154_v56 }
 0x18d   :  { %1892 = vmatpush1.bf16.msra.mxu0 %v5149_v57  ;;  %1933 = vmatpush1.bf16.msra.mxu1 %v5152_v58 }
 0x18e   :  { %1893 = vmatprep.subr.bf16.mxu0 %v5157_v59  ;;  %1934 = vmatprep.subr.bf16.mxu1 %v5160_v60 }
 0x191   :  { %1894 = vmatpush1.bf16.msra.mxu0 %v5155_v61  ;;  %1935 = vmatpush1.bf16.msra.mxu1 %v5158_v62 }
 0x192   :  { %1895 = vmatprep.subr.bf16.mxu0 %v5163_v63  ;;  %1936 = vmatprep.subr.bf16.mxu1 %v5166_v1 }
 0x195   :  { %1896 = vmatpush1.bf16.msra.mxu0 %v5161_v2  ;;  %1937 = vmatpush1.bf16.msra.mxu1 %v5164_v3 }
 0x196   :  { %1897 = vmatprep.subr.bf16.mxu0 %v5169_v4  ;;  %1938 = vmatprep.subr.bf16.mxu1 %v5172_v5 }
 0x199   :  { %1898 = vmatpush1.bf16.msra.mxu0 %v5167_v6  ;;  %1939 = vmatpush1.bf16.msra.mxu1 %v5170_v7 }
 0x19a   :  { %1899 = vmatprep.subr.bf16.mxu0 %v5175_v9  ;;  %1940 = vmatprep.subr.bf16.mxu1 %v5178_v10 }
 0x19d   :  { %1900 = vmatpush1.bf16.msra.mxu0 %v5173_v12  ;;  %1941 = vmatpush1.bf16.msra.mxu1 %v5176_v13  ;;  %v5197_v13 = vld [vmem:[#allocation3 + $0x740] ss:$16 sps:$4 sm:$0xff]  }
 0x19e   :  { %1901 = vmatprep.subr.bf16.mxu0 %v5181_v20  ;;  %1942 = vmatprep.subr.bf16.mxu1 %v5184_v25  ;;  %v5200_v20 = vld [vmem:[#allocation3 + $0x7a0] ss:$16 sps:$4 sm:$0xff]   ;;  %v5203_v25 = vld [vmem:[#allocation3 + $0x744] ss:$16 sps:$4 sm:$0xff]  }
 0x1a1   :  { %1902 = vmatpush1.bf16.msra.mxu0 %v5179_v15  ;;  %1943 = vmatpush1.bf16.msra.mxu1 %v5182_v24  ;;  %v5199_v15 = vld [vmem:[#allocation3 + $0x780] ss:$16 sps:$4 sm:$0xff]  }
 0x1a2   :  { %1903 = vmatprep.subr.bf16.mxu0 %v5187_v26  ;;  %1944 = vmatprep.subr.bf16.mxu1 %v5190_v27  ;;  %v5202_v24 = vld [vmem:[#allocation3 + $0x7e0] ss:$16 sps:$4 sm:$0xff]   ;;  %v5204_v26 = vld [vmem:[#allocation3 + $0x764] ss:$16 sps:$4 sm:$0xff]  }
 0x1a3   :  { %v1533_v27 = vld [vmem:[#allocation5 + $0x2] ss:$8 sm:$0xf] }
 0x1a5   :  { %1904 = vmatpush1.bf16.msra.mxu0 %v5185_v29  ;;  %1945 = vmatpush1.bf16.msra.mxu1 %v5188_v30  ;;  %v1858_v29 = vrot.slane %v1533_v27, %v5719_v18 }
 0x1a6   :  { %1905 = vmatprep.subr.bf16.mxu0 %v5193_v34  ;;  %1946 = vmatprep.subr.bf16.mxu1 %v5196_v35  ;;  %v1862_v34 = vrot.slane %v1533_v27, %v5722_v19 }
 0x1a9   :  { %1906 = vmatpush1.bf16.msra.mxu0 %v5191_v36  ;;  %1947 = vmatpush1.bf16.msra.mxu1 %v5194_v37 }
 0x1df   :  { %v1358_v8 = vpop.f32.mrb[4].mxu1 }
 0x1e0   :  { %v1360_v11 = vpop.f32.mrb[5].mxu1  ;;  %v1359_v16 = vadd.f32 %v1358_v8, %v1192_v39 }
 0x1e1   :  { %v1362_v14 = vpop.f32.mrb[6].mxu1  ;;  %v1361_v41 = vadd.f32 %v1360_v11, %v1196_v40 }
 0x1e2   :  { %v1363_v23 = vpop.f32.mrb[7].mxu1  ;;  %v5658_v14 = vmov 0.0  }
 0x1e3   :  { %4768 = vmatprep.subr.bf16.mxu0 %v5658_v14  ;;  %4241 = vst [vmem:[%s5856_s3 + $0x6] sm:$0x3] %v5658_v14  ;;  %4784 = vmatprep.subr.bf16.mxu1 %v5658_v14  ;;  %v5201_v23 = vld [vmem:[#allocation3 + $0x7c0] ss:$16 sps:$4 sm:$0xff]  }
 0x21f   :  { %v1399_v42 = vpop.f32.mrb[8].mxu1 }
 0x220   :  { %v1400_v43 = vadd.f32 %v1399_v42, %v1359_v16  ;;  %v1401_v44 = vpop.f32.mrb[9].mxu1 }
 0x221   :  { %v1402_v45 = vadd.f32 %v1401_v44, %v1361_v41  ;;  %v1403_v46 = vpop.f32.mrb[10].mxu1 }
 0x222   :  { %v1404_v17 = vpop.f32.mrb[11].mxu1 }
 0x223   :  { %v1870_v17 = vrot.slane %v1533_v27, %v5727_v21 }
 0x23f   :  { %v1317_v48 = vpop.f32.mrb[4].mxu0  ;;  %v1440_v49 = vpop.f32.mrb[12].mxu1 }
 0x240   :  { %v4820_v31 = vadd.f32 %v1317_v48, %v1184_v47  ;;  %v1441_v51 = vadd.f32 %v1440_v49, %v1400_v43  ;;  %v1319_v52 = vpop.f32.mrb[5].mxu0  ;;  %v1442_v53 = vpop.f32.mrb[13].mxu1  ;;  %v1866_v47 = vrot.slane %v1533_v27, %v5736_v32  ;;  %v5284_v27 = vld [vmem:[#allocation3 + $0x9e0] ss:$16 sps:$4 sm:$0xff]  }
 0x241   :  { %v1443_v54 = vadd.f32 %v1442_v53, %v1402_v45  ;;  %v1321_v55 = vpop.f32.mrb[6].mxu0  ;;  %v1444_v56 = vpop.f32.mrb[14].mxu1  ;;  %v4821_v60 = vadd.f32 %v1319_v52, %v1188_v50 }
 0x242   :  { %v4418_v57 = vmul.f32 -1.442695, %v4820_v31  ;;  %v1322_v58 = vpop.f32.mrb[7].mxu0  ;;  %v1445_v59 = vpop.f32.mrb[15].mxu1 }
 0x243   :  { %v4419_v61 = vmul.f32 -1.442695, %v4821_v60  ;;  %v5205_v60 = vld [vmem:[#allocation3 + $0x784] ss:$16 sps:$4 sm:$0xff]  }
 0x244   :  { %5563 = vpow2.f32 %v4418_v57 }
 0x245   :  { %5565 = vpow2.f32 %v4419_v61  ;;  %v5208_v61 = vld [vmem:[#allocation3 + $0x844] ss:$16 sps:$4 sm:$0xff]  }
 0x24e   :  { %v5564_v62 = vpop.eup %5563 }
 0x24f   :  { %v1450_v63 = vadd.f32 1.0, %v5564_v62  ;;  %v5566_v1 = vpop.eup %5565  ;;  %v5218_v62 = vld [vmem:[#allocation3 + $0x880] ss:$16 sps:$4 sm:$0xff]  }
 0x250   :  { %v1456_v2 = vadd.f32 1.0, %v5566_v1  ;;  %v5226_v1 = vld [vmem:[#allocation3 + $0x8a4] ss:$16 sps:$4 sm:$0xff]  }
 0x251   :  { %5567 = vrcp.f32 %v1450_v63  ;;  %v5220_v63 = vld [vmem:[#allocation3 + $0x884] ss:$16 sps:$4 sm:$0xff]  }
 0x252   :  { %5569 = vrcp.f32 %v1456_v2  ;;  %v5232_v2 = vld [vmem:[#allocation3 + $0x8c4] ss:$16 sps:$4 sm:$0xff]  }
 0x25b   :  { %v5568_v3 = vpop.eup %5567 }
 0x25c   :  { %v1459_v4 = vmul.f32 %v5568_v3, %v1443_v54  ;;  %v5570_v6 = vpop.eup %5569  ;;  %v5230_v3 = vld [vmem:[#allocation3 + $0x8c0] ss:$16 sps:$4 sm:$0xff]  }
 0x25d   :  { %v1462_v7 = vsub.f32 1.0, %v5570_v6  ;;  %v1464_v10 = vmul.f32 %v5570_v6, %v5743_v22  ;;  %v5198_v22 = vld [vmem:[#allocation3 + $0x760] ss:$16 sps:$4 sm:$0xff]   ;;  %v5244_v6 = vld [vmem:[#allocation3 + $0x904] ss:$16 sps:$4 sm:$0xff]  }
 0x25e   :  { %v1460_v5 = vadd.f32 %v1459_v4, %v1441_v51  ;;  %v5238_v4 = vld [vmem:[#allocation3 + $0x8e4] ss:$16 sps:$4 sm:$0xff]  }
 0x260   :  { %5571 = vtanh.f32 %v1460_v5  ;;  %v5236_v5 = vld [vmem:[#allocation3 + $0x8e0] ss:$16 sps:$4 sm:$0xff]  }
 0x26a   :  { %v5572_v8 = vpop.eup %5571 }
 0x26b   :  { %v1463_v9 = vmul.f32 %v5572_v8, %v1462_v7  ;;  %v5242_v7 = vld [vmem:[#allocation3 + $0x900] ss:$16 sps:$4 sm:$0xff]   ;;  %v5250_v8 = vld [vmem:[#allocation3 + $0x924] ss:$16 sps:$4 sm:$0xff]  }
 0x26d   :  { %v1465_v11 = vadd.f32 %v1464_v10, %v1463_v9  ;;  %v5248_v9 = vld [vmem:[#allocation3 + $0x920] ss:$16 sps:$4 sm:$0xff]   ;;  %v5256_v10 = vld [vmem:[#allocation3 + $0x944] ss:$16 sps:$4 sm:$0xff]  }
 0x26f   :  { %v1530_v12 = vpack.c.bf16 %v1465_v11, %v1465_v11  ;;  %4231 = vst [vmem:[#allocation2 + $0x2] sm:$0x1] %v1465_v11  ;;  %4237 = vst [vmem:[%s5856_s3 + $0x2] sm:$0x1] %v1465_v11  ;;  %v5254_v11 = vld [vmem:[#allocation3 + $0x940] ss:$16 sps:$4 sm:$0xff]  }
 0x271   :  { %1908 = vmatmul.mubr.bf16.vlgmr.msra.gmra.mrb[8].mxu0 %v1530_v12  ;;  %1949 = vmatmul.mubr.bf16.vlgmr.msra.gmra.mrb[16].mxu1 %v1530_v12  ;;  %v5262_v12 = vld [vmem:[#allocation3 + $0x964] ss:$16 sps:$4 sm:$0xff]  }
 0x272   :  { %4769 = vmatpush3.bf16.msra.mxu0 %v5197_v13  ;;  %4780 = vmatprep.mubr.msk.bf16.mxu0 %vm5659_vm1, %v5658_v14  ;;  %v5260_v13 = vld [vmem:[#allocation3 + $0x960] ss:$16 sps:$4 sm:$0xff]  }
 0x273   :  { %4770 = vmatprep.subr.bf16.mxu0 %v5658_v14  ;;  %4790 = vmatprep.mubr.msk.bf16.mxu1 %vm5659_vm1, %v5658_v14 }
 0x274   :  { %4785 = vmatpush3.bf16.msra.mxu1 %v5203_v25  ;;  %v5278_v25 = vld [vmem:[#allocation3 + $0x9c0] ss:$16 sps:$4 sm:$0xff]  }
 0x275   :  { %4786 = vmatprep.subr.bf16.mxu1 %v5658_v14 }
 0x276   :  { %4771 = vmatpush3.bf16.msra.mxu0 %v5198_v22  ;;  %v5268_v22 = vld [vmem:[#allocation3 + $0x984] ss:$16 sps:$4 sm:$0xff]  }
 0x277   :  { %4772 = vmatprep.subr.bf16.mxu0 %v5658_v14 }
 0x278   :  { %4787 = vmatpush3.bf16.msra.mxu1 %v5204_v26  ;;  %v5286_v26 = vld [vmem:[#allocation3 + $0x9e4] ss:$16 sps:$4 sm:$0xff]  }
 0x279   :  { %4788 = vmatprep.subr.bf16.mxu1 %v5658_v14 }
 0x27a   :  { %4773 = vmatpush3.bf16.msra.mxu0 %v5199_v15  ;;  %v5266_v15 = vld [vmem:[#allocation3 + $0x980] ss:$16 sps:$4 sm:$0xff]  }
 0x27b   :  { %4774 = vmatprep.subr.bf16.mxu0 %v5658_v14 }
 0x27c   :  { %4789 = vmatpush3.bf16.msra.mxu1 %v5205_v60  ;;  %v5263_v60 = vld [vmem:[#allocation3 + $0x968] ss:$16 sps:$4 sm:$0xff]  }
 0x27d   :  { %2219 = vmatprep.subr.bf16.mxu1 %v5208_v61  ;;  %v5271_v61 = vld [vmem:[#allocation3 + $0x98c] ss:$16 sps:$4 sm:$0xff]  }
 0x27e   :  { %4775 = vmatpush3.bf16.msra.mxu0 %v5200_v20  ;;  %v5274_v20 = vld [vmem:[#allocation3 + $0x9a4] ss:$16 sps:$4 sm:$0xff]  }
 0x27f   :  { %4776 = vmatprep.subr.bf16.mxu0 %v5658_v14 }
 0x282   :  { %4777 = vmatpush3.bf16.msra.mxu0 %v5201_v23  ;;  %v5272_v23 = vld [vmem:[#allocation3 + $0x9a0] ss:$16 sps:$4 sm:$0xff]  }
 0x283   :  { %4778 = vmatprep.subr.bf16.mxu0 %v5658_v14 }
 0x286   :  { %4779 = vmatpush3.bf16.msra.mxu0 %v5202_v24  ;;  %v5280_v24 = vld [vmem:[#allocation3 + $0x9c4] ss:$16 sps:$4 sm:$0xff]  }
 0x287   :  { %3293 = vmatprep.subr.bf16.mxu0 %v5220_v63  ;;  %v5277_v63 = vld [vmem:[#allocation3 + $0x9ac] ss:$16 sps:$4 sm:$0xff]  }
 0x344   :  { %v1909_v30 = vpop.f32.mrb[8].mxu0  ;;  %v1950_v33 = vpop.f32.mrb[16].mxu1 }
 0x345   :  { %v1910_v35 = vadd.f32 %v1909_v30, %v1858_v29  ;;  %v1911_v36 = vpop.f32.mrb[9].mxu0  ;;  %v1952_v37 = vpop.f32.mrb[17].mxu1  ;;  %v1951_v31 = vadd.f32 %v1950_v33, %v1866_v47  ;;  %v1989_v29 = vld [vmem:[#allocation5 + $0x3] ss:$0 sm:$0xff]  ;;  %v5221_v47 = vld [vmem:[#allocation3 + $0x888] ss:$16 sps:$4 sm:$0xff]  }
 0x346   :  { %v1913_v38 = vpop.f32.mrb[10].mxu0  ;;  %v1954_v39 = vpop.f32.mrb[18].mxu1  ;;  %v1912_v42 = vadd.f32 %v1911_v36, %v1862_v34  ;;  %v1953_v49 = vadd.f32 %v1952_v37, %v1870_v17  ;;  %v5223_v17 = vld [vmem:[#allocation3 + $0x88c] ss:$16 sps:$4 sm:$0xff]  }
 0x347   :  { %v4484_v40 = vmul.f32 -1.442695, %v1910_v35  ;;  %v1914_v16 = vpop.f32.mrb[11].mxu0  ;;  %v1955_v41 = vpop.f32.mrb[19].mxu1  ;;  %v5206_v38 = vld [vmem:[#allocation3 + $0x840] ss:$16 sps:$4 sm:$0xff]  }
 0x348   :  { %v4485_v43 = vmul.f32 -1.442695, %v1912_v42  ;;  %v5209_v16 = vld [vmem:[#allocation3 + $0x860] ss:$16 sps:$4 sm:$0xff]   ;;  %v2141_v41 = vld [vmem:[%s5853_s0 + $0x1] sm:$0x1] }
 0x349   :  { %5573 = vpow2.f32 %v4484_v40  ;;  %v5211_v40 = vld [vmem:[#allocation3 + $0x864] ss:$16 sps:$4 sm:$0xff]   ;;  %v5214_v42 = vld [vmem:[#allocation3 + $0x84c] ss:$16 sps:$4 sm:$0xff]  }
 0x34a   :  { %5575 = vpow2.f32 %v4485_v43  ;;  %v2152_v43 = vpack.c.bf16 %v2141_v41, %v2141_v41 }
 0x353   :  { %v5574_v44 = vpop.eup %5573 }
 0x354   :  { %v1960_v45 = vadd.f32 1.0, %v5574_v44  ;;  %v5576_v46 = vpop.eup %5575  ;;  %v5212_v44 = vld [vmem:[#allocation3 + $0x848] ss:$16 sps:$4 sm:$0xff]  }
 0x355   :  { %v1966_v48 = vadd.f32 1.0, %v5576_v46  ;;  %v5215_v46 = vld [vmem:[#allocation3 + $0x868] ss:$16 sps:$4 sm:$0xff]  }
 0x356   :  { %5577 = vrcp.f32 %v1960_v45  ;;  %v5217_v45 = vld [vmem:[#allocation3 + $0x86c] ss:$16 sps:$4 sm:$0xff]  }
 0x357   :  { %5579 = vrcp.f32 %v1966_v48  ;;  %v5229_v48 = vld [vmem:[#allocation3 + $0x8ac] ss:$16 sps:$4 sm:$0xff]  }
 0x360   :  { %v5578_v50 = vpop.eup %5577 }
 0x361   :  { %v1969_v51 = vmul.f32 %v5578_v50, %v1953_v49  ;;  %v5580_v53 = vpop.eup %5579  ;;  %v5227_v49 = vld [vmem:[#allocation3 + $0x8a8] ss:$16 sps:$4 sm:$0xff]   ;;  %v5235_v50 = vld [vmem:[#allocation3 + $0x8cc] ss:$16 sps:$4 sm:$0xff]  }
 0x362   :  { %v1972_v54 = vsub.f32 1.0, %v5580_v53  ;;  %v1974_v56 = vmul.f32 %v5580_v53, %v5747_v28  ;;  %v5224_v28 = vld [vmem:[#allocation3 + $0x8a0] ss:$16 sps:$4 sm:$0xff]   ;;  %v5247_v53 = vld [vmem:[#allocation3 + $0x90c] ss:$16 sps:$4 sm:$0xff]  }
 0x363   :  { %v1970_v52 = vadd.f32 %v1969_v51, %v1951_v31  ;;  %v5233_v31 = vld [vmem:[#allocation3 + $0x8c8] ss:$16 sps:$4 sm:$0xff]   ;;  %v5241_v51 = vld [vmem:[#allocation3 + $0x8ec] ss:$16 sps:$4 sm:$0xff]  }
 0x365   :  { %5581 = vtanh.f32 %v1970_v52  ;;  %v5239_v52 = vld [vmem:[#allocation3 + $0x8e8] ss:$16 sps:$4 sm:$0xff]  }
 0x36f   :  { %v5582_v55 = vpop.eup %5581 }
 0x370   :  { %v1973_v57 = vmul.f32 %v5582_v55, %v1972_v54  ;;  %v5245_v54 = vld [vmem:[#allocation3 + $0x908] ss:$16 sps:$4 sm:$0xff]   ;;  %v5253_v55 = vld [vmem:[#allocation3 + $0x92c] ss:$16 sps:$4 sm:$0xff]  }
 0x372   :  { %v1975_v58 = vadd.f32 %v1974_v56, %v1973_v57  ;;  %v5251_v56 = vld [vmem:[#allocation3 + $0x928] ss:$16 sps:$4 sm:$0xff]   ;;  %v5259_v57 = vld [vmem:[#allocation3 + $0x94c] ss:$16 sps:$4 sm:$0xff]  }
 0x374   :  { %v1988_v59 = vpack.c.bf16 %v1975_v58, %v1975_v58  ;;  %4232 = vst [vmem:[#allocation2 + $0x3] sm:$0x1] %v1975_v58  ;;  %4238 = vst [vmem:[%s5856_s3 + $0x3] sm:$0x1] %v1975_v58  ;;  %v5257_v58 = vld [vmem:[#allocation3 + $0x948] ss:$16 sps:$4 sm:$0xff]  }
 0x376   :  { %4781 = vmatmul.mubr.msk.bf16.vlgmr.msra.gmra.mrb[12].mxu0 %vm2026_vm2, %v1988_v59  ;;  %v5265_v59 = vld [vmem:[#allocation3 + $0x96c] ss:$16 sps:$4 sm:$0xff]  }
 0x377   :  { %3294 = vmatpush1.bf16.msra.mxu0 %v5218_v62  ;;  %v5269_v62 = vld [vmem:[#allocation3 + $0x988] ss:$16 sps:$4 sm:$0xff]  }
 0x378   :  { %3295 = vmatprep.subr.bf16.mxu0 %v5226_v1  ;;  %v5275_v1 = vld [vmem:[#allocation3 + $0x9a8] ss:$16 sps:$4 sm:$0xff]  }
 0x37b   :  { %3296 = vmatpush1.bf16.msra.mxu0 %v5224_v28  ;;  %v5283_v28 = vld [vmem:[#allocation3 + $0x9cc] ss:$16 sps:$4 sm:$0xff]  }
 0x37c   :  { %3297 = vmatprep.subr.bf16.mxu0 %v5232_v2  ;;  %v5281_v2 = vld [vmem:[#allocation3 + $0x9c8] ss:$16 sps:$4 sm:$0xff]  }
 0x37f   :  { %3298 = vmatpush1.bf16.msra.mxu0 %v5230_v3  ;;  %v5289_v3 = vld [vmem:[#allocation3 + $0x9ec] ss:$16 sps:$4 sm:$0xff]  }
 0x380   :  { %3299 = vmatprep.subr.bf16.mxu0 %v5238_v4  ;;  %v5287_v4 = vld [vmem:[#allocation3 + $0x9e8] ss:$16 sps:$4 sm:$0xff]  }
 0x383   :  { %3300 = vmatpush1.bf16.msra.mxu0 %v5236_v5  ;;  %v5292_v5 = vld [vmem:[#allocation3 + $0xa04] ss:$16 sps:$4 sm:$0xff]  }
 0x384   :  { %3301 = vmatprep.subr.bf16.mxu0 %v5244_v6  ;;  %v5295_v6 = vld [vmem:[#allocation3 + $0xa0c] ss:$16 sps:$4 sm:$0xff]  }
 0x387   :  { %3302 = vmatpush1.bf16.msra.mxu0 %v5242_v7  ;;  %v5290_v7 = vld [vmem:[#allocation3 + $0xa00] ss:$16 sps:$4 sm:$0xff]  }
 0x388   :  { %3303 = vmatprep.subr.bf16.mxu0 %v5250_v8  ;;  %v5293_v8 = vld [vmem:[#allocation3 + $0xa08] ss:$16 sps:$4 sm:$0xff]  }
 0x38b   :  { %3304 = vmatpush1.bf16.msra.mxu0 %v5248_v9  ;;  %v5298_v9 = vld [vmem:[#allocation3 + $0xa24] ss:$16 sps:$4 sm:$0xff]  }
 0x38c   :  { %3305 = vmatprep.subr.bf16.mxu0 %v5256_v10  ;;  %v5301_v10 = vld [vmem:[#allocation3 + $0xa2c] ss:$16 sps:$4 sm:$0xff]  }
 0x38f   :  { %3306 = vmatpush1.bf16.msra.mxu0 %v5254_v11  ;;  %v5296_v11 = vld [vmem:[#allocation3 + $0xa20] ss:$16 sps:$4 sm:$0xff]  }
 0x390   :  { %3307 = vmatprep.subr.bf16.mxu0 %v5262_v12  ;;  %v5299_v12 = vld [vmem:[#allocation3 + $0xa28] ss:$16 sps:$4 sm:$0xff]  }
 0x393   :  { %3308 = vmatpush1.bf16.msra.mxu0 %v5260_v13  ;;  %v5304_v13 = vld [vmem:[#allocation3 + $0xa44] ss:$16 sps:$4 sm:$0xff]  }
 0x394   :  { %3309 = vmatprep.subr.bf16.mxu0 %v5268_v22  ;;  %v5307_v22 = vld [vmem:[#allocation3 + $0xa4c] ss:$16 sps:$4 sm:$0xff]  }
 0x397   :  { %3310 = vmatpush1.bf16.msra.mxu0 %v5266_v15  ;;  %v5302_v15 = vld [vmem:[#allocation3 + $0xa40] ss:$16 sps:$4 sm:$0xff]  }
 0x398   :  { %3311 = vmatprep.subr.bf16.mxu0 %v5274_v20  ;;  %v5305_v20 = vld [vmem:[#allocation3 + $0xa48] ss:$16 sps:$4 sm:$0xff]  }
 0x39b   :  { %3312 = vmatpush1.bf16.msra.mxu0 %v5272_v23  ;;  %v5310_v23 = vld [vmem:[#allocation3 + $0xa64] ss:$16 sps:$4 sm:$0xff]  }
 0x39c   :  { %3313 = vmatprep.subr.bf16.mxu0 %v5280_v24  ;;  %v5313_v24 = vld [vmem:[#allocation3 + $0xa6c] ss:$16 sps:$4 sm:$0xff]  }
 0x39f   :  { %3314 = vmatpush1.bf16.msra.mxu0 %v5278_v25  ;;  %v5308_v25 = vld [vmem:[#allocation3 + $0xa60] ss:$16 sps:$4 sm:$0xff]  }
 0x3a0   :  { %3315 = vmatprep.subr.bf16.mxu0 %v5286_v26  ;;  %v5311_v26 = vld [vmem:[#allocation3 + $0xa68] ss:$16 sps:$4 sm:$0xff]  }
 0x3a3   :  { %3316 = vmatpush1.bf16.msra.mxu0 %v5284_v27  ;;  %v5316_v27 = vld [vmem:[#allocation3 + $0xa84] ss:$16 sps:$4 sm:$0xff]  }
 0x3a4   :  { %3317 = vmatprep.subr.bf16.mxu0 %v5292_v5  ;;  %v5335_v5 = vld [vmem:[#allocation3 + $0xae8] ss:$16 sps:$4 sm:$0xff]  }
 0x3a7   :  { %3318 = vmatpush1.bf16.msra.mxu0 %v5290_v7  ;;  %v5343_v7 = vld [vmem:[#allocation3 + $0xb0c] ss:$16 sps:$4 sm:$0xff]  }
 0x3a8   :  { %3319 = vmatprep.subr.bf16.mxu0 %v5298_v9  ;;  %v5341_v9 = vld [vmem:[#allocation3 + $0xb08] ss:$16 sps:$4 sm:$0xff]  }
 0x3ab   :  { %3320 = vmatpush1.bf16.msra.mxu0 %v5296_v11  ;;  %v5349_v11 = vld [vmem:[#allocation3 + $0xb2c] ss:$16 sps:$4 sm:$0xff]  }
 0x3ac   :  { %3321 = vmatprep.subr.bf16.mxu0 %v5304_v13  ;;  %v5347_v13 = vld [vmem:[#allocation3 + $0xb28] ss:$16 sps:$4 sm:$0xff]  }
 0x3af   :  { %3322 = vmatpush1.bf16.msra.mxu0 %v5302_v15  ;;  %v5355_v15 = vld [vmem:[#allocation3 + $0xb4c] ss:$16 sps:$4 sm:$0xff]  }
 0x3b0   :  { %3323 = vmatprep.subr.bf16.mxu0 %v5310_v23  ;;  %v5353_v23 = vld [vmem:[#allocation3 + $0xb48] ss:$16 sps:$4 sm:$0xff]  }
 0x3b3   :  { %3324 = vmatpush1.bf16.msra.mxu0 %v5308_v25  ;;  %v5361_v25 = vld [vmem:[#allocation3 + $0xb6c] ss:$16 sps:$4 sm:$0xff]  }
 0x3b4   :  { %3334 = vmatprep.subr.bf16.mxu0 %v5316_v27  ;;  %v5359_v27 = vld [vmem:[#allocation3 + $0xb68] ss:$16 sps:$4 sm:$0xff]  }
 0x449   :  { %v2064_v30 = vpop.f32.mrb[12].mxu0 }
 0x44a   :  { %v2065_v33 = vadd.f32 %v2064_v30, %v1989_v29  ;;  %v4782_v34 = vpop.f32.mrb[13].mxu0  ;;  %v5319_v29 = vld [vmem:[#allocation3 + $0xa8c] ss:$16 sps:$4 sm:$0xff]   ;;  %v2078_v30 = vld [vmem:[#allocation5 + $0xb] ss:$0 sm:$0xff] }
 0x44b   :  { %v2067_v35 = vpop.f32.mrb[14].mxu0 }
 0x44c   :  { %v2070_v36 = vmax.f32 %v2065_v33, 0.0  ;;  %v4783_v37 = vpop.f32.mrb[15].mxu0 }
 0x44d   :  { %v5793_v37 = vld [vmem:[#allocation5 + $0x20] ss:$8 sm:$0xf] }
 0x44e   :  { %v2077_v39 = vpack.c.bf16 %v2070_v36, %v2070_v36 }
 0x450   :  { %4791 = vmatmul.mubr.msk.bf16.vlgmr.msra.gmra.mrb[20].mxu1 %vm2097_vm3, %v2077_v39  ;;  %v2199_v39 = vrot.slane %v5793_v37, %v5719_v18 }
 0x451   :  { %2220 = vmatpush1.bf16.msra.mxu1 %v5206_v38  ;;  %2251 = vmatprep.mubr.bf16.mxu1 %v5657_v0 }
 0x452   :  { %2221 = vmatprep.subr.bf16.mxu1 %v5211_v40  ;;  %v2203_v40 = vrot.slane %v5793_v37, %v5722_v19 }
 0x455   :  { %2222 = vmatpush1.bf16.msra.mxu1 %v5209_v16 }
 0x456   :  { %2260 = vmatprep.subr.bf16.mxu1 %v5214_v42 }
 0x458   :  { %4505 = vmatmul.mubr.msk.bf16.vlgmr.msra.gmra.mrb[24].mxu1 %vm123_vm0, %v2152_v43 }
 0x459   :  { %2261 = vmatpush1.bf16.msra.mxu1 %v5212_v44  ;;  %2292 = vmatprep.mubr.bf16.mxu1 %v5657_v0 }
 0x45a   :  { %2262 = vmatprep.subr.bf16.mxu1 %v5217_v45 }
 0x45d   :  { %2263 = vmatpush1.bf16.msra.mxu1 %v5215_v46 }
 0x45e   :  { %3416 = vmatprep.subr.bf16.mxu1 %v5223_v17 }
 0x460   :  { %4506 = vmatmul.mubr.msk.bf16.vlgmr.msra.gmra.mrb[28].mxu1 %vm123_vm0, %v2152_v43 }
 0x461   :  { %3417 = vmatpush1.bf16.msra.mxu1 %v5221_v47 }
 0x462   :  { %3418 = vmatprep.subr.bf16.mxu1 %v5229_v48  ;;  %v5314_v48 = vld [vmem:[#allocation3 + $0xa80] ss:$16 sps:$4 sm:$0xff]  }
 0x465   :  { %3419 = vmatpush1.bf16.msra.mxu1 %v5227_v49  ;;  %v5317_v49 = vld [vmem:[#allocation3 + $0xa88] ss:$16 sps:$4 sm:$0xff]  }
 0x466   :  { %3420 = vmatprep.subr.bf16.mxu1 %v5235_v50  ;;  %v2211_v50 = vrot.slane %v5793_v37, %v5727_v21 }
 0x469   :  { %3421 = vmatpush1.bf16.msra.mxu1 %v5233_v31 }
 0x46a   :  { %3422 = vmatprep.subr.bf16.mxu1 %v5241_v51  ;;  %v5322_v51 = vld [vmem:[#allocation3 + $0xaa4] ss:$16 sps:$4 sm:$0xff]  }
 0x46d   :  { %3423 = vmatpush1.bf16.msra.mxu1 %v5239_v52  ;;  %v5325_v52 = vld [vmem:[#allocation3 + $0xaac] ss:$16 sps:$4 sm:$0xff]  }
 0x46e   :  { %3424 = vmatprep.subr.bf16.mxu1 %v5247_v53 }
 0x471   :  { %3425 = vmatpush1.bf16.msra.mxu1 %v5245_v54 }
 0x472   :  { %3426 = vmatprep.subr.bf16.mxu1 %v5253_v55  ;;  %v5320_v55 = vld [vmem:[#allocation3 + $0xaa0] ss:$16 sps:$4 sm:$0xff]  }
 0x475   :  { %3427 = vmatpush1.bf16.msra.mxu1 %v5251_v56  ;;  %v5323_v56 = vld [vmem:[#allocation3 + $0xaa8] ss:$16 sps:$4 sm:$0xff]  }
 0x476   :  { %3428 = vmatprep.subr.bf16.mxu1 %v5259_v57 }
 0x479   :  { %3429 = vmatpush1.bf16.msra.mxu1 %v5257_v58 }
 0x47a   :  { %3430 = vmatprep.subr.bf16.mxu1 %v5265_v59  ;;  %v5328_v59 = vld [vmem:[#allocation3 + $0xac4] ss:$16 sps:$4 sm:$0xff]  }
 0x47d   :  { %3431 = vmatpush1.bf16.msra.mxu1 %v5263_v60  ;;  %v5331_v60 = vld [vmem:[#allocation3 + $0xacc] ss:$16 sps:$4 sm:$0xff]  }
 0x47e   :  { %3432 = vmatprep.subr.bf16.mxu1 %v5271_v61 }
 0x481   :  { %3433 = vmatpush1.bf16.msra.mxu1 %v5269_v62 }
 0x482   :  { %3434 = vmatprep.subr.bf16.mxu1 %v5277_v63  ;;  %v5326_v63 = vld [vmem:[#allocation3 + $0xac0] ss:$16 sps:$4 sm:$0xff]  }
 0x485   :  { %3435 = vmatpush1.bf16.msra.mxu1 %v5275_v1  ;;  %v5329_v1 = vld [vmem:[#allocation3 + $0xac8] ss:$16 sps:$4 sm:$0xff]  }
 0x486   :  { %3436 = vmatprep.subr.bf16.mxu1 %v5283_v28 }
 0x489   :  { %3437 = vmatpush1.bf16.msra.mxu1 %v5281_v2  ;;  %v5334_v2 = vld [vmem:[#allocation3 + $0xae4] ss:$16 sps:$4 sm:$0xff]  }
 0x48a   :  { %3438 = vmatprep.subr.bf16.mxu1 %v5289_v3  ;;  %v5337_v3 = vld [vmem:[#allocation3 + $0xaec] ss:$16 sps:$4 sm:$0xff]  }
 0x48d   :  { %3439 = vmatpush1.bf16.msra.mxu1 %v5287_v4  ;;  %v5332_v4 = vld [vmem:[#allocation3 + $0xae0] ss:$16 sps:$4 sm:$0xff]  }
 0x48e   :  { %3440 = vmatprep.subr.bf16.mxu1 %v5295_v6  ;;  %v5340_v6 = vld [vmem:[#allocation3 + $0xb04] ss:$16 sps:$4 sm:$0xff]  }
 0x491   :  { %3441 = vmatpush1.bf16.msra.mxu1 %v5293_v8  ;;  %v5338_v8 = vld [vmem:[#allocation3 + $0xb00] ss:$16 sps:$4 sm:$0xff]  }
 0x492   :  { %3442 = vmatprep.subr.bf16.mxu1 %v5301_v10  ;;  %v5346_v10 = vld [vmem:[#allocation3 + $0xb24] ss:$16 sps:$4 sm:$0xff]  }
 0x495   :  { %3443 = vmatpush1.bf16.msra.mxu1 %v5299_v12  ;;  %v5344_v12 = vld [vmem:[#allocation3 + $0xb20] ss:$16 sps:$4 sm:$0xff]  }
 0x496   :  { %3444 = vmatprep.subr.bf16.mxu1 %v5307_v22  ;;  %v5352_v22 = vld [vmem:[#allocation3 + $0xb44] ss:$16 sps:$4 sm:$0xff]  }
 0x499   :  { %3445 = vmatpush1.bf16.msra.mxu1 %v5305_v20  ;;  %v5350_v20 = vld [vmem:[#allocation3 + $0xb40] ss:$16 sps:$4 sm:$0xff]  }
 0x49a   :  { %3446 = vmatprep.subr.bf16.mxu1 %v5313_v24  ;;  %v5358_v24 = vld [vmem:[#allocation3 + $0xb64] ss:$16 sps:$4 sm:$0xff]  }
 0x49d   :  { %3447 = vmatpush1.bf16.msra.mxu1 %v5311_v26  ;;  %v5356_v26 = vld [vmem:[#allocation3 + $0xb60] ss:$16 sps:$4 sm:$0xff]  }
 0x49e   :  { %3457 = vmatprep.subr.bf16.mxu1 %v5319_v29  ;;  %v5364_v29 = vld [vmem:[#allocation3 + $0xb84] ss:$16 sps:$4 sm:$0xff]  }
 0x523   :  { %v2135_v33 = vpop.f32.mrb[20].mxu1 }
 0x524   :  { %v2136_v34 = vadd.f32 %v2135_v33, %v2078_v30  ;;  %v4792_v35 = vpop.f32.mrb[21].mxu1  ;;  %v5367_v30 = vld [vmem:[#allocation3 + $0xb8c] ss:$16 sps:$4 sm:$0xff]   ;;  %v5362_v33 = vld [vmem:[#allocation3 + $0xb80] ss:$16 sps:$4 sm:$0xff]  }
 0x525   :  { %v2138_v36 = vpop.f32.mrb[22].mxu1  ;;  %v5370_v35 = vld [vmem:[#allocation3 + $0xba4] ss:$16 sps:$4 sm:$0xff]  }
 0x526   :  { %4235 = vst [vmem:[%s5856_s3] sm:$0x1] %v2136_v34  ;;  %v4793_v38 = vpop.f32.mrb[23].mxu1  ;;  %v5365_v34 = vld [vmem:[#allocation3 + $0xb88] ss:$16 sps:$4 sm:$0xff]   ;;  %v5373_v36 = vld [vmem:[#allocation3 + $0xbac] ss:$16 sps:$4 sm:$0xff]  }
 0x527   :  { %v5368_v38 = vld [vmem:[#allocation3 + $0xba0] ss:$16 sps:$4 sm:$0xff]  }
 0x52b   :  { %v2253_v16 = vpop.f32.mrb[24].mxu1 }
 0x52c   :  { %v2254_v41 = vadd.f32 %v2253_v16, %v2199_v39  ;;  %v2255_v42 = vpop.f32.mrb[25].mxu1  ;;  %v5371_v39 = vld [vmem:[#allocation3 + $0xba8] ss:$16 sps:$4 sm:$0xff]   ;;  %v5379_v16 = vld [vmem:[#allocation3 + $0xbcc] ss:$16 sps:$4 sm:$0xff]  }
 0x52d   :  { %v2256_v43 = vadd.f32 %v2255_v42, %v2203_v40  ;;  %v2257_v44 = vpop.f32.mrb[26].mxu1  ;;  %v5376_v40 = vld [vmem:[#allocation3 + $0xbc4] ss:$16 sps:$4 sm:$0xff]   ;;  %v5377_v42 = vld [vmem:[#allocation3 + $0xbc8] ss:$16 sps:$4 sm:$0xff]  }
 0x52e   :  { %v2301_v45 = vmax.f32 %v2254_v41, 0.0  ;;  %v2258_v46 = vpop.f32.mrb[27].mxu1  ;;  %v5374_v41 = vld [vmem:[#allocation3 + $0xbc0] ss:$16 sps:$4 sm:$0xff]   ;;  %v5385_v44 = vld [vmem:[#allocation3 + $0xbec] ss:$16 sps:$4 sm:$0xff]  }
 0x52f   :  { %v2302_v17 = vmax.f32 %v2256_v43, 0.0  ;;  %v5382_v43 = vld [vmem:[#allocation3 + $0xbe4] ss:$16 sps:$4 sm:$0xff]   ;;  %v5383_v46 = vld [vmem:[#allocation3 + $0xbe8] ss:$16 sps:$4 sm:$0xff]  }
 0x530   :  { %v2465_v31 = vpack.c.bf16 %v2301_v45, %v2301_v45  ;;  %v5380_v45 = vld [vmem:[#allocation3 + $0xbe0] ss:$16 sps:$4 sm:$0xff]  }
 0x531   :  { %v2466_v47 = vpack.c.bf16 %v2302_v17, %v2302_v17  ;;  %v5388_v17 = vld [vmem:[#allocation3 + $0xc04] ss:$16 sps:$4 sm:$0xff]  }
 0x533   :  { %3325 = vmatprep.mubr.bf16.mxu0 %v2466_v47  ;;  %3448 = vmatprep.mubr.bf16.mxu1 %v2466_v47  ;;  %v5804_v53 = vpop.f32.mrb[28].mxu1  ;;  %v5391_v47 = vld [vmem:[#allocation3 + $0xc0c] ss:$16 sps:$4 sm:$0xff]  }
 0x534   :  { %3326 = vmatmul.mubr.bf16.vlgmr.msra.gmra.mrb[16].mxu0 %v2465_v31  ;;  %3449 = vmatmul.mubr.bf16.vlgmr.msra.gmra.mrb[32].mxu1 %v2465_v31  ;;  %v2296_v54 = vpop.f32.mrb[29].mxu1  ;;  %v5397_v31 = vld [vmem:[#allocation3 + $0xc2c] ss:$16 sps:$4 sm:$0xff]  }
 0x535   :  { %3335 = vmatpush1.bf16.msra.mxu0 %v5314_v48  ;;  %3458 = vmatpush1.bf16.msra.mxu1 %v5317_v49  ;;  %v2297_v57 = vadd.f32 %v2296_v54, %v2211_v50  ;;  %v2298_v58 = vpop.f32.mrb[30].mxu1  ;;  %v5386_v48 = vld [vmem:[#allocation3 + $0xc00] ss:$16 sps:$4 sm:$0xff]   ;;  %v5389_v49 = vld [vmem:[#allocation3 + $0xc08] ss:$16 sps:$4 sm:$0xff]  }
 0x536   :  { %3336 = vmatprep.subr.bf16.mxu0 %v5322_v51  ;;  %3459 = vmatprep.subr.bf16.mxu1 %v5325_v52  ;;  %v2299_v61 = vpop.f32.mrb[31].mxu1  ;;  %v5394_v50 = vld [vmem:[#allocation3 + $0xc24] ss:$16 sps:$4 sm:$0xff]   ;;  %v2207_v51 = vrot.slane %v5793_v37, %v5736_v32  ;;  %v5392_v52 = vld [vmem:[#allocation3 + $0xc20] ss:$16 sps:$4 sm:$0xff]  }
 0x537   :  { %v2304_v62 = vmax.f32 %v2297_v57, 0.0  ;;  %v5395_v54 = vld [vmem:[#allocation3 + $0xc28] ss:$16 sps:$4 sm:$0xff]   ;;  %v5398_v58 = vld [vmem:[#allocation3 + $0xc40] ss:$16 sps:$4 sm:$0xff]  }
 0x538   :  { %v2295_v57 = vadd.f32 %v5804_v53, %v2207_v51  ;;  %v5409_v61 = vld [vmem:[#allocation3 + $0xc6c] ss:$16 sps:$4 sm:$0xff]   ;;  %v5404_v37 = vld [vmem:[#allocation3 + $0xc60] ss:$16 sps:$4 sm:$0xff]   ;;  %v5473_v51 = vld [vmem:[#allocation3 + $0xdc8] ss:$16 sps:$4 sm:$0xff]  }
 0x539   :  { %3337 = vmatpush1.bf16.msra.mxu0 %v5320_v55  ;;  %3460 = vmatpush1.bf16.msra.mxu1 %v5323_v56  ;;  %v2468_v28 = vpack.c.bf16 %v2304_v62, %v2304_v62  ;;  %v5400_v55 = vld [vmem:[#allocation3 + $0xc44] ss:$16 sps:$4 sm:$0xff]   ;;  %v5403_v56 = vld [vmem:[#allocation3 + $0xc4c] ss:$16 sps:$4 sm:$0xff]   ;;  %v5410_v53 = vld [vmem:[#allocation3 + $0xc80] ss:$16 sps:$4 sm:$0xff]  }
 0x53a   :  { %3338 = vmatprep.subr.bf16.mxu0 %v5328_v59  ;;  %3461 = vmatprep.subr.bf16.mxu1 %v5331_v60  ;;  %v5401_v59 = vld [vmem:[#allocation3 + $0xc48] ss:$16 sps:$4 sm:$0xff]   ;;  %v5406_v60 = vld [vmem:[#allocation3 + $0xc64] ss:$16 sps:$4 sm:$0xff]   ;;  %v2303_v62 = vmax.f32 %v2295_v57, 0.0 }
 0x53b   :  { %3366 = vmatprep.mubr.bf16.mxu0 %v2468_v28  ;;  %3489 = vmatprep.mubr.bf16.mxu1 %v2468_v28  ;;  %v5415_v28 = vld [vmem:[#allocation3 + $0xc8c] ss:$16 sps:$4 sm:$0xff]   ;;  %v5484_v57 = vld [vmem:[#allocation3 + $0xe04] ss:$16 sps:$4 sm:$0xff]  }
 0x53d   :  { %3339 = vmatpush1.bf16.msra.mxu0 %v5326_v63  ;;  %3462 = vmatpush1.bf16.msra.mxu1 %v5329_v1  ;;  %v5407_v63 = vld [vmem:[#allocation3 + $0xc68] ss:$16 sps:$4 sm:$0xff]   ;;  %v5412_v1 = vld [vmem:[#allocation3 + $0xc84] ss:$16 sps:$4 sm:$0xff]  }
 0x53e   :  { %3340 = vmatprep.subr.bf16.mxu0 %v5334_v2  ;;  %3463 = vmatprep.subr.bf16.mxu1 %v5337_v3  ;;  %v2467_v2 = vpack.c.bf16 %v2303_v62, %v2303_v62  ;;  %v5413_v3 = vld [vmem:[#allocation3 + $0xc88] ss:$16 sps:$4 sm:$0xff]   ;;  %v5493_v62 = vld [vmem:[#allocation3 + $0xe2c] ss:$16 sps:$4 sm:$0xff]  }
 0x541   :  { %3341 = vmatpush1.bf16.msra.mxu0 %v5332_v4  ;;  %3464 = vmatpush1.bf16.msra.mxu1 %v5335_v5  ;;  %v5418_v4 = vld [vmem:[#allocation3 + $0xca4] ss:$16 sps:$4 sm:$0xff]   ;;  %v5421_v5 = vld [vmem:[#allocation3 + $0xcac] ss:$16 sps:$4 sm:$0xff]  }
 0x542   :  { %3342 = vmatprep.subr.bf16.mxu0 %v5340_v6  ;;  %3465 = vmatprep.subr.bf16.mxu1 %v5343_v7  ;;  %v5416_v6 = vld [vmem:[#allocation3 + $0xca0] ss:$16 sps:$4 sm:$0xff]   ;;  %v5419_v7 = vld [vmem:[#allocation3 + $0xca8] ss:$16 sps:$4 sm:$0xff]  }
 0x545   :  { %3343 = vmatpush1.bf16.msra.mxu0 %v5338_v8  ;;  %3466 = vmatpush1.bf16.msra.mxu1 %v5341_v9  ;;  %v5424_v8 = vld [vmem:[#allocation3 + $0xcc4] ss:$16 sps:$4 sm:$0xff]   ;;  %v5427_v9 = vld [vmem:[#allocation3 + $0xccc] ss:$16 sps:$4 sm:$0xff]  }
 0x546   :  { %3344 = vmatprep.subr.bf16.mxu0 %v5346_v10  ;;  %3467 = vmatprep.subr.bf16.mxu1 %v5349_v11  ;;  %v5422_v10 = vld [vmem:[#allocation3 + $0xcc0] ss:$16 sps:$4 sm:$0xff]   ;;  %v5425_v11 = vld [vmem:[#allocation3 + $0xcc8] ss:$16 sps:$4 sm:$0xff]  }
 0x549   :  { %3345 = vmatpush1.bf16.msra.mxu0 %v5344_v12  ;;  %3468 = vmatpush1.bf16.msra.mxu1 %v5347_v13  ;;  %v5430_v12 = vld [vmem:[#allocation3 + $0xce4] ss:$16 sps:$4 sm:$0xff]   ;;  %v5433_v13 = vld [vmem:[#allocation3 + $0xcec] ss:$16 sps:$4 sm:$0xff]  }
 0x54a   :  { %3346 = vmatprep.subr.bf16.mxu0 %v5352_v22  ;;  %3469 = vmatprep.subr.bf16.mxu1 %v5355_v15  ;;  %v5428_v22 = vld [vmem:[#allocation3 + $0xce0] ss:$16 sps:$4 sm:$0xff]   ;;  %v5431_v15 = vld [vmem:[#allocation3 + $0xce8] ss:$16 sps:$4 sm:$0xff]  }
 0x54d   :  { %3347 = vmatpush1.bf16.msra.mxu0 %v5350_v20  ;;  %3470 = vmatpush1.bf16.msra.mxu1 %v5353_v23  ;;  %v5436_v20 = vld [vmem:[#allocation3 + $0xd04] ss:$16 sps:$4 sm:$0xff]   ;;  %v5439_v23 = vld [vmem:[#allocation3 + $0xd0c] ss:$16 sps:$4 sm:$0xff]  }
 0x54e   :  { %3348 = vmatprep.subr.bf16.mxu0 %v5358_v24  ;;  %3471 = vmatprep.subr.bf16.mxu1 %v5361_v25  ;;  %v5434_v24 = vld [vmem:[#allocation3 + $0xd00] ss:$16 sps:$4 sm:$0xff]   ;;  %v5442_v25 = vld [vmem:[#allocation3 + $0xd24] ss:$16 sps:$4 sm:$0xff]  }
 0x551   :  { %3349 = vmatpush1.bf16.msra.mxu0 %v5356_v26  ;;  %3472 = vmatpush1.bf16.msra.mxu1 %v5359_v27  ;;  %v5445_v26 = vld [vmem:[#allocation3 + $0xd2c] ss:$16 sps:$4 sm:$0xff]   ;;  %v5440_v27 = vld [vmem:[#allocation3 + $0xd20] ss:$16 sps:$4 sm:$0xff]  }
 0x552   :  { %3350 = vmatprep.subr.bf16.mxu0 %v5364_v29  ;;  %3473 = vmatprep.subr.bf16.mxu1 %v5367_v30  ;;  %v5443_v29 = vld [vmem:[#allocation3 + $0xd28] ss:$16 sps:$4 sm:$0xff]   ;;  %v5448_v30 = vld [vmem:[#allocation3 + $0xd44] ss:$16 sps:$4 sm:$0xff]  }
 0x555   :  { %3351 = vmatpush1.bf16.msra.mxu0 %v5362_v33  ;;  %3474 = vmatpush1.bf16.msra.mxu1 %v5365_v34  ;;  %v5451_v33 = vld [vmem:[#allocation3 + $0xd4c] ss:$16 sps:$4 sm:$0xff]   ;;  %v5446_v34 = vld [vmem:[#allocation3 + $0xd40] ss:$16 sps:$4 sm:$0xff]  }
 0x556   :  { %3352 = vmatprep.subr.bf16.mxu0 %v5370_v35  ;;  %3475 = vmatprep.subr.bf16.mxu1 %v5373_v36  ;;  %v5449_v35 = vld [vmem:[#allocation3 + $0xd48] ss:$16 sps:$4 sm:$0xff]   ;;  %v5454_v36 = vld [vmem:[#allocation3 + $0xd64] ss:$16 sps:$4 sm:$0xff]  }
 0x559   :  { %3353 = vmatpush1.bf16.msra.mxu0 %v5368_v38  ;;  %3476 = vmatpush1.bf16.msra.mxu1 %v5371_v39  ;;  %v5457_v38 = vld [vmem:[#allocation3 + $0xd6c] ss:$16 sps:$4 sm:$0xff]   ;;  %v5452_v39 = vld [vmem:[#allocation3 + $0xd60] ss:$16 sps:$4 sm:$0xff]  }
 0x55a   :  { %3354 = vmatprep.subr.bf16.mxu0 %v5376_v40  ;;  %3477 = vmatprep.subr.bf16.mxu1 %v5379_v16  ;;  %v5455_v40 = vld [vmem:[#allocation3 + $0xd68] ss:$16 sps:$4 sm:$0xff]   ;;  %v5811_v16 = vld [vmem:[#allocation2 + $0x4] sm:$0x1] }
 0x55d   :  { %3355 = vmatpush1.bf16.msra.mxu0 %v5374_v41  ;;  %3478 = vmatpush1.bf16.msra.mxu1 %v5377_v42  ;;  %v2469_v41 = vpack.c.bf16 %v5811_v16, %v5811_v16  ;;  %v5458_v42 = vld [vmem:[#allocation3 + $0xd80] ss:$16 sps:$4 sm:$0xff]  }
 0x55e   :  { %3356 = vmatprep.subr.bf16.mxu0 %v5382_v43  ;;  %3479 = vmatprep.subr.bf16.mxu1 %v5385_v44  ;;  %v5460_v43 = vld [vmem:[#allocation3 + $0xd84] ss:$16 sps:$4 sm:$0xff]   ;;  %v5461_v44 = vld [vmem:[#allocation3 + $0xd88] ss:$16 sps:$4 sm:$0xff]  }
 0x561   :  { %3357 = vmatpush1.bf16.msra.mxu0 %v5380_v45  ;;  %3480 = vmatpush1.bf16.msra.mxu1 %v5383_v46  ;;  %v5463_v45 = vld [vmem:[#allocation3 + $0xd8c] ss:$16 sps:$4 sm:$0xff]   ;;  %v5466_v46 = vld [vmem:[#allocation3 + $0xda4] ss:$16 sps:$4 sm:$0xff]  }
 0x562   :  { %3358 = vmatprep.subr.bf16.mxu0 %v5388_v17  ;;  %3481 = vmatprep.subr.bf16.mxu1 %v5391_v47  ;;  %v5469_v17 = vld [vmem:[#allocation3 + $0xdac] ss:$16 sps:$4 sm:$0xff]   ;;  %v5464_v47 = vld [vmem:[#allocation3 + $0xda0] ss:$16 sps:$4 sm:$0xff]  }
 0x565   :  { %3359 = vmatpush1.bf16.msra.mxu0 %v5386_v48  ;;  %3482 = vmatpush1.bf16.msra.mxu1 %v5389_v49  ;;  %v5467_v48 = vld [vmem:[#allocation3 + $0xda8] ss:$16 sps:$4 sm:$0xff]   ;;  %v5472_v49 = vld [vmem:[#allocation3 + $0xdc4] ss:$16 sps:$4 sm:$0xff]  }
 0x566   :  { %3360 = vmatprep.subr.bf16.mxu0 %v5394_v50  ;;  %3483 = vmatprep.subr.bf16.mxu1 %v5397_v31  ;;  %v5475_v50 = vld [vmem:[#allocation3 + $0xdcc] ss:$16 sps:$4 sm:$0xff]   ;;  %v5470_v31 = vld [vmem:[#allocation3 + $0xdc0] ss:$16 sps:$4 sm:$0xff]  }
 0x569   :  { %3361 = vmatpush1.bf16.msra.mxu0 %v5392_v52  ;;  %3484 = vmatpush1.bf16.msra.mxu1 %v5395_v54  ;;  %v5478_v52 = vld [vmem:[#allocation3 + $0xde4] ss:$16 sps:$4 sm:$0xff]   ;;  %v5481_v54 = vld [vmem:[#allocation3 + $0xdec] ss:$16 sps:$4 sm:$0xff]  }
 0x56a   :  { %3362 = vmatprep.subr.bf16.mxu0 %v5400_v55  ;;  %3485 = vmatprep.subr.bf16.mxu1 %v5403_v56  ;;  %v5476_v55 = vld [vmem:[#allocation3 + $0xde0] ss:$16 sps:$4 sm:$0xff]   ;;  %v5479_v56 = vld [vmem:[#allocation3 + $0xde8] ss:$16 sps:$4 sm:$0xff]  }
 0x56d   :  { %3363 = vmatpush1.bf16.msra.mxu0 %v5398_v58  ;;  %3486 = vmatpush1.bf16.msra.mxu1 %v5401_v59  ;;  %v5487_v58 = vld [vmem:[#allocation3 + $0xe0c] ss:$16 sps:$4 sm:$0xff]   ;;  %v5482_v59 = vld [vmem:[#allocation3 + $0xe00] ss:$16 sps:$4 sm:$0xff]  }
 0x56e   :  { %3364 = vmatprep.subr.bf16.mxu0 %v5406_v60  ;;  %3487 = vmatprep.subr.bf16.mxu1 %v5409_v61  ;;  %v5485_v60 = vld [vmem:[#allocation3 + $0xe08] ss:$16 sps:$4 sm:$0xff]   ;;  %v5490_v61 = vld [vmem:[#allocation3 + $0xe24] ss:$16 sps:$4 sm:$0xff]  }
 0x571   :  { %3365 = vmatpush1.bf16.msra.mxu0 %v5404_v37  ;;  %3488 = vmatpush1.bf16.msra.mxu1 %v5407_v63  ;;  %v5488_v37 = vld [vmem:[#allocation3 + $0xe20] ss:$16 sps:$4 sm:$0xff]   ;;  %v5491_v63 = vld [vmem:[#allocation3 + $0xe28] ss:$16 sps:$4 sm:$0xff]  }
 0x572   :  { %3375 = vmatprep.subr.bf16.mxu0 %v5412_v1  ;;  %3498 = vmatprep.subr.bf16.mxu1 %v5415_v28  ;;  %v5496_v1 = vld [vmem:[#allocation3 + $0xe44] ss:$16 sps:$4 sm:$0xff]   ;;  %v5499_v28 = vld [vmem:[#allocation3 + $0xe4c] ss:$16 sps:$4 sm:$0xff]  }
 0x574   :  { %3367 = vmatmul.mubr.bf16.vlgmr.msra.gmra.mrb[16].mxu0 %v2467_v2  ;;  %3490 = vmatmul.mubr.bf16.vlgmr.msra.gmra.mrb[36].mxu1 %v2467_v2  ;;  %v5494_v2 = vld [vmem:[#allocation3 + $0xe40] ss:$16 sps:$4 sm:$0xff]  }
 0x575   :  { %3376 = vmatpush1.bf16.msra.mxu0 %v5410_v53  ;;  %3499 = vmatpush1.bf16.msra.mxu1 %v5413_v3  ;;  %v5497_v53 = vld [vmem:[#allocation3 + $0xe48] ss:$16 sps:$4 sm:$0xff]   ;;  %v5502_v3 = vld [vmem:[#allocation3 + $0xe64] ss:$16 sps:$4 sm:$0xff]  }
 0x576   :  { %3377 = vmatprep.subr.bf16.mxu0 %v5418_v4  ;;  %3500 = vmatprep.subr.bf16.mxu1 %v5421_v5  ;;  %v5505_v4 = vld [vmem:[#allocation3 + $0xe6c] ss:$16 sps:$4 sm:$0xff]   ;;  %v5500_v5 = vld [vmem:[#allocation3 + $0xe60] ss:$16 sps:$4 sm:$0xff]  }
 0x577   :  { %3407 = vmatprep.mubr.bf16.mxu0 %v5657_v0  ;;  %3530 = vmatprep.mubr.bf16.mxu1 %v5657_v0  ;;  %v5437_v0 = vld [vmem:[#allocation3 + $0xd08] ss:$16 sps:$4 sm:$0xff]  }
 0x579   :  { %3378 = vmatpush1.bf16.msra.mxu0 %v5416_v6  ;;  %3501 = vmatpush1.bf16.msra.mxu1 %v5419_v7  ;;  %v5503_v6 = vld [vmem:[#allocation3 + $0xe68] ss:$16 sps:$4 sm:$0xff]   ;;  %v5508_v7 = vld [vmem:[#allocation3 + $0xe84] ss:$16 sps:$4 sm:$0xff]  }
 0x57a   :  { %3379 = vmatprep.subr.bf16.mxu0 %v5424_v8  ;;  %3502 = vmatprep.subr.bf16.mxu1 %v5427_v9  ;;  %v5511_v8 = vld [vmem:[#allocation3 + $0xe8c] ss:$16 sps:$4 sm:$0xff]   ;;  %v5506_v9 = vld [vmem:[#allocation3 + $0xe80] ss:$16 sps:$4 sm:$0xff]  }
 0x57d   :  { %3380 = vmatpush1.bf16.msra.mxu0 %v5422_v10  ;;  %3503 = vmatpush1.bf16.msra.mxu1 %v5425_v11  ;;  %v5509_v10 = vld [vmem:[#allocation3 + $0xe88] ss:$16 sps:$4 sm:$0xff]   ;;  %v5514_v11 = vld [vmem:[#allocation3 + $0xea4] ss:$16 sps:$4 sm:$0xff]  }
 0x57e   :  { %3381 = vmatprep.subr.bf16.mxu0 %v5430_v12  ;;  %3504 = vmatprep.subr.bf16.mxu1 %v5433_v13  ;;  %v5517_v12 = vld [vmem:[#allocation3 + $0xeac] ss:$16 sps:$4 sm:$0xff]   ;;  %v5512_v13 = vld [vmem:[#allocation3 + $0xea0] ss:$16 sps:$4 sm:$0xff]  }
 0x581   :  { %3382 = vmatpush1.bf16.msra.mxu0 %v5428_v22  ;;  %3505 = vmatpush1.bf16.msra.mxu1 %v5431_v15  ;;  %v5515_v22 = vld [vmem:[#allocation3 + $0xea8] ss:$16 sps:$4 sm:$0xff]   ;;  %v5520_v15 = vld [vmem:[#allocation3 + $0xec4] ss:$16 sps:$4 sm:$0xff]  }
 0x582   :  { %3383 = vmatprep.subr.bf16.mxu0 %v5436_v20  ;;  %3506 = vmatprep.subr.bf16.mxu1 %v5439_v23  ;;  %v5523_v20 = vld [vmem:[#allocation3 + $0xecc] ss:$16 sps:$4 sm:$0xff]   ;;  %v5518_v23 = vld [vmem:[#allocation3 + $0xec0] ss:$16 sps:$4 sm:$0xff]  }
 0x585   :  { %3384 = vmatpush1.bf16.msra.mxu0 %v5434_v24  ;;  %3507 = vmatpush1.bf16.msra.mxu1 %v5437_v0  ;;  %v5521_v24 = vld [vmem:[#allocation3 + $0xec8] ss:$16 sps:$4 sm:$0xff]   ;;  %v5526_v0 = vld [vmem:[#allocation3 + $0xee4] ss:$16 sps:$4 sm:$0xff]  }
 0x586   :  { %3385 = vmatprep.subr.bf16.mxu0 %v5442_v25  ;;  %3508 = vmatprep.subr.bf16.mxu1 %v5445_v26  ;;  %v5529_v25 = vld [vmem:[#allocation3 + $0xeec] ss:$16 sps:$4 sm:$0xff]   ;;  %v5524_v26 = vld [vmem:[#allocation3 + $0xee0] ss:$16 sps:$4 sm:$0xff]  }
 0x589   :  { %3386 = vmatpush1.bf16.msra.mxu0 %v5440_v27  ;;  %3509 = vmatpush1.bf16.msra.mxu1 %v5443_v29  ;;  %v5527_v27 = vld [vmem:[#allocation3 + $0xee8] ss:$16 sps:$4 sm:$0xff]  }
 0x58a   :  { %3387 = vmatprep.subr.bf16.mxu0 %v5448_v30  ;;  %3510 = vmatprep.subr.bf16.mxu1 %v5451_v33  ;;  %v5532_v30 = vld [vmem:[#allocation3 + $0xf04] ss:$16 sps:$4 sm:$0xff]   ;;  %v5535_v33 = vld [vmem:[#allocation3 + $0xf0c] ss:$16 sps:$4 sm:$0xff]  }
 0x58d   :  { %3388 = vmatpush1.bf16.msra.mxu0 %v5446_v34  ;;  %3511 = vmatpush1.bf16.msra.mxu1 %v5449_v35  ;;  %v5530_v35 = vld [vmem:[#allocation3 + $0xf00] ss:$16 sps:$4 sm:$0xff]  }
 0x58e   :  { %3389 = vmatprep.subr.bf16.mxu0 %v5454_v36  ;;  %3512 = vmatprep.subr.bf16.mxu1 %v5457_v38  ;;  %v5533_v36 = vld [vmem:[#allocation3 + $0xf08] ss:$16 sps:$4 sm:$0xff]  }
 0x591   :  { %3390 = vmatpush1.bf16.msra.mxu0 %v5452_v39  ;;  %3513 = vmatpush1.bf16.msra.mxu1 %v5455_v40  ;;  %v5536_v39 = vld [vmem:[#allocation3 + $0xf20] ss:$16 sps:$4 sm:$0xff]   ;;  %v5538_v40 = vld [vmem:[#allocation3 + $0xf24] ss:$16 sps:$4 sm:$0xff]  }
 0x592   :  { %3967 = vmatprep.subr.bf16.mxu0 %v5460_v43  ;;  %4008 = vmatprep.subr.bf16.mxu1 %v5463_v45  ;;  %v5541_v43 = vld [vmem:[#allocation3 + $0xf2c] ss:$16 sps:$4 sm:$0xff]  }
 0x593   :  { %v5547_v45 = vld [vmem:[#allocation3 + $0xf4c] ss:$16 sps:$4 sm:$0xff]  }
 0x594   :  { %3408 = vmatmul.mubr.bf16.vlgmr.msra.gmra.mrb[16].mxu0 %v2469_v41  ;;  %3531 = vmatmul.mubr.bf16.vlgmr.msra.gmra.mrb[40].mxu1 %v2469_v41 }
 0x595   :  { %3968 = vmatpush1.bf16.msra.mxu0 %v5458_v42  ;;  %4009 = vmatpush1.bf16.msra.mxu1 %v5461_v44  ;;  %v5539_v42 = vld [vmem:[#allocation3 + $0xf28] ss:$16 sps:$4 sm:$0xff]   ;;  %v5544_v44 = vld [vmem:[#allocation3 + $0xf44] ss:$16 sps:$4 sm:$0xff]  }
 0x596   :  { %3969 = vmatprep.subr.bf16.mxu0 %v5466_v46  ;;  %4010 = vmatprep.subr.bf16.mxu1 %v5469_v17  ;;  %v5815_v46 = vld [vmem:[#allocation2 + $0x5] sm:$0x1]  ;;  %v5542_v17 = vld [vmem:[#allocation3 + $0xf40] ss:$16 sps:$4 sm:$0xff]  }
 0x599   :  { %3970 = vmatpush1.bf16.msra.mxu0 %v5464_v47  ;;  %4011 = vmatpush1.bf16.msra.mxu1 %v5467_v48  ;;  %v5545_v47 = vld [vmem:[#allocation3 + $0xf48] ss:$16 sps:$4 sm:$0xff]   ;;  %v3623_v48 = vpack.c.bf16 %v5815_v46, %v5815_v46 }
 0x59a   :  { %3971 = vmatprep.subr.bf16.mxu0 %v5472_v49  ;;  %4012 = vmatprep.subr.bf16.mxu1 %v5475_v50  ;;  %v5550_v49 = vld [vmem:[#allocation3 + $0xf64] ss:$16 sps:$4 sm:$0xff]   ;;  %v5553_v50 = vld [vmem:[#allocation3 + $0xf6c] ss:$16 sps:$4 sm:$0xff]  }
 0x59b   :  { %3999 = vmatprep.mubr.bf16.mxu0 %v3623_v48  ;;  %4040 = vmatprep.mubr.bf16.mxu1 %v3623_v48 }
 0x59d   :  { %3972 = vmatpush1.bf16.msra.mxu0 %v5470_v31  ;;  %4013 = vmatpush1.bf16.msra.mxu1 %v5473_v51  ;;  %v5548_v31 = vld [vmem:[#allocation3 + $0xf60] ss:$16 sps:$4 sm:$0xff]   ;;  %v5551_v51 = vld [vmem:[#allocation3 + $0xf68] ss:$16 sps:$4 sm:$0xff]  }
 0x59e   :  { %3973 = vmatprep.subr.bf16.mxu0 %v5478_v52  ;;  %4014 = vmatprep.subr.bf16.mxu1 %v5481_v54  ;;  %v2471_v52 = vld [vmem:[#allocation5 + $0x21] ss:$8 sm:$0xf] }
 0x59f   :  { %v3284_v54 = vrot.slane %v2471_v52, %v5736_v32 }
 0x5a1   :  { %3974 = vmatpush1.bf16.msra.mxu0 %v5476_v55  ;;  %4015 = vmatpush1.bf16.msra.mxu1 %v5479_v56  ;;  %v3288_v55 = vrot.slane %v2471_v52, %v5727_v21 }
 0x5a2   :  { %3975 = vmatprep.subr.bf16.mxu0 %v5484_v57  ;;  %4016 = vmatprep.subr.bf16.mxu1 %v5487_v58 }
 0x5a5   :  { %3976 = vmatpush1.bf16.msra.mxu0 %v5482_v59  ;;  %4017 = vmatpush1.bf16.msra.mxu1 %v5485_v60 }
 0x5a6   :  { %3977 = vmatprep.subr.bf16.mxu0 %v5490_v61  ;;  %4018 = vmatprep.subr.bf16.mxu1 %v5493_v62 }
 0x5a9   :  { %3978 = vmatpush1.bf16.msra.mxu0 %v5488_v37  ;;  %4019 = vmatpush1.bf16.msra.mxu1 %v5491_v63  ;;  %v3276_v63 = vrot.slane %v2471_v52, %v5719_v18 }
 0x5aa   :  { %3979 = vmatprep.subr.bf16.mxu0 %v5496_v1  ;;  %4020 = vmatprep.subr.bf16.mxu1 %v5499_v28 }
 0x5ad   :  { %3980 = vmatpush1.bf16.msra.mxu0 %v5494_v2  ;;  %4021 = vmatpush1.bf16.msra.mxu1 %v5497_v53  ;;  %v3280_v2 = vrot.slane %v2471_v52, %v5722_v19 }
 0x5ae   :  { %3981 = vmatprep.subr.bf16.mxu0 %v5502_v3  ;;  %4022 = vmatprep.subr.bf16.mxu1 %v5505_v4 }
 0x5b1   :  { %3982 = vmatpush1.bf16.msra.mxu0 %v5500_v5  ;;  %4023 = vmatpush1.bf16.msra.mxu1 %v5503_v6 }
 0x5b2   :  { %3983 = vmatprep.subr.bf16.mxu0 %v5508_v7  ;;  %4024 = vmatprep.subr.bf16.mxu1 %v5511_v8 }
 0x5b5   :  { %3984 = vmatpush1.bf16.msra.mxu0 %v5506_v9  ;;  %4025 = vmatpush1.bf16.msra.mxu1 %v5509_v10 }
 0x5b6   :  { %3985 = vmatprep.subr.bf16.mxu0 %v5514_v11  ;;  %4026 = vmatprep.subr.bf16.mxu1 %v5517_v12 }
 0x5b9   :  { %3986 = vmatpush1.bf16.msra.mxu0 %v5512_v13  ;;  %4027 = vmatpush1.bf16.msra.mxu1 %v5515_v22 }
 0x5ba   :  { %3987 = vmatprep.subr.bf16.mxu0 %v5520_v15  ;;  %4028 = vmatprep.subr.bf16.mxu1 %v5523_v20 }
 0x5bd   :  { %3988 = vmatpush1.bf16.msra.mxu0 %v5518_v23  ;;  %4029 = vmatpush1.bf16.msra.mxu1 %v5521_v24 }
 0x5be   :  { %3989 = vmatprep.subr.bf16.mxu0 %v5526_v0  ;;  %4030 = vmatprep.subr.bf16.mxu1 %v5529_v25 }
 0x5c1   :  { %3990 = vmatpush1.bf16.msra.mxu0 %v5524_v26  ;;  %4031 = vmatpush1.bf16.msra.mxu1 %v5527_v27 }
 0x5c2   :  { %3991 = vmatprep.subr.bf16.mxu0 %v5532_v30  ;;  %4032 = vmatprep.subr.bf16.mxu1 %v5535_v33 }
 0x5c5   :  { %3992 = vmatpush1.bf16.msra.mxu0 %v5530_v35  ;;  %4033 = vmatpush1.bf16.msra.mxu1 %v5533_v36  ;;  %v5554_v36 = vld [vmem:[#allocation3 + $0xf80] ss:$16 sps:$4 sm:$0xff]  }
 0x5c6   :  { %3993 = vmatprep.subr.bf16.mxu0 %v5538_v40  ;;  %4034 = vmatprep.subr.bf16.mxu1 %v5541_v43  ;;  %v5558_v40 = vld [vmem:[#allocation3 + $0x1000] ss:$16 sps:$4 sm:$0xff]  }
 0x5c7   :  { %v3625_v43 = vld [vmem:[#allocation5 + $0x22] ss:$8 sm:$0xf] }
 0x5c9   :  { %3994 = vmatpush1.bf16.msra.mxu0 %v5536_v39  ;;  %4035 = vmatpush1.bf16.msra.mxu1 %v5539_v42  ;;  %v5557_v39 = vld [vmem:[#allocation3 + $0xfe0] ss:$16 sps:$4 sm:$0xff]   ;;  %v5560_v42 = vld [vmem:[#allocation3 + $0xf84] ss:$16 sps:$4 sm:$0xff]  }
 0x5ca   :  { %3995 = vmatprep.subr.bf16.mxu0 %v5544_v44  ;;  %4036 = vmatprep.subr.bf16.mxu1 %v5547_v45  ;;  %v3950_v44 = vrot.slane %v3625_v43, %v5719_v18 }
 0x5cd   :  { %3996 = vmatpush1.bf16.msra.mxu0 %v5542_v17  ;;  %4037 = vmatpush1.bf16.msra.mxu1 %v5545_v47  ;;  %v3954_v47 = vrot.slane %v3625_v43, %v5722_v19  ;;  %v3958_v19 = vrot.slane %v3625_v43, %v5736_v32  ;;  %v5562_v32 = vld [vmem:[#allocation3 + $0xfc4] ss:$16 sps:$4 sm:$0xff]  }
 0x5ce   :  { %3997 = vmatprep.subr.bf16.mxu0 %v5550_v49  ;;  %4038 = vmatprep.subr.bf16.mxu1 %v5553_v50 }
 0x5d1   :  { %3998 = vmatpush1.bf16.msra.mxu0 %v5548_v31  ;;  %4039 = vmatpush1.bf16.msra.mxu1 %v5551_v51 }
 0x5d2   :  { %4794 = vmatprep.subr.bf16.mxu0 %v5658_v14  ;;  %4810 = vmatprep.subr.bf16.mxu1 %v5658_v14 }
 0x607   :  { %v3450_v29 = vpop.f32.mrb[32].mxu1 }
 0x608   :  { %v3452_v34 = vpop.f32.mrb[33].mxu1  ;;  %v3451_v56 = vadd.f32 %v3450_v29, %v3284_v54 }
 0x609   :  { %v3454_v38 = vpop.f32.mrb[34].mxu1  ;;  %v3453_v57 = vadd.f32 %v3452_v34, %v3288_v55 }
 0x60a   :  { %v3455_v41 = vpop.f32.mrb[35].mxu1  ;;  %v5556_v38 = vld [vmem:[#allocation3 + $0xfc0] ss:$16 sps:$4 sm:$0xff]  }
 0x60b   :  { %v5559_v41 = vld [vmem:[#allocation3 + $0x1020] ss:$16 sps:$4 sm:$0xff]  }
 0x647   :  { %v3491_v58 = vpop.f32.mrb[36].mxu1 }
 0x648   :  { %v3492_v59 = vadd.f32 %v3491_v58, %v3451_v56  ;;  %v3493_v60 = vpop.f32.mrb[37].mxu1 }
 0x649   :  { %v3494_v61 = vadd.f32 %v3493_v60, %v3453_v57  ;;  %v3495_v62 = vpop.f32.mrb[38].mxu1  ;;  %v3962_v60 = vrot.slane %v3625_v43, %v5727_v21  ;;  %v5561_v21 = vld [vmem:[#allocation3 + $0xfa4] ss:$16 sps:$4 sm:$0xff]  }
 0x64a   :  { %v3496_v37 = vpop.f32.mrb[39].mxu1 }
 0x667   :  { %v3409_v1 = vpop.f32.mrb[16].mxu0  ;;  %v3532_v28 = vpop.f32.mrb[40].mxu1 }
 0x668   :  { %v4822_v53 = vadd.f32 %v3409_v1, %v3276_v63  ;;  %v3533_v3 = vadd.f32 %v3532_v28, %v3492_v59  ;;  %v3411_v4 = vpop.f32.mrb[17].mxu0  ;;  %v3534_v5 = vpop.f32.mrb[41].mxu1 }
 0x669   :  { %v3535_v6 = vadd.f32 %v3534_v5, %v3494_v61  ;;  %v3413_v7 = vpop.f32.mrb[18].mxu0  ;;  %v3536_v8 = vpop.f32.mrb[42].mxu1  ;;  %v4823_v12 = vadd.f32 %v3411_v4, %v3280_v2 }
 0x66a   :  { %v4667_v9 = vmul.f32 -1.442695, %v4822_v53  ;;  %v3414_v10 = vpop.f32.mrb[19].mxu0  ;;  %v3537_v11 = vpop.f32.mrb[43].mxu1  ;;  %v4081_v8 = vld [vmem:[#allocation5 + $0x23] ss:$0 sm:$0xff] }
 0x66b   :  { %v4668_v13 = vmul.f32 -1.442695, %v4823_v12 }
 0x66c   :  { %5583 = vpow2.f32 %v4667_v9 }
 0x66d   :  { %5585 = vpow2.f32 %v4668_v13 }
 0x676   :  { %v5584_v22 = vpop.eup %5583 }
 0x677   :  { %v3542_v15 = vadd.f32 1.0, %v5584_v22  ;;  %v5586_v20 = vpop.eup %5585 }
 0x678   :  { %v3548_v23 = vadd.f32 1.0, %v5586_v20 }
 0x679   :  { %5587 = vrcp.f32 %v3542_v15  ;;  %v4169_v15 = vld [vmem:[#allocation5 + $0x2b] ss:$0 sm:$0xff] }
 0x67a   :  { %5589 = vrcp.f32 %v3548_v23 }
 0x683   :  { %v5588_v24 = vpop.eup %5587 }
 0x684   :  { %v3551_v0 = vmul.f32 %v5588_v24, %v3535_v6  ;;  %v5590_v26 = vpop.eup %5589 }
 0x685   :  { %v3554_v27 = vsub.f32 1.0, %v5590_v26  ;;  %v3556_v33 = vmul.f32 %v5590_v26, %v5811_v16  ;;  %v5555_v16 = vld [vmem:[#allocation3 + $0xfa0] ss:$16 sps:$4 sm:$0xff]  }
 0x686   :  { %v3552_v25 = vadd.f32 %v3551_v0, %v3533_v3 }
 0x688   :  { %5591 = vtanh.f32 %v3552_v25 }
 0x692   :  { %v5592_v29 = vpop.eup %5591 }
 0x693   :  { %v3555_v30 = vmul.f32 %v5592_v29, %v3554_v27 }
 0x695   :  { %v3557_v34 = vadd.f32 %v3556_v33, %v3555_v30 }
 0x697   :  { %v3622_v35 = vpack.c.bf16 %v3557_v34, %v3557_v34  ;;  %4233 = vst [vmem:[#allocation2 + $0x4] sm:$0x1] %v3557_v34  ;;  %4239 = vst [vmem:[%s5856_s3 + $0x4] sm:$0x1] %v3557_v34 }
 0x699   :  { %4000 = vmatmul.mubr.bf16.vlgmr.msra.gmra.mrb[20].mxu0 %v3622_v35  ;;  %4041 = vmatmul.mubr.bf16.vlgmr.msra.gmra.mrb[44].mxu1 %v3622_v35 }
 0x69a   :  { %4806 = vmatprep.mubr.msk.bf16.mxu0 %vm5659_vm1, %v5658_v14  ;;  %4816 = vmatprep.mubr.msk.bf16.mxu1 %vm5659_vm1, %v5658_v14 }
 0x69b   :  { %4795 = vmatpush3.bf16.msra.mxu0 %v5554_v36  ;;  %4811 = vmatpush3.bf16.msra.mxu1 %v5560_v42 }
 0x69c   :  { %4796 = vmatprep.subr.bf16.mxu0 %v5658_v14  ;;  %4812 = vmatprep.subr.bf16.mxu1 %v5658_v14 }
 0x69f   :  { %4797 = vmatpush3.bf16.msra.mxu0 %v5555_v16  ;;  %4813 = vmatpush3.bf16.msra.mxu1 %v5561_v21 }
 0x6a0   :  { %4798 = vmatprep.subr.bf16.mxu0 %v5658_v14  ;;  %4814 = vmatprep.subr.bf16.mxu1 %v5658_v14 }
 0x6a3   :  { %4799 = vmatpush3.bf16.msra.mxu0 %v5556_v38  ;;  %4815 = vmatpush3.bf16.msra.mxu1 %v5562_v32 }
 0x6a4   :  { %4800 = vmatprep.subr.bf16.mxu0 %v5658_v14 }
 0x6a7   :  { %4801 = vmatpush3.bf16.msra.mxu0 %v5557_v39 }
 0x6a8   :  { %4802 = vmatprep.subr.bf16.mxu0 %v5658_v14 }
 0x6ab   :  { %4803 = vmatpush3.bf16.msra.mxu0 %v5558_v40 }
 0x6ac   :  { %4804 = vmatprep.subr.bf16.mxu0 %v5658_v14 }
 0x6af   :  { %4805 = vmatpush3.bf16.msra.mxu0 %v5559_v41 }
 0x76c   :  { %v4001_v45 = vpop.f32.mrb[20].mxu0  ;;  %v4042_v17 = vpop.f32.mrb[44].mxu1 }
 0x76d   :  { %v4002_v48 = vadd.f32 %v4001_v45, %v3950_v44  ;;  %v4003_v49 = vpop.f32.mrb[21].mxu0  ;;  %v4044_v50 = vpop.f32.mrb[45].mxu1  ;;  %v4043_v63 = vadd.f32 %v4042_v17, %v3958_v19 }
 0x76e   :  { %v4005_v31 = vpop.f32.mrb[22].mxu0  ;;  %v4046_v51 = vpop.f32.mrb[46].mxu1  ;;  %v4004_v56 = vadd.f32 %v4003_v49, %v3954_v47  ;;  %v4045_v62 = vadd.f32 %v4044_v50, %v3962_v60 }
 0x76f   :  { %v4733_v52 = vmul.f32 -1.442695, %v4002_v48  ;;  %v4006_v54 = vpop.f32.mrb[23].mxu0  ;;  %v4047_v55 = vpop.f32.mrb[47].mxu1 }
 0x770   :  { %v4734_v57 = vmul.f32 -1.442695, %v4004_v56 }
 0x771   :  { %5593 = vpow2.f32 %v4733_v52 }
 0x772   :  { %5595 = vpow2.f32 %v4734_v57 }
 0x77b   :  { %v5594_v58 = vpop.eup %5593 }
 0x77c   :  { %v4052_v59 = vadd.f32 1.0, %v5594_v58  ;;  %v5596_v18 = vpop.eup %5595 }
 0x77d   :  { %v4058_v61 = vadd.f32 1.0, %v5596_v18 }
 0x77e   :  { %5597 = vrcp.f32 %v4052_v59 }
 0x77f   :  { %5599 = vrcp.f32 %v4058_v61 }
 0x788   :  { %v5598_v37 = vpop.eup %5597 }
 0x789   :  { %v4061_v1 = vmul.f32 %v5598_v37, %v4045_v62  ;;  %v5600_v2 = vpop.eup %5599 }
 0x78a   :  { %v4064_v53 = vsub.f32 1.0, %v5600_v2  ;;  %v4066_v4 = vmul.f32 %v5600_v2, %v5815_v46 }
 0x78b   :  { %v4062_v28 = vadd.f32 %v4061_v1, %v4043_v63 }
 0x78d   :  { %5601 = vtanh.f32 %v4062_v28 }
 0x797   :  { %v5602_v3 = vpop.eup %5601 }
 0x798   :  { %v4065_v5 = vmul.f32 %v5602_v3, %v4064_v53 }
 0x79a   :  { %v4067_v6 = vadd.f32 %v4066_v4, %v4065_v5 }
 0x79c   :  { %v4080_v7 = vpack.c.bf16 %v4067_v6, %v4067_v6  ;;  %4234 = vst [vmem:[#allocation2 + $0x5] sm:$0x1] %v4067_v6  ;;  %4240 = vst [vmem:[%s5856_s3 + $0x5] sm:$0x1] %v4067_v6 }
 0x79e   :  { %4807 = vmatmul.mubr.msk.bf16.vlgmr.msra.gmra.mrb[24].mxu0 %vm2026_vm2, %v4080_v7 }
 0x871   :  { %v4155_v9 = vpop.f32.mrb[24].mxu0 }
 0x872   :  { %v4156_v10 = vadd.f32 %v4155_v9, %v4081_v8  ;;  %v4808_v46 = vpop.f32.mrb[25].mxu0 }
 0x873   :  { %v4158_v11 = vpop.f32.mrb[26].mxu0 }
 0x874   :  { %v4161_v12 = vmax.f32 %v4156_v10, 0.0  ;;  %v4809_v13 = vpop.f32.mrb[27].mxu0 }
 0x876   :  { %v4168_v22 = vpack.c.bf16 %v4161_v12, %v4161_v12 }
 0x878   :  { %4817 = vmatmul.mubr.msk.bf16.vlgmr.msra.gmra.mrb[48].mxu1 %vm2097_vm3, %v4168_v22 }
 0x94b   :  { %v4225_v20 = vpop.f32.mrb[48].mxu1 }
 0x94c   :  { %v4226_v23 = vadd.f32 %v4225_v20, %v4169_v15  ;;  %v4818_v24 = vpop.f32.mrb[49].mxu1 }
 0x94d   :  { %v4228_v0 = vpop.f32.mrb[50].mxu1 }
 0x94e   :  { %4236 = vst [vmem:[%s5856_s3 + $0x1] sm:$0x1] %v4226_v23  ;;  %v4819_v14 = vpop.f32.mrb[51].mxu1 }
 0x94f   :  { %4246 = vsyncpa [#allocation4], 1 }
 0x950   :  { %4247 = vsyncpa [#allocation6], 1 }

</bundles_post_ra>
